<compile_context>
chip_gen: v7x
topology: tpu7x:2x2x1
jax: 0.10.0
libtpu: 0.0.40
codegen_flags: <defaults>
</compile_context>

<pallas_src>
import jax
import jax.numpy as jnp
from jax.experimental import pallas as pl
from jax.experimental.pallas import tpu as pltpu


def _round_up(a, m):
    return ((a + m - 1) // m) * m


def _make_gru_kernel(T, TT, T_pad):
    """Builds a time-blocked GRU kernel closing over the static sequence sizes."""

    def gru_block_kernel(x_ref, wih_ref, whh_ref, bi_ref, bhn_ref, o_ref):
        # x_ref  : (B_pad, TT, D)  batch-first slab of TT timesteps
        # wih_ref: (3, D, H)       gate-major input weights (transposed)
        # whh_ref: (3, H, H)       gate-major hidden weights (transposed)
        # bi_ref : (3, 1, H)       input-side bias (r/z gates have b_h folded in)
        # bhn_ref: (1, H)          b_hn (must stay inside r * (W_hn h + b_hn))
        # o_ref  : (B_pad, H)      resident output block == recurrent state
        blk = pl.program_id(0)

        @pl.when(blk == 0)
        def _():
            o_ref[...] = jnp.zeros_like(o_ref)

        B_pad, tt, D = x_ref.shape
        H = o_ref.shape[-1]

        # ---- Hoisted input projection: one batched MXU matmul per gate per block.
        # TT is a multiple of 8, so merging (B_pad, TT) is layout-preserving.
        x2 = x_ref[...].reshape(B_pad * tt, D)
        gi_r = (jnp.dot(x2, wih_ref[0], preferred_element_type=jnp.float32)
                + bi_ref[0]).reshape(B_pad, tt, H)
        gi_z = (jnp.dot(x2, wih_ref[1], preferred_element_type=jnp.float32)
                + bi_ref[1]).reshape(B_pad, tt, H)
        gi_n = (jnp.dot(x2, wih_ref[2], preferred_element_type=jnp.float32)
                + bi_ref[2]).reshape(B_pad, tt, H)

        w_hr = whh_ref[0]
        w_hz = whh_ref[1]
        w_hn = whh_ref[2]
        b_hn = bhn_ref[...]

        # ---- Sequential recurrence over the TT steps of this block
        # (static Python loop: TT is small, fully unrolled for the LLO scheduler,
        #  and static `s` keeps the gi slices static).
        h = o_ref[...]
        for s in range(TT):
            h_r = jnp.dot(h, w_hr, preferred_element_type=jnp.float32)
            h_z = jnp.dot(h, w_hz, preferred_element_type=jnp.float32)
            h_n = jnp.dot(h, w_hn, preferred_element_type=jnp.float32) + b_hn
            r = jax.nn.sigmoid(gi_r[:, s, :] + h_r)
            z = jax.nn.sigmoid(gi_z[:, s, :] + h_z)
            n = jnp.tanh(gi_n[:, s, :] + r * h_n)
            h_new = n + z * (h - n)
            if T_pad == T:
                h = h_new
            else:
                # Mask the zero-padded tail timesteps out of the recurrence.
                h = jnp.where(blk * TT + s < T, h_new, h)

        # Single store per block; the output block is resident across the grid.
        o_ref[...] = h

    return gru_block_kernel


def term_encoder_forward(x, w_ih, w_hh, b_ih, b_hh, *, block_t=16):
    """GRU(batch_first) forward returning the last hidden state (== x[:, -1, :]).

    x    : (B, T, D)
    w_ih : (3H, D)  PyTorch weight_ih_l0, gate order r, z, n
    w_hh : (3H, H)  PyTorch weight_hh_l0
    b_ih : (3H,)    PyTorch bias_ih_l0
    b_hh : (3H,)    PyTorch bias_hh_l0
    returns (B, H)
    """
    assert block_t % 8 == 0
    B, T, D = x.shape
    H = w_hh.shape[1]

    # Gate-major, transposed weights: each gate is its own lane-dense block.
    wih_g = jnp.transpose(jnp.reshape(w_ih, (3, H, D)), (0, 2, 1)).astype(jnp.float32)  # (3,D,H)
    whh_g = jnp.transpose(jnp.reshape(w_hh, (3, H, H)), (0, 2, 1)).astype(jnp.float32)  # (3,H,H)
    b_i3 = jnp.reshape(b_ih, (3, 1, H)).astype(jnp.float32)
    b_h3 = jnp.reshape(b_hh, (3, 1, H)).astype(jnp.float32)
    # Fold the hidden-side bias into the input-side bias for r and z; keep b_hn separate.
    bi = jnp.concatenate([b_i3[:2] + b_h3[:2], b_i3[2:3]], axis=0)  # (3, 1, H)
    bhn = b_h3[2]                                                   # (1, H)

    # Pad batch to a sublane multiple and time to a multiple of the time block.
    B_pad = _round_up(B, 8)
    TT = min(block_t, _round_up(T, 8))   # multiple of 8 -> (8,128)-friendly blocks & reshapes
    T_pad = _round_up(T, TT)
    if B_pad == B and T_pad == T:
        x_p = x.astype(jnp.float32)
    else:
        x_p = jnp.zeros((B_pad, T_pad, D), jnp.float32).at[:B, :T, :].set(
            x.astype(jnp.float32))

    kernel = _make_gru_kernel(T, TT, T_pad)

    out = pl.pallas_call(
        kernel,
        out_shape=jax.ShapeDtypeStruct((B_pad, H), jnp.float32),
        grid_spec=pltpu.PrefetchScalarGridSpec(
            num_scalar_prefetch=0,
            grid=(T_pad // TT,),
            in_specs=[
                pl.BlockSpec((B_pad, TT, D), lambda t: (0, t, 0)),   # x, batch-first, time-sliced
                pl.BlockSpec((3, D, H), lambda t: (0, 0, 0)),        # W_ih (grid-invariant)
                pl.BlockSpec((3, H, H), lambda t: (0, 0, 0)),        # W_hh (grid-invariant)
                pl.BlockSpec((3, 1, H), lambda t: (0, 0, 0)),        # folded input bias
                pl.BlockSpec((1, H), lambda t: (0, 0)),              # b_hn
            ],
            out_specs=pl.BlockSpec((B_pad, H), lambda t: (0, 0)),    # resident state/output
        ),
        compiler_params=pltpu.CompilerParams(
            dimension_semantics=("arbitrary",),  # recurrence over time blocks is sequential
        ),
    )(x_p, wih_g, whh_g, bi, bhn)

    return out[:B]


def gru_reference(x, w_ih, w_hh, b_ih, b_hh):
    """Pure-JAX reference of the PyTorch GRU forward (last hidden state)."""
    B, T, D = x.shape
    H = w_hh.shape[1]
    h = jnp.zeros((B, H), dtype=jnp.float32)
    for t in range(T):
        gi = x[:, t, :] @ w_ih.T + b_ih
        gh = h @ w_hh.T + b_hh
        i_r, i_z, i_n = gi[:, :H], gi[:, H:2 * H], gi[:, 2 * H:]
        h_r, h_z, h_n = gh[:, :H], gh[:, H:2 * H], gh[:, 2 * H:]
        r = jax.nn.sigmoid(i_r + h_r)
        z = jax.nn.sigmoid(i_z + h_z)
        n = jnp.tanh(i_n + r * h_n)
        h = (1.0 - z) * n + z * h
    return h


if __name__ == "__main__":
    def make_inputs(key, B, T, D, H):
        kx, k1, k2, k3, k4 = jax.random.split(key, 5)
        x = jax.random.normal(kx, (B, T, D), dtype=jnp.float32)
        # PyTorch GRU parameter shapes: weight_ih_l0 (3H, D), weight_hh_l0 (3H, H),
        # biases (3H,), gate order r, z, n.
        scale = 1.0 / jnp.sqrt(jnp.float32(H))
        w_ih = jax.random.uniform(k1, (3 * H, D), jnp.float32, -scale, scale)
        w_hh = jax.random.uniform(k2, (3 * H, H), jnp.float32, -scale, scale)
        b_ih = jax.random.uniform(k3, (3 * H,), jnp.float32, -scale, scale)
        b_hh = jax.random.uniform(k4, (3 * H,), jnp.float32, -scale, scale)
        return x, w_ih, w_hh, b_ih, b_hh

    key = jax.random.PRNGKey(0)
    ka, kb = jax.random.split(key)

    # Config 1: shapes implied by the module (batch=2, seq=8, vec_size=32, hidden=32).
    args1 = make_inputs(ka, B=2, T=8, D=32, H=32)
    out1 = jax.block_until_ready(term_encoder_forward(*args1))
    ref1 = gru_reference(*args1)
    assert out1.shape == (2, 32)
    assert jnp.allclose(out1, ref1, atol=1e-4, rtol=1e-4), "mismatch vs reference (config 1)"

    # Config 2: exercises batch padding, time padding and tail-step masking.
    args2 = make_inputs(kb, B=3, T=13, D=48, H=40)
    out2 = jax.block_until_ready(term_encoder_forward(*args2))
    ref2 = gru_reference(*args2)
    assert out2.shape == (3, 40)
    assert jnp.allclose(out2, ref2, atol=1e-4, rtol=1e-4), "mismatch vs reference (config 2)"

    print("KERNEL_OK")
</pallas_src>

<mosaic_0001>
module attributes {stable_mosaic.version = 11 : i64} {
  func.func @gru_block_kernel(%arg0: i32, %arg1: memref<8x8x32xf32, #tpu.memory_space<vmem>>, %arg2: memref<3x32x32xf32, #tpu.memory_space<vmem>>, %arg3: memref<3x32x32xf32, #tpu.memory_space<vmem>>, %arg4: memref<3x1x32xf32, #tpu.memory_space<vmem>>, %arg5: memref<1x32xf32, #tpu.memory_space<vmem>>, %arg6: memref<8x32xf32, #tpu.memory_space<vmem>>) attributes {dimension_semantics = [#tpu.dimension_semantics<arbitrary>], iteration_bounds = array<i64: 1>, scalar_prefetch = 0 : i64, scratch_operands = 0 : i64, tpu.core_type = #tpu.core_type<tc>, window_params = [{transform_indices = @transform_0, window_bounds = array<i64: 8, 8, 32>}, {pipeline_mode = #tpu.pipeline_mode<synchronous>, transform_indices = @transform_1, window_bounds = array<i64: 3, 32, 32>}, {pipeline_mode = #tpu.pipeline_mode<synchronous>, transform_indices = @transform_2, window_bounds = array<i64: 3, 32, 32>}, {pipeline_mode = #tpu.pipeline_mode<synchronous>, transform_indices = @transform_3, window_bounds = array<i64: 3, 1, 32>}, {pipeline_mode = #tpu.pipeline_mode<synchronous>, transform_indices = @transform_4, window_bounds = array<i64: 1, 32>}, {pipeline_mode = #tpu.pipeline_mode<synchronous>, transform_indices = @transform_5, window_bounds = array<i64: 8, 32>}]} {
    %c0_i32 = arith.constant 0 : i32
    %0 = arith.cmpi eq, %arg0, %c0_i32 : i32
    %1 = arith.extui %0 : i1 to i32
    %c0_i32_0 = arith.constant 0 : i32
    %2 = arith.cmpi ne, %1, %c0_i32_0 : i32
    scf.if %2 {
      %cst_76 = arith.constant 0.000000e+00 : f32
      %270 = vector.broadcast %cst_76 : f32 to vector<8x32xf32>
      %c0_77 = arith.constant 0 : index
      %c0_78 = arith.constant 0 : index
      %271 = vector.load %arg6[%c0_77, %c0_78] : memref<8x32xf32, #tpu.memory_space<vmem>>, vector<8x32xf32>
      tpu.vector_store %arg6[%c0_77, %c0_78], %270 {strides = array<i32>} : memref<8x32xf32, #tpu.memory_space<vmem>>, vector<8x32xf32>,
    } else {
    }
    %c0 = arith.constant 0 : index
    %c0_1 = arith.constant 0 : index
    %c0_2 = arith.constant 0 : index
    %3 = vector.load %arg1[%c0, %c0_1, %c0_2] : memref<8x8x32xf32, #tpu.memory_space<vmem>>, vector<8x8x32xf32>
    %4 = vector.shape_cast %3 : vector<8x8x32xf32> to vector<64x32xf32>
    %c0_3 = arith.constant 0 : index
    %c0_4 = arith.constant 0 : index
    %c0_5 = arith.constant 0 : index
    %5 = vector.load %arg2[%c0_3, %c0_4, %c0_5] : memref<3x32x32xf32, #tpu.memory_space<vmem>>, vector<1x32x32xf32>
    %6 = vector.shape_cast %5 : vector<1x32x32xf32> to vector<32x32xf32>
    %cst = arith.constant dense<0.000000e+00> : vector<64x32xf32>
    %7 = tpu.matmul %4, %6, %cst {dimension_numbers = #tpu.dot_dimension_numbers<[1], [0], [0], [1], [0, 0, 1, 1], [], []>} : vector<64x32xf32>, vector<32x32xf32>, vector<64x32xf32> -> vector<64x32xf32>
    %c0_6 = arith.constant 0 : index
    %c0_7 = arith.constant 0 : index
    %c0_8 = arith.constant 0 : index
    %8 = vector.load %arg4[%c0_6, %c0_7, %c0_8] : memref<3x1x32xf32, #tpu.memory_space<vmem>>, vector<1x1x32xf32>
    %9 = vector.shape_cast %8 : vector<1x1x32xf32> to vector<1x32xf32>
    %10 = vector.broadcast %9 : vector<1x32xf32> to vector<64x32xf32>
    %11 = arith.addf %7, %10 : vector<64x32xf32>
    %12 = vector.shape_cast %11 : vector<64x32xf32> to vector<8x8x32xf32>
    %c1 = arith.constant 1 : index
    %c0_9 = arith.constant 0 : index
    %c0_10 = arith.constant 0 : index
    %13 = vector.load %arg2[%c1, %c0_9, %c0_10] : memref<3x32x32xf32, #tpu.memory_space<vmem>>, vector<1x32x32xf32>
    %14 = vector.shape_cast %13 : vector<1x32x32xf32> to vector<32x32xf32>
    %cst_11 = arith.constant dense<0.000000e+00> : vector<64x32xf32>
    %15 = tpu.matmul %4, %14, %cst_11 {dimension_numbers = #tpu.dot_dimension_numbers<[1], [0], [0], [1], [0, 0, 1, 1], [], []>} : vector<64x32xf32>, vector<32x32xf32>, vector<64x32xf32> -> vector<64x32xf32>
    %c1_12 = arith.constant 1 : index
    %c0_13 = arith.constant 0 : index
    %c0_14 = arith.constant 0 : index
    %16 = vector.load %arg4[%c1_12, %c0_13, %c0_14] : memref<3x1x32xf32, #tpu.memory_space<vmem>>, vector<1x1x32xf32>
    %17 = vector.shape_cast %16 : vector<1x1x32xf32> to vector<1x32xf32>
    %18 = vector.broadcast %17 : vector<1x32xf32> to vector<64x32xf32>
    %19 = arith.addf %15, %18 : vector<64x32xf32>
    %20 = vector.shape_cast %19 : vector<64x32xf32> to vector<8x8x32xf32>
    %c2 = arith.constant 2 : index
    %c0_15 = arith.constant 0 : index
    %c0_16 = arith.constant 0 : index
    %21 = vector.load %arg2[%c2, %c0_15, %c0_16] : memref<3x32x32xf32, #tpu.memory_space<vmem>>, vector<1x32x32xf32>
    %22 = vector.shape_cast %21 : vector<1x32x32xf32> to vector<32x32xf32>
    %cst_17 = arith.constant dense<0.000000e+00> : vector<64x32xf32>
    %23 = tpu.matmul %4, %22, %cst_17 {dimension_numbers = #tpu.dot_dimension_numbers<[1], [0], [0], [1], [0, 0, 1, 1], [], []>} : vector<64x32xf32>, vector<32x32xf32>, vector<64x32xf32> -> vector<64x32xf32>
    %c2_18 = arith.constant 2 : index
    %c0_19 = arith.constant 0 : index
    %c0_20 = arith.constant 0 : index
    %24 = vector.load %arg4[%c2_18, %c0_19, %c0_20] : memref<3x1x32xf32, #tpu.memory_space<vmem>>, vector<1x1x32xf32>
    %25 = vector.shape_cast %24 : vector<1x1x32xf32> to vector<1x32xf32>
    %26 = vector.broadcast %25 : vector<1x32xf32> to vector<64x32xf32>
    %27 = arith.addf %23, %26 : vector<64x32xf32>
    %28 = vector.shape_cast %27 : vector<64x32xf32> to vector<8x8x32xf32>
    %c0_21 = arith.constant 0 : index
    %c0_22 = arith.constant 0 : index
    %c0_23 = arith.constant 0 : index
    %29 = vector.load %arg3[%c0_21, %c0_22, %c0_23] : memref<3x32x32xf32, #tpu.memory_space<vmem>>, vector<1x32x32xf32>
    %30 = vector.shape_cast %29 : vector<1x32x32xf32> to vector<32x32xf32>
    %c1_24 = arith.constant 1 : index
    %c0_25 = arith.constant 0 : index
    %c0_26 = arith.constant 0 : index
    %31 = vector.load %arg3[%c1_24, %c0_25, %c0_26] : memref<3x32x32xf32, #tpu.memory_space<vmem>>, vector<1x32x32xf32>
    %32 = vector.shape_cast %31 : vector<1x32x32xf32> to vector<32x32xf32>
    %c2_27 = arith.constant 2 : index
    %c0_28 = arith.constant 0 : index
    %c0_29 = arith.constant 0 : index
    %33 = vector.load %arg3[%c2_27, %c0_28, %c0_29] : memref<3x32x32xf32, #tpu.memory_space<vmem>>, vector<1x32x32xf32>
    %34 = vector.shape_cast %33 : vector<1x32x32xf32> to vector<32x32xf32>
    %c0_30 = arith.constant 0 : index
    %c0_31 = arith.constant 0 : index
    %35 = vector.load %arg5[%c0_30, %c0_31] : memref<1x32xf32, #tpu.memory_space<vmem>>, vector<1x32xf32>
    %c0_32 = arith.constant 0 : index
    %c0_33 = arith.constant 0 : index
    %36 = vector.load %arg6[%c0_32, %c0_33] : memref<8x32xf32, #tpu.memory_space<vmem>>, vector<8x32xf32>
    %cst_34 = arith.constant dense<0.000000e+00> : vector<8x32xf32>
    %37 = tpu.matmul %36, %30, %cst_34 {dimension_numbers = #tpu.dot_dimension_numbers<[1], [0], [0], [1], [0, 0, 1, 1], [], []>} : vector<8x32xf32>, vector<32x32xf32>, vector<8x32xf32> -> vector<8x32xf32>
    %cst_35 = arith.constant dense<0.000000e+00> : vector<8x32xf32>
    %38 = tpu.matmul %36, %32, %cst_35 {dimension_numbers = #tpu.dot_dimension_numbers<[1], [0], [0], [1], [0, 0, 1, 1], [], []>} : vector<8x32xf32>, vector<32x32xf32>, vector<8x32xf32> -> vector<8x32xf32>
    %cst_36 = arith.constant dense<0.000000e+00> : vector<8x32xf32>
    %39 = tpu.matmul %36, %34, %cst_36 {dimension_numbers = #tpu.dot_dimension_numbers<[1], [0], [0], [1], [0, 0, 1, 1], [], []>} : vector<8x32xf32>, vector<32x32xf32>, vector<8x32xf32> -> vector<8x32xf32>
    %40 = vector.broadcast %35 : vector<1x32xf32> to vector<8x32xf32>
    %41 = arith.addf %39, %40 : vector<8x32xf32>
    %42 = vector.extract_strided_slice %12 {offsets = [0, 0, 0], sizes = [8, 1, 32], strides = [1, 1, 1]} : vector<8x8x32xf32> to vector<8x1x32xf32>
    %43 = vector.shape_cast %42 : vector<8x1x32xf32> to vector<8x32xf32>
    %44 = arith.addf %43, %37 : vector<8x32xf32>
    %45 = arith.negf %44 : vector<8x32xf32>
    %46 = math.exp %45 : vector<8x32xf32>
    %cst_37 = arith.constant 1.000000e+00 : f32
    %47 = vector.broadcast %cst_37 : f32 to vector<8x32xf32>
    %48 = arith.addf %47, %46 : vector<8x32xf32>
    %49 = arith.divf %47, %48 : vector<8x32xf32>
    %50 = vector.extract_strided_slice %20 {offsets = [0, 0, 0], sizes = [8, 1, 32], strides = [1, 1, 1]} : vector<8x8x32xf32> to vector<8x1x32xf32>
    %51 = vector.shape_cast %50 : vector<8x1x32xf32> to vector<8x32xf32>
    %52 = arith.addf %51, %38 : vector<8x32xf32>
    %53 = arith.negf %52 : vector<8x32xf32>
    %54 = math.exp %53 : vector<8x32xf32>
    %cst_38 = arith.constant 1.000000e+00 : f32
    %55 = vector.broadcast %cst_38 : f32 to vector<8x32xf32>
    %56 = arith.addf %55, %54 : vector<8x32xf32>
    %57 = arith.divf %55, %56 : vector<8x32xf32>
    %58 = vector.extract_strided_slice %28 {offsets = [0, 0, 0], sizes = [8, 1, 32], strides = [1, 1, 1]} : vector<8x8x32xf32> to vector<8x1x32xf32>
    %59 = vector.shape_cast %58 : vector<8x1x32xf32> to vector<8x32xf32>
    %60 = arith.mulf %49, %41 : vector<8x32xf32>
    %61 = arith.addf %59, %60 : vector<8x32xf32>
    %62 = math.tanh %61 : vector<8x32xf32>
    %63 = arith.subf %36, %62 : vector<8x32xf32>
    %64 = arith.mulf %57, %63 : vector<8x32xf32>
    %65 = arith.addf %62, %64 : vector<8x32xf32>
    %cst_39 = arith.constant dense<0.000000e+00> : vector<8x32xf32>
    %66 = tpu.matmul %65, %30, %cst_39 {dimension_numbers = #tpu.dot_dimension_numbers<[1], [0], [0], [1], [0, 0, 1, 1], [], []>} : vector<8x32xf32>, vector<32x32xf32>, vector<8x32xf32> -> vector<8x32xf32>
    %cst_40 = arith.constant dense<0.000000e+00> : vector<8x32xf32>
    %67 = tpu.matmul %65, %32, %cst_40 {dimension_numbers = #tpu.dot_dimension_numbers<[1], [0], [0], [1], [0, 0, 1, 1], [], []>} : vector<8x32xf32>, vector<32x32xf32>, vector<8x32xf32> -> vector<8x32xf32>
    %cst_41 = arith.constant dense<0.000000e+00> : vector<8x32xf32>
    %68 = tpu.matmul %65, %34, %cst_41 {dimension_numbers = #tpu.dot_dimension_numbers<[1], [0], [0], [1], [0, 0, 1, 1], [], []>} : vector<8x32xf32>, vector<32x32xf32>, vector<8x32xf32> -> vector<8x32xf32>
    %69 = vector.broadcast %35 : vector<1x32xf32> to vector<8x32xf32>
    %70 = arith.addf %68, %69 : vector<8x32xf32>
    %71 = vector.extract_strided_slice %12 {offsets = [0, 1, 0], sizes = [8, 1, 32], strides = [1, 1, 1]} : vector<8x8x32xf32> to vector<8x1x32xf32>
    %72 = vector.shape_cast %71 : vector<8x1x32xf32> to vector<8x32xf32>
    %73 = arith.addf %72, %66 : vector<8x32xf32>
    %74 = arith.negf %73 : vector<8x32xf32>
    %75 = math.exp %74 : vector<8x32xf32>
    %cst_42 = arith.constant 1.000000e+00 : f32
    %76 = vector.broadcast %cst_42 : f32 to vector<8x32xf32>
    %77 = arith.addf %76, %75 : vector<8x32xf32>
    %78 = arith.divf %76, %77 : vector<8x32xf32>
    %79 = vector.extract_strided_slice %20 {offsets = [0, 1, 0], sizes = [8, 1, 32], strides = [1, 1, 1]} : vector<8x8x32xf32> to vector<8x1x32xf32>
    %80 = vector.shape_cast %79 : vector<8x1x32xf32> to vector<8x32xf32>
    %81 = arith.addf %80, %67 : vector<8x32xf32>
    %82 = arith.negf %81 : vector<8x32xf32>
    %83 = math.exp %82 : vector<8x32xf32>
    %cst_43 = arith.constant 1.000000e+00 : f32
    %84 = vector.broadcast %cst_43 : f32 to vector<8x32xf32>
    %85 = arith.addf %84, %83 : vector<8x32xf32>
    %86 = arith.divf %84, %85 : vector<8x32xf32>
    %87 = vector.extract_strided_slice %28 {offsets = [0, 1, 0], sizes = [8, 1, 32], strides = [1, 1, 1]} : vector<8x8x32xf32> to vector<8x1x32xf32>
    %88 = vector.shape_cast %87 : vector<8x1x32xf32> to vector<8x32xf32>
    %89 = arith.mulf %78, %70 : vector<8x32xf32>
    %90 = arith.addf %88, %89 : vector<8x32xf32>
    %91 = math.tanh %90 : vector<8x32xf32>
    %92 = arith.subf %65, %91 : vector<8x32xf32>
    %93 = arith.mulf %86, %92 : vector<8x32xf32>
    %94 = arith.addf %91, %93 : vector<8x32xf32>
    %cst_44 = arith.constant dense<0.000000e+00> : vector<8x32xf32>
    %95 = tpu.matmul %94, %30, %cst_44 {dimension_numbers = #tpu.dot_dimension_numbers<[1], [0], [0], [1], [0, 0, 1, 1], [], []>} : vector<8x32xf32>, vector<32x32xf32>, vector<8x32xf32> -> vector<8x32xf32>
    %cst_45 = arith.constant dense<0.000000e+00> : vector<8x32xf32>
    %96 = tpu.matmul %94, %32, %cst_45 {dimension_numbers = #tpu.dot_dimension_numbers<[1], [0], [0], [1], [0, 0, 1, 1], [], []>} : vector<8x32xf32>, vector<32x32xf32>, vector<8x32xf32> -> vector<8x32xf32>
    %cst_46 = arith.constant dense<0.000000e+00> : vector<8x32xf32>
    %97 = tpu.matmul %94, %34, %cst_46 {dimension_numbers = #tpu.dot_dimension_numbers<[1], [0], [0], [1], [0, 0, 1, 1], [], []>} : vector<8x32xf32>, vector<32x32xf32>, vector<8x32xf32> -> vector<8x32xf32>
    %98 = vector.broadcast %35 : vector<1x32xf32> to vector<8x32xf32>
    %99 = arith.addf %97, %98 : vector<8x32xf32>
    %100 = vector.extract_strided_slice %12 {offsets = [0, 2, 0], sizes = [8, 1, 32], strides = [1, 1, 1]} : vector<8x8x32xf32> to vector<8x1x32xf32>
    %101 = vector.shape_cast %100 : vector<8x1x32xf32> to vector<8x32xf32>
    %102 = arith.addf %101, %95 : vector<8x32xf32>
    %103 = arith.negf %102 : vector<8x32xf32>
    %104 = math.exp %103 : vector<8x32xf32>
    %cst_47 = arith.constant 1.000000e+00 : f32
    %105 = vector.broadcast %cst_47 : f32 to vector<8x32xf32>
    %106 = arith.addf %105, %104 : vector<8x32xf32>
    %107 = arith.divf %105, %106 : vector<8x32xf32>
    %108 = vector.extract_strided_slice %20 {offsets = [0, 2, 0], sizes = [8, 1, 32], strides = [1, 1, 1]} : vector<8x8x32xf32> to vector<8x1x32xf32>
    %109 = vector.shape_cast %108 : vector<8x1x32xf32> to vector<8x32xf32>
    %110 = arith.addf %109, %96 : vector<8x32xf32>
    %111 = arith.negf %110 : vector<8x32xf32>
    %112 = math.exp %111 : vector<8x32xf32>
    %cst_48 = arith.constant 1.000000e+00 : f32
    %113 = vector.broadcast %cst_48 : f32 to vector<8x32xf32>
    %114 = arith.addf %113, %112 : vector<8x32xf32>
    %115 = arith.divf %113, %114 : vector<8x32xf32>
    %116 = vector.extract_strided_slice %28 {offsets = [0, 2, 0], sizes = [8, 1, 32], strides = [1, 1, 1]} : vector<8x8x32xf32> to vector<8x1x32xf32>
    %117 = vector.shape_cast %116 : vector<8x1x32xf32> to vector<8x32xf32>
    %118 = arith.mulf %107, %99 : vector<8x32xf32>
    %119 = arith.addf %117, %118 : vector<8x32xf32>
    %120 = math.tanh %119 : vector<8x32xf32>
    %121 = arith.subf %94, %120 : vector<8x32xf32>
    %122 = arith.mulf %115, %121 : vector<8x32xf32>
    %123 = arith.addf %120, %122 : vector<8x32xf32>
    %cst_49 = arith.constant dense<0.000000e+00> : vector<8x32xf32>
    %124 = tpu.matmul %123, %30, %cst_49 {dimension_numbers = #tpu.dot_dimension_numbers<[1], [0], [0], [1], [0, 0, 1, 1], [], []>} : vector<8x32xf32>, vector<32x32xf32>, vector<8x32xf32> -> vector<8x32xf32>
    %cst_50 = arith.constant dense<0.000000e+00> : vector<8x32xf32>
    %125 = tpu.matmul %123, %32, %cst_50 {dimension_numbers = #tpu.dot_dimension_numbers<[1], [0], [0], [1], [0, 0, 1, 1], [], []>} : vector<8x32xf32>, vector<32x32xf32>, vector<8x32xf32> -> vector<8x32xf32>
    %cst_51 = arith.constant dense<0.000000e+00> : vector<8x32xf32>
    %126 = tpu.matmul %123, %34, %cst_51 {dimension_numbers = #tpu.dot_dimension_numbers<[1], [0], [0], [1], [0, 0, 1, 1], [], []>} : vector<8x32xf32>, vector<32x32xf32>, vector<8x32xf32> -> vector<8x32xf32>
    %127 = vector.broadcast %35 : vector<1x32xf32> to vector<8x32xf32>
    %128 = arith.addf %126, %127 : vector<8x32xf32>
    %129 = vector.extract_strided_slice %12 {offsets = [0, 3, 0], sizes = [8, 1, 32], strides = [1, 1, 1]} : vector<8x8x32xf32> to vector<8x1x32xf32>
    %130 = vector.shape_cast %129 : vector<8x1x32xf32> to vector<8x32xf32>
    %131 = arith.addf %130, %124 : vector<8x32xf32>
    %132 = arith.negf %131 : vector<8x32xf32>
    %133 = math.exp %132 : vector<8x32xf32>
    %cst_52 = arith.constant 1.000000e+00 : f32
    %134 = vector.broadcast %cst_52 : f32 to vector<8x32xf32>
    %135 = arith.addf %134, %133 : vector<8x32xf32>
    %136 = arith.divf %134, %135 : vector<8x32xf32>
    %137 = vector.extract_strided_slice %20 {offsets = [0, 3, 0], sizes = [8, 1, 32], strides = [1, 1, 1]} : vector<8x8x32xf32> to vector<8x1x32xf32>
    %138 = vector.shape_cast %137 : vector<8x1x32xf32> to vector<8x32xf32>
    %139 = arith.addf %138, %125 : vector<8x32xf32>
    %140 = arith.negf %139 : vector<8x32xf32>
    %141 = math.exp %140 : vector<8x32xf32>
    %cst_53 = arith.constant 1.000000e+00 : f32
    %142 = vector.broadcast %cst_53 : f32 to vector<8x32xf32>
    %143 = arith.addf %142, %141 : vector<8x32xf32>
    %144 = arith.divf %142, %143 : vector<8x32xf32>
    %145 = vector.extract_strided_slice %28 {offsets = [0, 3, 0], sizes = [8, 1, 32], strides = [1, 1, 1]} : vector<8x8x32xf32> to vector<8x1x32xf32>
    %146 = vector.shape_cast %145 : vector<8x1x32xf32> to vector<8x32xf32>
    %147 = arith.mulf %136, %128 : vector<8x32xf32>
    %148 = arith.addf %146, %147 : vector<8x32xf32>
    %149 = math.tanh %148 : vector<8x32xf32>
    %150 = arith.subf %123, %149 : vector<8x32xf32>
    %151 = arith.mulf %144, %150 : vector<8x32xf32>
    %152 = arith.addf %149, %151 : vector<8x32xf32>
    %cst_54 = arith.constant dense<0.000000e+00> : vector<8x32xf32>
    %153 = tpu.matmul %152, %30, %cst_54 {dimension_numbers = #tpu.dot_dimension_numbers<[1], [0], [0], [1], [0, 0, 1, 1], [], []>} : vector<8x32xf32>, vector<32x32xf32>, vector<8x32xf32> -> vector<8x32xf32>
    %cst_55 = arith.constant dense<0.000000e+00> : vector<8x32xf32>
    %154 = tpu.matmul %152, %32, %cst_55 {dimension_numbers = #tpu.dot_dimension_numbers<[1], [0], [0], [1], [0, 0, 1, 1], [], []>} : vector<8x32xf32>, vector<32x32xf32>, vector<8x32xf32> -> vector<8x32xf32>
    %cst_56 = arith.constant dense<0.000000e+00> : vector<8x32xf32>
    %155 = tpu.matmul %152, %34, %cst_56 {dimension_numbers = #tpu.dot_dimension_numbers<[1], [0], [0], [1], [0, 0, 1, 1], [], []>} : vector<8x32xf32>, vector<32x32xf32>, vector<8x32xf32> -> vector<8x32xf32>
    %156 = vector.broadcast %35 : vector<1x32xf32> to vector<8x32xf32>
    %157 = arith.addf %155, %156 : vector<8x32xf32>
    %158 = vector.extract_strided_slice %12 {offsets = [0, 4, 0], sizes = [8, 1, 32], strides = [1, 1, 1]} : vector<8x8x32xf32> to vector<8x1x32xf32>
    %159 = vector.shape_cast %158 : vector<8x1x32xf32> to vector<8x32xf32>
    %160 = arith.addf %159, %153 : vector<8x32xf32>
    %161 = arith.negf %160 : vector<8x32xf32>
    %162 = math.exp %161 : vector<8x32xf32>
    %cst_57 = arith.constant 1.000000e+00 : f32
    %163 = vector.broadcast %cst_57 : f32 to vector<8x32xf32>
    %164 = arith.addf %163, %162 : vector<8x32xf32>
    %165 = arith.divf %163, %164 : vector<8x32xf32>
    %166 = vector.extract_strided_slice %20 {offsets = [0, 4, 0], sizes = [8, 1, 32], strides = [1, 1, 1]} : vector<8x8x32xf32> to vector<8x1x32xf32>
    %167 = vector.shape_cast %166 : vector<8x1x32xf32> to vector<8x32xf32>
    %168 = arith.addf %167, %154 : vector<8x32xf32>
    %169 = arith.negf %168 : vector<8x32xf32>
    %170 = math.exp %169 : vector<8x32xf32>
    %cst_58 = arith.constant 1.000000e+00 : f32
    %171 = vector.broadcast %cst_58 : f32 to vector<8x32xf32>
    %172 = arith.addf %171, %170 : vector<8x32xf32>
    %173 = arith.divf %171, %172 : vector<8x32xf32>
    %174 = vector.extract_strided_slice %28 {offsets = [0, 4, 0], sizes = [8, 1, 32], strides = [1, 1, 1]} : vector<8x8x32xf32> to vector<8x1x32xf32>
    %175 = vector.shape_cast %174 : vector<8x1x32xf32> to vector<8x32xf32>
    %176 = arith.mulf %165, %157 : vector<8x32xf32>
    %177 = arith.addf %175, %176 : vector<8x32xf32>
    %178 = math.tanh %177 : vector<8x32xf32>
    %179 = arith.subf %152, %178 : vector<8x32xf32>
    %180 = arith.mulf %173, %179 : vector<8x32xf32>
    %181 = arith.addf %178, %180 : vector<8x32xf32>
    %cst_59 = arith.constant dense<0.000000e+00> : vector<8x32xf32>
    %182 = tpu.matmul %181, %30, %cst_59 {dimension_numbers = #tpu.dot_dimension_numbers<[1], [0], [0], [1], [0, 0, 1, 1], [], []>} : vector<8x32xf32>, vector<32x32xf32>, vector<8x32xf32> -> vector<8x32xf32>
    %cst_60 = arith.constant dense<0.000000e+00> : vector<8x32xf32>
    %183 = tpu.matmul %181, %32, %cst_60 {dimension_numbers = #tpu.dot_dimension_numbers<[1], [0], [0], [1], [0, 0, 1, 1], [], []>} : vector<8x32xf32>, vector<32x32xf32>, vector<8x32xf32> -> vector<8x32xf32>
    %cst_61 = arith.constant dense<0.000000e+00> : vector<8x32xf32>
    %184 = tpu.matmul %181, %34, %cst_61 {dimension_numbers = #tpu.dot_dimension_numbers<[1], [0], [0], [1], [0, 0, 1, 1], [], []>} : vector<8x32xf32>, vector<32x32xf32>, vector<8x32xf32> -> vector<8x32xf32>
    %185 = vector.broadcast %35 : vector<1x32xf32> to vector<8x32xf32>
    %186 = arith.addf %184, %185 : vector<8x32xf32>
    %187 = vector.extract_strided_slice %12 {offsets = [0, 5, 0], sizes = [8, 1, 32], strides = [1, 1, 1]} : vector<8x8x32xf32> to vector<8x1x32xf32>
    %188 = vector.shape_cast %187 : vector<8x1x32xf32> to vector<8x32xf32>
    %189 = arith.addf %188, %182 : vector<8x32xf32>
    %190 = arith.negf %189 : vector<8x32xf32>
    %191 = math.exp %190 : vector<8x32xf32>
    %cst_62 = arith.constant 1.000000e+00 : f32
    %192 = vector.broadcast %cst_62 : f32 to vector<8x32xf32>
    %193 = arith.addf %192, %191 : vector<8x32xf32>
    %194 = arith.divf %192, %193 : vector<8x32xf32>
    %195 = vector.extract_strided_slice %20 {offsets = [0, 5, 0], sizes = [8, 1, 32], strides = [1, 1, 1]} : vector<8x8x32xf32> to vector<8x1x32xf32>
    %196 = vector.shape_cast %195 : vector<8x1x32xf32> to vector<8x32xf32>
    %197 = arith.addf %196, %183 : vector<8x32xf32>
    %198 = arith.negf %197 : vector<8x32xf32>
    %199 = math.exp %198 : vector<8x32xf32>
    %cst_63 = arith.constant 1.000000e+00 : f32
    %200 = vector.broadcast %cst_63 : f32 to vector<8x32xf32>
    %201 = arith.addf %200, %199 : vector<8x32xf32>
    %202 = arith.divf %200, %201 : vector<8x32xf32>
    %203 = vector.extract_strided_slice %28 {offsets = [0, 5, 0], sizes = [8, 1, 32], strides = [1, 1, 1]} : vector<8x8x32xf32> to vector<8x1x32xf32>
    %204 = vector.shape_cast %203 : vector<8x1x32xf32> to vector<8x32xf32>
    %205 = arith.mulf %194, %186 : vector<8x32xf32>
    %206 = arith.addf %204, %205 : vector<8x32xf32>
    %207 = math.tanh %206 : vector<8x32xf32>
    %208 = arith.subf %181, %207 : vector<8x32xf32>
    %209 = arith.mulf %202, %208 : vector<8x32xf32>
    %210 = arith.addf %207, %209 : vector<8x32xf32>
    %cst_64 = arith.constant dense<0.000000e+00> : vector<8x32xf32>
    %211 = tpu.matmul %210, %30, %cst_64 {dimension_numbers = #tpu.dot_dimension_numbers<[1], [0], [0], [1], [0, 0, 1, 1], [], []>} : vector<8x32xf32>, vector<32x32xf32>, vector<8x32xf32> -> vector<8x32xf32>
    %cst_65 = arith.constant dense<0.000000e+00> : vector<8x32xf32>
    %212 = tpu.matmul %210, %32, %cst_65 {dimension_numbers = #tpu.dot_dimension_numbers<[1], [0], [0], [1], [0, 0, 1, 1], [], []>} : vector<8x32xf32>, vector<32x32xf32>, vector<8x32xf32> -> vector<8x32xf32>
    %cst_66 = arith.constant dense<0.000000e+00> : vector<8x32xf32>
    %213 = tpu.matmul %210, %34, %cst_66 {dimension_numbers = #tpu.dot_dimension_numbers<[1], [0], [0], [1], [0, 0, 1, 1], [], []>} : vector<8x32xf32>, vector<32x32xf32>, vector<8x32xf32> -> vector<8x32xf32>
    %214 = vector.broadcast %35 : vector<1x32xf32> to vector<8x32xf32>
    %215 = arith.addf %213, %214 : vector<8x32xf32>
    %216 = vector.extract_strided_slice %12 {offsets = [0, 6, 0], sizes = [8, 1, 32], strides = [1, 1, 1]} : vector<8x8x32xf32> to vector<8x1x32xf32>
    %217 = vector.shape_cast %216 : vector<8x1x32xf32> to vector<8x32xf32>
    %218 = arith.addf %217, %211 : vector<8x32xf32>
    %219 = arith.negf %218 : vector<8x32xf32>
    %220 = math.exp %219 : vector<8x32xf32>
    %cst_67 = arith.constant 1.000000e+00 : f32
    %221 = vector.broadcast %cst_67 : f32 to vector<8x32xf32>
    %222 = arith.addf %221, %220 : vector<8x32xf32>
    %223 = arith.divf %221, %222 : vector<8x32xf32>
    %224 = vector.extract_strided_slice %20 {offsets = [0, 6, 0], sizes = [8, 1, 32], strides = [1, 1, 1]} : vector<8x8x32xf32> to vector<8x1x32xf32>
    %225 = vector.shape_cast %224 : vector<8x1x32xf32> to vector<8x32xf32>
    %226 = arith.addf %225, %212 : vector<8x32xf32>
    %227 = arith.negf %226 : vector<8x32xf32>
    %228 = math.exp %227 : vector<8x32xf32>
    %cst_68 = arith.constant 1.000000e+00 : f32
    %229 = vector.broadcast %cst_68 : f32 to vector<8x32xf32>
    %230 = arith.addf %229, %228 : vector<8x32xf32>
    %231 = arith.divf %229, %230 : vector<8x32xf32>
    %232 = vector.extract_strided_slice %28 {offsets = [0, 6, 0], sizes = [8, 1, 32], strides = [1, 1, 1]} : vector<8x8x32xf32> to vector<8x1x32xf32>
    %233 = vector.shape_cast %232 : vector<8x1x32xf32> to vector<8x32xf32>
    %234 = arith.mulf %223, %215 : vector<8x32xf32>
    %235 = arith.addf %233, %234 : vector<8x32xf32>
    %236 = math.tanh %235 : vector<8x32xf32>
    %237 = arith.subf %210, %236 : vector<8x32xf32>
    %238 = arith.mulf %231, %237 : vector<8x32xf32>
    %239 = arith.addf %236, %238 : vector<8x32xf32>
    %cst_69 = arith.constant dense<0.000000e+00> : vector<8x32xf32>
    %240 = tpu.matmul %239, %30, %cst_69 {dimension_numbers = #tpu.dot_dimension_numbers<[1], [0], [0], [1], [0, 0, 1, 1], [], []>} : vector<8x32xf32>, vector<32x32xf32>, vector<8x32xf32> -> vector<8x32xf32>
    %cst_70 = arith.constant dense<0.000000e+00> : vector<8x32xf32>
    %241 = tpu.matmul %239, %32, %cst_70 {dimension_numbers = #tpu.dot_dimension_numbers<[1], [0], [0], [1], [0, 0, 1, 1], [], []>} : vector<8x32xf32>, vector<32x32xf32>, vector<8x32xf32> -> vector<8x32xf32>
    %cst_71 = arith.constant dense<0.000000e+00> : vector<8x32xf32>
    %242 = tpu.matmul %239, %34, %cst_71 {dimension_numbers = #tpu.dot_dimension_numbers<[1], [0], [0], [1], [0, 0, 1, 1], [], []>} : vector<8x32xf32>, vector<32x32xf32>, vector<8x32xf32> -> vector<8x32xf32>
    %243 = vector.broadcast %35 : vector<1x32xf32> to vector<8x32xf32>
    %244 = arith.addf %242, %243 : vector<8x32xf32>
    %245 = vector.extract_strided_slice %12 {offsets = [0, 7, 0], sizes = [8, 1, 32], strides = [1, 1, 1]} : vector<8x8x32xf32> to vector<8x1x32xf32>
    %246 = vector.shape_cast %245 : vector<8x1x32xf32> to vector<8x32xf32>
    %247 = arith.addf %246, %240 : vector<8x32xf32>
    %248 = arith.negf %247 : vector<8x32xf32>
    %249 = math.exp %248 : vector<8x32xf32>
    %cst_72 = arith.constant 1.000000e+00 : f32
    %250 = vector.broadcast %cst_72 : f32 to vector<8x32xf32>
    %251 = arith.addf %250, %249 : vector<8x32xf32>
    %252 = arith.divf %250, %251 : vector<8x32xf32>
    %253 = vector.extract_strided_slice %20 {offsets = [0, 7, 0], sizes = [8, 1, 32], strides = [1, 1, 1]} : vector<8x8x32xf32> to vector<8x1x32xf32>
    %254 = vector.shape_cast %253 : vector<8x1x32xf32> to vector<8x32xf32>
    %255 = arith.addf %254, %241 : vector<8x32xf32>
    %256 = arith.negf %255 : vector<8x32xf32>
    %257 = math.exp %256 : vector<8x32xf32>
    %cst_73 = arith.constant 1.000000e+00 : f32
    %258 = vector.broadcast %cst_73 : f32 to vector<8x32xf32>
    %259 = arith.addf %258, %257 : vector<8x32xf32>
    %260 = arith.divf %258, %259 : vector<8x32xf32>
    %261 = vector.extract_strided_slice %28 {offsets = [0, 7, 0], sizes = [8, 1, 32], strides = [1, 1, 1]} : vector<8x8x32xf32> to vector<8x1x32xf32>
    %262 = vector.shape_cast %261 : vector<8x1x32xf32> to vector<8x32xf32>
    %263 = arith.mulf %252, %244 : vector<8x32xf32>
    %264 = arith.addf %262, %263 : vector<8x32xf32>
    %265 = math.tanh %264 : vector<8x32xf32>
    %266 = arith.subf %239, %265 : vector<8x32xf32>
    %267 = arith.mulf %260, %266 : vector<8x32xf32>
    %268 = arith.addf %265, %267 : vector<8x32xf32>
    %c0_74 = arith.constant 0 : index
    %c0_75 = arith.constant 0 : index
    %269 = vector.load %arg6[%c0_74, %c0_75] : memref<8x32xf32, #tpu.memory_space<vmem>>, vector<8x32xf32>
    tpu.vector_store %arg6[%c0_74, %c0_75], %268 {strides = array<i32>} : memref<8x32xf32, #tpu.memory_space<vmem>>, vector<8x32xf32>,
    return
  }
  func.func @transform_0(%arg0: i32) -> (i32, i32, i32) {
    %c0_i32 = arith.constant 0 : i32
    %c0_i32_0 = arith.constant 0 : i32
    %c0_i32_1 = arith.constant 0 : i32
    return %c0_i32, %arg0, %c0_i32_0 : i32, i32, i32
  }
  func.func @transform_1(%arg0: i32) -> (i32, i32, i32) {
    %c0_i32 = arith.constant 0 : i32
    %c0_i32_0 = arith.constant 0 : i32
    %c0_i32_1 = arith.constant 0 : i32
    %c0_i32_2 = arith.constant 0 : i32
    return %c0_i32, %c0_i32_0, %c0_i32_1 : i32, i32, i32
  }
  func.func @transform_2(%arg0: i32) -> (i32, i32, i32) {
    %c0_i32 = arith.constant 0 : i32
    %c0_i32_0 = arith.constant 0 : i32
    %c0_i32_1 = arith.constant 0 : i32
    %c0_i32_2 = arith.constant 0 : i32
    return %c0_i32, %c0_i32_0, %c0_i32_1 : i32, i32, i32
  }
  func.func @transform_3(%arg0: i32) -> (i32, i32, i32) {
    %c0_i32 = arith.constant 0 : i32
    %c0_i32_0 = arith.constant 0 : i32
    %c0_i32_1 = arith.constant 0 : i32
    %c0_i32_2 = arith.constant 0 : i32
    return %c0_i32, %c0_i32_0, %c0_i32_1 : i32, i32, i32
  }
  func.func @transform_4(%arg0: i32) -> (i32, i32) {
    %c0_i32 = arith.constant 0 : i32
    %c0_i32_0 = arith.constant 0 : i32
    %c0_i32_1 = arith.constant 0 : i32
    return %c0_i32, %c0_i32_0 : i32, i32
  }
  func.func @transform_5(%arg0: i32) -> (i32, i32) {
    %c0_i32 = arith.constant 0 : i32
    %c0_i32_0 = arith.constant 0 : i32
    %c0_i32_1 = arith.constant 0 : i32
    return %c0_i32, %c0_i32_0 : i32, i32
  }
}

</mosaic_0001>

<bundles_post_ra>
// kernel: tpu_custom_call.1
= control target key start
LH: loop header
LB: loop body
LE: loop exit
PB: predicated region body
PF: predicated region fallthrough
CT: control target
= control target key end

     0   :  { %10 = vsyncpa [#allocation3], 0  ;;  %s7011_s0 = inlined_call_operand.hbm [shape: f32[8,8,32], index: 0, kind: input, shape index: {}]   ;;  %s7012_s1 = inlined_call_operand.hbm [shape: f32[3,32,32], index: 1, kind: input, shape index: {}]   ;;  %s7013_s2 = inlined_call_operand.hbm [shape: f32[3,32,32], index: 2, kind: input, shape index: {}]   ;;  %s7014_s3 = inlined_call_operand.vmem [shape: f32[3,1,32], index: 3, kind: input, shape index: {}]   ;;  %s7015_s4 = inlined_call_operand.vmem [shape: f32[1,32], index: 4, kind: input, shape index: {}]   ;;  %s7016_s5 = inlined_call_operand.hbm [shape: f32[8,32], index: 5, kind: output, shape index: {}]  }
   0x1   :  { %11 = vsyncpa [#allocation6], 0 }
   0x2   :  { %12 = vsyncpa [#allocation4], 0  ;;  %s5983_s18 = smov [#allocation5]   ;;  %s5984_s20 = smov [#allocation2]  }
   0x3   :  { %s30_s19 = sshll.u32 %s5983_s18, 4  ;;  %s18_s21 = sshll.u32 %s5984_s20, 4  ;;  %s31_s19 = int_to_ptr.vmem [resolvable:$true] %s30_s19  ;;  %s6022_s21 = int_to_ptr.vmem [resolvable:$true] %s18_s21 }
   0x4   :  { %s5889_s24 = scalar_lea.hbm %s7012_s1, 1536 }
   0x5   :  { %p5890_p0 = scmp.ne.s32.totalorder %s7012_s1, %s5889_s24  ;;  %p5893_p1 = scmp.lt.u32.totalorder %s5889_s24, %s7012_s1 }
   0x7   :  { %p5895_p2 = pnand %p5893_p1, %p5890_p0 }
   0x9   :  { %5898 = shalt.err (!%p5895_p2)
}
   0xa   :  { %s5899_s29 = scalar_lea.vmem %s31_s19, 1536  ;;  %p5904_p4 = scmp.lt.s32.totalorder %s31_s19, %s31_s19 }
   0xb   :  { %p5900_p3 = scmp.ne.s32.totalorder %s31_s19, %s5899_s29  ;;  %p5905_p5 = scmp.lt.s32.totalorder %s5899_s29, %s5899_s29 }
   0xd   :  { %p5906_p6 = por %p5905_p5, %p5904_p4 }
   0xf   :  { %p5907_p7 = pnand %p5906_p6, %p5900_p3 }
  0x11   :  { %5910 = shalt.err (!%p5907_p7)
}
  0x12   :  { %s5985_s30 = smov 128   ;;  %s5986_s6 = smov 8  }
  0x13   :  { %36 = dma.hbm_to_vmem [thread:$0]  %s7012_s1, 1536, %s31_s19, [#allocation6], %s5985_s30, %s5985_s30, %s5986_s6  }
  0x14   :  { %s5911_s11 = scalar_lea.hbm %s7011_s0, 1024 }
  0x15   :  { %p5912_p8 = scmp.ne.s32.totalorder %s7011_s0, %s5911_s11  ;;  %p5915_p9 = scmp.lt.u32.totalorder %s5911_s11, %s7011_s0 }
  0x17   :  { %p5917_p10 = pnand %p5915_p9, %p5912_p8 }
  0x19   :  { %5920 = shalt.err (!%p5917_p10)
}
  0x1a   :  { %s5921_s16 = scalar_lea.vmem %s6022_s21, 1024  ;;  %p5926_p12 = scmp.lt.s32.totalorder %s6022_s21, %s6022_s21 }
  0x1b   :  { %p5922_p11 = scmp.ne.s32.totalorder %s6022_s21, %s5921_s16  ;;  %p5927_p13 = scmp.lt.s32.totalorder %s5921_s16, %s5921_s16 }
  0x1d   :  { %p5928_p0 = por %p5927_p13, %p5926_p12 }
  0x1f   :  { %p5929_p1 = pnand %p5928_p0, %p5922_p11 }
  0x21   :  { %5932 = shalt.err (!%p5929_p1)
}
  0x22   :  { %24 = dma.hbm_to_vmem [thread:$0]  %s7011_s0, 1024, %s6022_s21, [#allocation3], %s5985_s30, %s5985_s30, %s5986_s6  }
  0x23   :  { %s5987_s18 = smov [#allocation7]   ;;  %s5933_s23 = scalar_lea.hbm %s7013_s2, 1536 }
  0x24   :  { %s42_s19 = sshll.u32 %s5987_s18, 4  ;;  %p5934_p2 = scmp.ne.s32.totalorder %s7013_s2, %s5933_s23  ;;  %s43_s19 = int_to_ptr.vmem [resolvable:$true] %s42_s19 }
  0x25   :  { %p5937_p3 = scmp.lt.u32.totalorder %s5933_s23, %s7013_s2 }
  0x27   :  { %p5939_p4 = pnand %p5937_p3, %p5934_p2 }
  0x29   :  { %5942 = shalt.err (!%p5939_p4)
}
  0x2a   :  { %s5943_s28 = scalar_lea.vmem %s43_s19, 1536  ;;  %p5948_p6 = scmp.lt.s32.totalorder %s43_s19, %s43_s19 }
  0x2b   :  { %p5944_p5 = scmp.ne.s32.totalorder %s43_s19, %s5943_s28  ;;  %p5949_p7 = scmp.lt.s32.totalorder %s5943_s28, %s5943_s28 }
  0x2d   :  { %p5950_p8 = por %p5949_p7, %p5948_p6 }
  0x2f   :  { %p5951_p9 = pnand %p5950_p8, %p5944_p5 }
  0x31   :  { %5954 = shalt.err (!%p5951_p9)
}
  0x32   :  { %48 = dma.hbm_to_vmem [thread:$0]  %s7013_s2, 1536, %s43_s19, [#allocation6], %s5985_s30, %s5985_s30, %s5986_s6  }
  0x33   :  { %5977 = dma.done.wait [#allocation3], 1024  }
  0x34   :  { %5978 = vsyncadd [#allocation3], 4294966272 }
  0x35   :  { %5979 = dma.done.wait [#allocation6], 3072  }
  0x36   :  { %5980 = vsyncadd [#allocation6], 4294964224  ;;  %vm66_vm0 = vcmask 261120   ;;  %v7019_v0 = vmov 0.0   ;;  %v218_v1 = vld [vmem:[#allocation5 + $0x20] sm:$0xff]  ;;  %v219_v2 = vld [vmem:[#allocation5 + $0x28] sm:$0xff] }
  0x37   :  { %67 = vst.msk [vmem:[#allocation8] sm:$0xff] %vm66_vm0, %v7019_v0  ;;  %v76_v3 = vld [vmem:[#allocation5] sm:$0xff]  ;;  %v5078_v4 = vpack.c.bf16 %v219_v2, %v218_v1  ;;  %v77_v5 = vld [vmem:[#allocation5 + $0x8] sm:$0xff]  ;;  %v220_v6 = vld [vmem:[#allocation5 + $0x30] sm:$0xff]  ;;  %v7017_v23 = vmov 0.0|0.0   ;;  %vm5990_vm1 = vmmov 0  }
  0x38   :  { %v221_v7 = vld [vmem:[#allocation5 + $0x38] sm:$0xff]  ;;  %v5070_v8 = vpack.c.bf16 %v77_v5, %v76_v3  ;;  %v78_v10 = vld [vmem:[#allocation5 + $0x10] sm:$0xff]  ;;  %v6076_v12 = vld [vmem:[#allocation2] sm:$0xff]  ;;  %vm881_vm2 = vcmask 1041409   ;;  %vm884_vm3 = vcmask 1042434   ;;  %vm887_vm4 = vcmask 1043459  }
  0x39   :  { %v5082_v9 = vpack.c.bf16 %v221_v7, %v220_v6  ;;  %v79_v11 = vld [vmem:[#allocation5 + $0x18] sm:$0xff]  ;;  %5079 = vmatprep.subr.bf16.mxu1 %v5078_v4  ;;  %4774 = vmatprep.mubr.msk.f32.mxu1 %vm66_vm0, %v6076_v12  ;;  %v453_v14 = vld [vmem:[#allocation7] sm:$0xff]  ;;  %v454_v15 = vld [vmem:[#allocation7 + $0x8] sm:$0xff]  ;;  %vm890_vm5 = vcmask 1044484   ;;  %vm893_vm6 = vcmask 1045509   ;;  %vm896_vm7 = vcmask 1046534  }
  0x3a   :  { %v5074_v13 = vpack.c.bf16 %v79_v11, %v78_v10  ;;  %5081 = vmatpush3.bf16.msra.mxu1 %v5078_v4  ;;  %5071 = vmatprep.subr.bf16.mxu0 %v5070_v8  ;;  %v336_v16 = vld [vmem:[#allocation5 + $0x40] sm:$0xff]  ;;  %v337_v17 = vld [vmem:[#allocation5 + $0x48] sm:$0xff]  ;;  %v6082_v20 = vpack.c.bf16 %v454_v15, %v453_v14  ;;  %v338_v21 = vld [vmem:[#allocation5 + $0x50] sm:$0xff]  ;;  %vm899_vm8 = vcmask 1047559   ;;  %vm4388_vm9 = vcmask 261127  }
  0x3b   :  { %5073 = vmatpush3.bf16.msra.mxu0 %v5070_v8  ;;  %5083 = vmatprep.subr.bf16.mxu1 %v5082_v9  ;;  %v5086_v18 = vpack.c.bf16 %v337_v17, %v336_v16  ;;  %v69_v19 = vld [vmem:[#allocation2 + $0x8] sm:$0xff]  ;;  %v339_v22 = vld [vmem:[#allocation5 + $0x58] sm:$0xff]  ;;  %v70_v24 = vld [vmem:[#allocation2 + $0x10] sm:$0xff]  ;;  %vm4390_vm10 = vcmask 260096  }
  0x3c   :  { %5075 = vmatprep.subr.bf16.mxu0 %v5074_v13  ;;  %4754 = vmatprep.mubr.msk.f32.mxu0 %vm66_vm0, %v6076_v12  ;;  %v455_v25 = vld [vmem:[#allocation7 + $0x10] sm:$0xff]  ;;  %v456_v26 = vld [vmem:[#allocation7 + $0x18] sm:$0xff]  ;;  %v5090_v27 = vpack.c.bf16 %v339_v22, %v338_v21  ;;  %v72_v29 = vld [vmem:[#allocation2 + $0x20] sm:$0xff] }
  0x3d   :  { %v71_v28 = vld [vmem:[#allocation2 + $0x18] sm:$0xff]  ;;  %v6090_v30 = vpack.c.bf16 %v456_v26, %v455_v25  ;;  %v73_v31 = vld [vmem:[#allocation2 + $0x28] sm:$0xff]  ;;  %v74_v32 = vld [vmem:[#allocation2 + $0x30] sm:$0xff] }
  0x3e   :  { %5085 = vmatpush3.bf16.msra.mxu1 %v5082_v9  ;;  %v75_v33 = vld [vmem:[#allocation2 + $0x38] sm:$0xff]  ;;  %v458_v34 = vld [vmem:[#allocation7 + $0x20] sm:$0xff]  ;;  %v459_v35 = vld [vmem:[#allocation7 + $0x28] sm:$0xff] }
  0x3f   :  { %5077 = vmatpush3.bf16.msra.mxu0 %v5074_v13  ;;  %5094 = vmatprep.subr.bf16.mxu1 %v7017_v23  ;;  %v463_v36 = vld [vmem:[#allocation7 + $0x40] sm:$0xff]  ;;  %v464_v37 = vld [vmem:[#allocation7 + $0x48] sm:$0xff]  ;;  %v6110_v39 = vpack.c.bf16 %v459_v35, %v458_v34  ;;  %v460_v40 = vld [vmem:[#allocation7 + $0x30] sm:$0xff] }
  0x40   :  { %5087 = vmatprep.subr.bf16.mxu0 %v5086_v18  ;;  %v6108_v38 = vld [vmem:[#allocation8] sm:$0xff]  ;;  %v461_v41 = vld [vmem:[#allocation7 + $0x38] sm:$0xff]  ;;  %v6114_v42 = vpack.c.bf16 %v464_v37, %v463_v36  ;;  %v465_v43 = vld [vmem:[#allocation7 + $0x50] sm:$0xff] }
  0x41   :  { %4775 = vmatmul.mubr.msk.f32.vlgmr.msra.gmra.mrb[0].mxu1 %vm66_vm0, %v69_v19  ;;  %v466_v44 = vld [vmem:[#allocation7 + $0x58] sm:$0xff]  ;;  %v6119_v45 = vpack.c.bf16 %v461_v41, %v460_v40  ;;  %v4408_v59 = vld [vmem:[%s7014_s3] ss:$0 sm:$0xff] }
  0x42   :  { %5096 = vmatpush3.bf16.msra.mxu1 %v6082_v20  ;;  %4755 = vmatmul.mubr.msk.f32.vlgmr.msra.gmra.mrb[0].mxu0 %vm66_vm0, %v69_v19  ;;  %v6127_v46 = vpack.c.bf16 %v466_v44, %v465_v43 }
  0x43   :  { %4777 = vmatprep.mubr.msk.f32.mxu1 %vm66_vm0, %v70_v24  ;;  %4757 = vmatprep.mubr.msk.f32.mxu0 %vm66_vm0, %v70_v24 }
  0x44   :  { %5097 = vmatprep.subr.bf16.mxu1 %v7017_v23  ;;  %5089 = vmatpush3.bf16.msra.mxu0 %v5086_v18 }
  0x45   :  { %4778 = vmatmul.mubr.msk.f32.gmra.mrb[2].mxu1 %vm66_vm0, %v71_v28  ;;  %5091 = vmatprep.subr.bf16.mxu0 %v5090_v27 }
  0x46   :  { %4758 = vmatmul.mubr.msk.f32.gmra.mrb[2].mxu0 %vm66_vm0, %v71_v28  ;;  %4780 = vmatprep.mubr.msk.f32.mxu1 %vm66_vm0, %v72_v29 }
  0x47   :  { %5099 = vmatpush3.bf16.msra.mxu1 %v6090_v30  ;;  %4760 = vmatprep.mubr.msk.f32.mxu0 %vm66_vm0, %v72_v29 }
  0x48   :  { %5100 = vmatprep.subr.bf16.mxu1 %v7017_v23  ;;  %5093 = vmatpush3.bf16.msra.mxu0 %v5090_v27 }
  0x49   :  { %4781 = vmatmul.mubr.msk.f32.gmra.mrb[4].mxu1 %vm66_vm0, %v73_v31  ;;  %5106 = vmatprep.subr.bf16.mxu0 %v7017_v23 }
  0x4a   :  { %4761 = vmatmul.mubr.msk.f32.gmra.mrb[4].mxu0 %vm66_vm0, %v73_v31  ;;  %4783 = vmatprep.mubr.msk.f32.mxu1 %vm66_vm0, %v74_v32 }
  0x4b   :  { %4763 = vmatprep.mubr.msk.f32.mxu0 %vm66_vm0, %v74_v32 }
  0x4d   :  { %4784 = vmatmul.mubr.msk.f32.gmra.mrb[6].mxu1 %vm66_vm0, %v75_v33 }
  0x4e   :  { %4764 = vmatmul.mubr.msk.f32.gmra.mrb[6].mxu0 %vm66_vm0, %v75_v33  ;;  %4814 = vmatprep.mubr.msk.f32.mxu1 %vm5990_vm1, %v7019_v0 }
  0x4f   :  { %4794 = vmatprep.mubr.msk.f32.mxu0 %vm66_vm0, %v6076_v12 }
  0x51   :  { %4815 = vmatmul.mubr.msk.f32.vlgmr.msra.gmra.mrb[8].mxu1 %vm66_vm0, %v6108_v38 }
  0x52   :  { %5102 = vmatpush3.bf16.msra.mxu1 %v6110_v39  ;;  %4825 = vmatprep.mubr.msk.f32.mxu1 %vm5990_vm1, %v7019_v0 }
  0x53   :  { %5103 = vmatprep.subr.bf16.mxu1 %v7017_v23  ;;  %4795 = vmatmul.mubr.msk.f32.vlgmr.msra.gmra.mrb[8].mxu0 %vm66_vm0, %v69_v19 }
  0x54   :  { %5108 = vmatpush3.bf16.msra.mxu0 %v6114_v42  ;;  %4797 = vmatprep.mubr.msk.f32.mxu0 %vm66_vm0, %v70_v24 }
  0x55   :  { %5109 = vmatprep.subr.bf16.mxu0 %v7017_v23 }
  0x56   :  { %5105 = vmatpush3.bf16.msra.mxu1 %v6119_v45 }
  0x57   :  { %4798 = vmatmul.mubr.msk.f32.gmra.mrb[10].mxu0 %vm66_vm0, %v71_v28  ;;  %5112 = vmatprep.subr.bf16.mxu1 %v7017_v23 }
  0x58   :  { %4800 = vmatprep.mubr.msk.f32.mxu0 %vm66_vm0, %v72_v29  ;;  %5111 = vmatpush3.bf16.msra.mxu0 %v6127_v46 }
  0x59   :  { %4826 = vmatmul.mubr.msk.f32.vlgmr.msra.gmra.mrb[10].mxu1 %vm66_vm0, %v6108_v38  ;;  %5118 = vmatprep.subr.bf16.mxu0 %v7017_v23 }
  0x5a   :  { %5114 = vmatpush3.bf16.msra.mxu1 %v6082_v20  ;;  %4847 = vmatprep.mubr.msk.f32.mxu1 %vm5990_vm1, %v7019_v0 }
  0x5b   :  { %4801 = vmatmul.mubr.msk.f32.gmra.mrb[12].mxu0 %vm66_vm0, %v73_v31  ;;  %5115 = vmatprep.subr.bf16.mxu1 %v7017_v23 }
  0x5c   :  { %4803 = vmatprep.mubr.msk.f32.mxu0 %vm66_vm0, %v74_v32 }
  0x5e   :  { %5117 = vmatpush3.bf16.msra.mxu1 %v6090_v30 }
  0x5f   :  { %4804 = vmatmul.mubr.msk.f32.gmra.mrb[14].mxu0 %vm66_vm0, %v75_v33  ;;  %5124 = vmatprep.subr.bf16.mxu1 %v7017_v23 }
  0x60   :  { %4836 = vmatprep.mubr.msk.f32.mxu0 %vm5990_vm1, %v7019_v0 }
  0x63   :  { %4837 = vmatmul.mubr.msk.f32.vlgmr.msra.gmra.mrb[16].mxu0 %vm66_vm0, %v6108_v38 }
  0x64   :  { %5120 = vmatpush3.bf16.msra.mxu0 %v6110_v39  ;;  %4858 = vmatprep.mubr.msk.f32.mxu0 %vm5990_vm1, %v7019_v0 }
  0x65   :  { %5121 = vmatprep.subr.bf16.mxu0 %v7017_v23 }
  0x68   :  { %5123 = vmatpush3.bf16.msra.mxu0 %v6119_v45 }
  0x69   :  { %5130 = vmatprep.subr.bf16.mxu0 %v7017_v23 }
 0x114   :  { %v6157_v47 = vpop.f32.mrb[0].mxu1 }
 0x115   :  { %v6159_v48 = vpop.f32.mrb[1].mxu1  ;;  %v4756_v49 = vpop.f32.mrb[0].mxu0 }
 0x116   :  { %v178_v50 = vpop.f32.mrb[1].mxu0  ;;  %v6176_v1 = vadd.f32 %v4756_v49, %v4408_v59 }
 0x117   :  { %v6178_v2 = vadd.f32 %v4408_v59, %v178_v50 }
 0x118   :  { %v6161_v51 = vpop.f32.mrb[2].mxu1 }
 0x119   :  { %v6163_v52 = vpop.f32.mrb[3].mxu1  ;;  %v4759_v53 = vpop.f32.mrb[2].mxu0 }
 0x11a   :  { %v188_v54 = vpop.f32.mrb[3].mxu0  ;;  %v6180_v3 = vadd.f32 %v4759_v53, %v4408_v59 }
 0x11b   :  { %v6184_v5 = vadd.f32 %v4408_v59, %v188_v54  ;;  %v4418_v54 = vld [vmem:[%s7014_s3 + $0x1] ss:$0 sm:$0xff] }
 0x11c   :  { %v6165_v55 = vpop.f32.mrb[4].mxu1 }
 0x11d   :  { %v6167_v56 = vpop.f32.mrb[5].mxu1  ;;  %v4762_v57 = vpop.f32.mrb[4].mxu0 }
 0x11e   :  { %v198_v58 = vpop.f32.mrb[5].mxu0  ;;  %v6186_v6 = vadd.f32 %v4762_v57, %v4408_v59  ;;  %v6218_v57 = vadd.f32 %v6157_v47, %v4418_v54  ;;  %v6236_v47 = vadd.f32 %v4418_v54, %v6167_v56 }
 0x11f   :  { %v6182_v4 = vadd.f32 %v4408_v59, %v198_v58  ;;  %v6221_v58 = vadd.f32 %v4418_v54, %v6159_v48 }
 0x120   :  { %v6172_v60 = vpop.f32.mrb[6].mxu1 }
 0x121   :  { %v6174_v61 = vpop.f32.mrb[7].mxu1  ;;  %v4765_v62 = vpop.f32.mrb[6].mxu0  ;;  %v6239_v48 = vadd.f32 %v6172_v60, %v4418_v54 }
 0x122   :  { %v208_v63 = vpop.f32.mrb[7].mxu0  ;;  %v6188_v7 = vadd.f32 %v4765_v62, %v4408_v59  ;;  %v6224_v62 = vadd.f32 %v6161_v51, %v4418_v54 }
 0x123   :  { %v6190_v8 = vadd.f32 %v4408_v59, %v208_v63  ;;  %v6227_v63 = vadd.f32 %v4418_v54, %v6163_v52 }
 0x124   :  { %v538_v9 = vpop.f32.mrb[8].mxu1 }
 0x125   :  { %v689_v10 = vrot.slane %v538_v9, 1  ;;  %v690_v11 = vrot.slane %v538_v9, 2  ;;  %v691_v12 = vrot.slane %v538_v9, 3  ;;  %v692_v13 = vrot.slane %v538_v9, 4  ;;  %v4816_v14 = vpop.f32.mrb[9].mxu1 }
 0x126   :  { %v693_v15 = vrot.slane %v538_v9, 5  ;;  %v694_v16 = vrot.slane %v538_v9, 6  ;;  %v695_v17 = vrot.slane %v538_v9, 7  ;;  %v704_v18 = vadd.f32 %v538_v9, %v6178_v2  ;;  %v6193_v19 = vpop.f32.mrb[8].mxu0 }
 0x127   :  { %v705_v21 = vadd.f32 %v689_v10, %v6176_v1  ;;  %v706_v22 = vadd.f32 %v690_v11, %v6184_v5  ;;  %v707_v24 = vadd.f32 %v691_v12, %v6180_v3  ;;  %v708_v25 = vadd.f32 %v692_v13, %v6182_v4  ;;  %v6199_v26 = vpop.f32.mrb[9].mxu0 }
 0x128   :  { %v709_v27 = vadd.f32 %v693_v15, %v6186_v6  ;;  %v710_v28 = vadd.f32 %v694_v16, %v6190_v8  ;;  %v4441_v29 = vmul.f32 -1.442695, %v704_v18  ;;  %v711_v31 = vadd.f32 %v695_v17, %v6188_v7 }
 0x129   :  { %v4442_v32 = vmul.f32 -1.442695, %v705_v21  ;;  %v4443_v33 = vmul.f32 -1.442695, %v706_v22  ;;  %v4444_v34 = vmul.f32 -1.442695, %v707_v24  ;;  %v6230_v9 = vadd.f32 %v6165_v55, %v4418_v54 }
 0x12a   :  { %5247 = vpow2.f32 %v4441_v29  ;;  %v4445_v35 = vmul.f32 -1.442695, %v708_v25  ;;  %v4446_v36 = vmul.f32 -1.442695, %v709_v27  ;;  %v6204_v37 = vpop.f32.mrb[10].mxu0  ;;  %v6245_v55 = vadd.f32 %v4418_v54, %v6174_v61 }
 0x12b   :  { %5249 = vpow2.f32 %v4442_v32  ;;  %v4447_v40 = vmul.f32 -1.442695, %v710_v28  ;;  %v6208_v43 = vpop.f32.mrb[11].mxu0  ;;  %v4448_v44 = vmul.f32 -1.442695, %v711_v31 }
 0x12c   :  { %5251 = vpow2.f32 %v4443_v33  ;;  %v6206_v41 = vpop.f32.mrb[10].mxu1  ;;  %v6257_v29 = vld [vmem:[%s7015_s4] ss:$0 sm:$0xff] }
 0x12d   :  { %5253 = vpow2.f32 %v4444_v34  ;;  %v4827_v49 = vpop.f32.mrb[11].mxu1  ;;  %v761_v10 = vrot.slane %v6206_v41, 1  ;;  %v762_v51 = vrot.slane %v6206_v41, 2  ;;  %v763_v16 = vrot.slane %v6206_v41, 3 }
 0x12e   :  { %5255 = vpow2.f32 %v4445_v35  ;;  %v6210_v50 = vpop.f32.mrb[12].mxu0  ;;  %v764_v17 = vrot.slane %v6206_v41, 4  ;;  %v765_v60 = vrot.slane %v6206_v41, 5  ;;  %v776_v22 = vadd.f32 %v6206_v41, %v6221_v58 }
 0x12f   :  { %5257 = vpow2.f32 %v4446_v36  ;;  %v6212_v53 = vpop.f32.mrb[13].mxu0  ;;  %v766_v61 = vrot.slane %v6206_v41, 6  ;;  %v777_v28 = vadd.f32 %v761_v10, %v6218_v57  ;;  %v767_v33 = vrot.slane %v6206_v41, 7 }
 0x130   :  { %5259 = vpow2.f32 %v4447_v40  ;;  %v778_v34 = vadd.f32 %v762_v51, %v6227_v63  ;;  %v779_v40 = vadd.f32 %v763_v16, %v6224_v62  ;;  %v6268_v51 = vld [vmem:[%s7014_s3 + $0x2] ss:$0 sm:$0xff] }
 0x131   :  { %5261 = vpow2.f32 %v4448_v44  ;;  %v780_v44 = vadd.f32 %v764_v17, %v6236_v47  ;;  %v4450_v41 = vmul.f32 -1.442695, %v777_v28  ;;  %v783_v16 = vadd.f32 %v767_v33, %v6239_v48 }
 0x132   :  { %v6233_v11 = vpop.f32.mrb[14].mxu0  ;;  %v4452_v17 = vmul.f32 -1.442695, %v779_v40 }
 0x133   :  { %v6242_v14 = vpop.f32.mrb[15].mxu0 }
 0x134   :  { %v5248_v59 = vpop.eup %5247 }
 0x135   :  { %v5250_v12 = vpop.eup %5249  ;;  %v736_v13 = vadd.f32 1.0, %v5248_v59  ;;  %v4449_v59 = vmul.f32 -1.442695, %v776_v22  ;;  %v6278_v22 = vadd.f32 %v6268_v51, %v6199_v26  ;;  %v6286_v26 = vadd.f32 %v6268_v51, %v6208_v43 }
 0x136   :  { %v5252_v52 = vpop.eup %5251  ;;  %v737_v15 = vadd.f32 1.0, %v5250_v12  ;;  %v684_v18 = vpop.f32.mrb[16].mxu0  ;;  %v6292_v43 = vadd.f32 %v6268_v51, %v6212_v53 }
 0x137   :  { %v5254_v56 = vpop.eup %5253  ;;  %v738_v21 = vadd.f32 1.0, %v5252_v52  ;;  %5263 = vrcp.f32 %v736_v13  ;;  %v4838_v24 = vpop.f32.mrb[17].mxu0  ;;  %v685_v10 = vadd.f32 %v6257_v29, %v684_v18  ;;  %v781_v13 = vadd.f32 %v765_v60, %v6230_v9  ;;  %7036 = vst [vmem:[#allocation12_spill] sm:$0xff] %v6278_v22  ;;  %7038 = vst [vmem:[#allocation14_spill] sm:$0xff] %v6286_v26 }
 0x138   :  { %v5256_v25 = vpop.eup %5255  ;;  %v739_v27 = vadd.f32 1.0, %v5254_v56  ;;  %5265 = vrcp.f32 %v737_v15  ;;  %v782_v52 = vadd.f32 %v766_v61, %v6245_v55  ;;  %v4451_v15 = vmul.f32 -1.442695, %v778_v34  ;;  %7039 = vst [vmem:[#allocation15_spill] sm:$0xff] %v6292_v43 }
 0x139   :  { %v5258_v31 = vpop.eup %5257  ;;  %v740_v32 = vadd.f32 1.0, %v5256_v25  ;;  %5267 = vrcp.f32 %v738_v21  ;;  %v4453_v18 = vmul.f32 -1.442695, %v780_v44  ;;  %v6274_v56 = vadd.f32 %v6193_v19, %v6268_v51 }
 0x13a   :  { %v5260_v35 = vpop.eup %5259  ;;  %v741_v36 = vadd.f32 1.0, %v5258_v31  ;;  %5269 = vrcp.f32 %v739_v27  ;;  %v833_v21 = vrot.slane %v685_v10, 1  ;;  %v4454_v60 = vmul.f32 -1.442695, %v781_v13 }
 0x13b   :  { %v5262_v49 = vpop.eup %5261  ;;  %v742_v54 = vadd.f32 1.0, %v5260_v35  ;;  %5271 = vrcp.f32 %v740_v32  ;;  %v834_v24 = vrot.slane %v685_v10, 2  ;;  %v4455_v27 = vmul.f32 -1.442695, %v782_v52 }
 0x13c   :  { %v743_v12 = vadd.f32 1.0, %v5262_v49  ;;  %5273 = vrcp.f32 %v741_v36  ;;  %v6282_v61 = vadd.f32 %v6204_v37, %v6268_v51  ;;  %v835_v28 = vrot.slane %v685_v10, 3 }
 0x13d   :  { %5275 = vrcp.f32 %v742_v54  ;;  %v4456_v19 = vmul.f32 -1.442695, %v783_v16  ;;  %v836_v32 = vrot.slane %v685_v10, 4  ;;  %v837_v36 = vrot.slane %v685_v10, 5 }
 0x13e   :  { %5277 = vrcp.f32 %v743_v12  ;;  %7037 = vst [vmem:[#allocation13_spill] sm:$0xff] %v6282_v61  ;;  %v838_v49 = vrot.slane %v685_v10, 6  ;;  %v839_v13 = vrot.slane %v685_v10, 7 }
 0x13f   :  { %5279 = vpow2.f32 %v4449_v59 }
 0x140   :  { %5281 = vpow2.f32 %v4450_v41 }
 0x141   :  { %v5264_v25 = vpop.eup %5263  ;;  %5283 = vpow2.f32 %v4451_v15 }
 0x142   :  { %v5266_v31 = vpop.eup %5265  ;;  %5285 = vpow2.f32 %v4452_v17  ;;  %v848_v33 = vmul.f32 %v5264_v25, %v685_v10 }
 0x143   :  { %v5268_v34 = vpop.eup %5267  ;;  %5287 = vpow2.f32 %v4453_v18  ;;  %v849_v35 = vmul.f32 %v5266_v31, %v833_v21 }
 0x144   :  { %v5270_v40 = vpop.eup %5269  ;;  %5289 = vpow2.f32 %v4454_v60  ;;  %v850_v44 = vmul.f32 %v5268_v34, %v834_v24  ;;  %v856_v37 = vadd.f32 %v848_v33, %v6278_v22  ;;  %v6307_v33 = vadd.f32 %v6233_v11, %v6268_v51 }
 0x145   :  { %v5272_v54 = vpop.eup %5271  ;;  %5291 = vpow2.f32 %v4455_v27  ;;  %v851_v59 = vmul.f32 %v5270_v40, %v835_v28  ;;  %v857_v12 = vadd.f32 %v849_v35, %v6274_v56  ;;  %v6299_v28 = vadd.f32 %v6210_v50, %v6268_v51 }
 0x146   :  { %v5274_v41 = vpop.eup %5273  ;;  %5293 = vpow2.f32 %v4456_v19  ;;  %v852_v52 = vmul.f32 %v5272_v54, %v836_v32  ;;  %v858_v15 = vadd.f32 %v850_v44, %v6286_v26  ;;  %v6303_v19 = vadd.f32 %v6268_v51, %v6242_v14  ;;  %7042 = vst [vmem:[#allocation18_spill] sm:$0xff] %v6307_v33 }
 0x147   :  { %v5276_v16 = vpop.eup %5275  ;;  %v853_v17 = vmul.f32 %v5274_v41, %v837_v36  ;;  %v859_v18 = vadd.f32 %v851_v59, %v6282_v61  ;;  %5295 = vtanh.f32 %v856_v37  ;;  %7040 = vst [vmem:[#allocation16_spill] sm:$0xff] %v6299_v28 }
 0x148   :  { %v5278_v21 = vpop.eup %5277  ;;  %v854_v60 = vmul.f32 %v5276_v16, %v838_v49  ;;  %v860_v24 = vadd.f32 %v852_v52, %v6292_v43  ;;  %5297 = vtanh.f32 %v857_v12  ;;  %7041 = vst [vmem:[#allocation17_spill] sm:$0xff] %v6303_v19 }
 0x149   :  { %v5280_v10 = vpop.eup %5279  ;;  %v855_v25 = vmul.f32 %v5278_v21, %v839_v13  ;;  %5299 = vtanh.f32 %v858_v15  ;;  %v861_v34 = vadd.f32 %v853_v17, %v6299_v28 }
 0x14a   :  { %v5282_v27 = vpop.eup %5281  ;;  %5301 = vtanh.f32 %v859_v18  ;;  %v862_v36 = vadd.f32 %v854_v60, %v6303_v19  ;;  %v808_v37 = vadd.f32 1.0, %v5280_v10 }
 0x14b   :  { %v5284_v53 = vpop.eup %5283  ;;  %5303 = vtanh.f32 %v860_v24  ;;  %v863_v50 = vadd.f32 %v855_v25, %v6307_v33  ;;  %v809_v54 = vadd.f32 1.0, %v5282_v27 }
 0x14c   :  { %v5286_v31 = vpop.eup %5285  ;;  %5305 = vtanh.f32 %v861_v34  ;;  %v810_v59 = vadd.f32 1.0, %v5284_v53 }
 0x14d   :  { %v5288_v32 = vpop.eup %5287  ;;  %5307 = vtanh.f32 %v862_v36  ;;  %v811_v51 = vadd.f32 1.0, %v5286_v31 }
 0x14e   :  { %v5290_v35 = vpop.eup %5289  ;;  %5309 = vtanh.f32 %v863_v50  ;;  %v812_v41 = vadd.f32 1.0, %v5288_v32 }
 0x14f   :  { %v5292_v40 = vpop.eup %5291  ;;  %5311 = vrcp.f32 %v808_v37  ;;  %v813_v16 = vadd.f32 1.0, %v5290_v35 }
 0x150   :  { %v5294_v44 = vpop.eup %5293  ;;  %5313 = vrcp.f32 %v809_v54  ;;  %v814_v21 = vadd.f32 1.0, %v5292_v40 }
 0x151   :  { %v6312_v49 = vpop.eup %5295  ;;  %5315 = vrcp.f32 %v810_v59  ;;  %v815_v10 = vadd.f32 1.0, %v5294_v44 }
 0x152   :  { %v6314_v14 = vpop.eup %5297  ;;  %5317 = vrcp.f32 %v811_v51 }
 0x153   :  { %v6316_v11 = vpop.eup %5299  ;;  %v880_v12 = vrot.slane %v6314_v14, 7  ;;  %5319 = vrcp.f32 %v812_v41 }
 0x154   :  { %v5302_v13 = vpop.eup %5301  ;;  %v883_v52 = vrot.slane %v6316_v11, 6  ;;  %5321 = vrcp.f32 %v813_v16 }
 0x155   :  { %v5304_v15 = vpop.eup %5303  ;;  %v882_v17 = vsel %vm881_vm2, %v880_v12, %v6312_v49  ;;  %v886_v18 = vrot.slane %v5302_v13, 5  ;;  %5323 = vrcp.f32 %v814_v21 }
 0x156   :  { %v885_v60 = vsel %vm884_vm3, %v883_v52, %v882_v17  ;;  %v889_v24 = vrot.slane %v5304_v15, 4  ;;  %v5306_v53 = vpop.eup %5305  ;;  %5325 = vrcp.f32 %v815_v10 }
 0x157   :  { %v888_v25 = vsel %vm887_vm4, %v886_v18, %v885_v60  ;;  %v5308_v31 = vpop.eup %5307  ;;  %v892_v32 = vrot.slane %v5306_v53, 3 }
 0x158   :  { %v891_v27 = vsel %vm890_vm5, %v889_v24, %v888_v25  ;;  %v5310_v34 = vpop.eup %5309  ;;  %v895_v35 = vrot.slane %v5308_v31, 2 }
 0x159   :  { %v5312_v36 = vpop.eup %5311  ;;  %v894_v40 = vsel %vm893_vm6, %v892_v32, %v891_v27  ;;  %v898_v50 = vrot.slane %v5310_v34, 1 }
 0x15a   :  { %v5314_v44 = vpop.eup %5313  ;;  %v897_v37 = vsel %vm896_vm7, %v895_v35, %v894_v40 }
 0x15b   :  { %v5316_v54 = vpop.eup %5315  ;;  %v900_v59 = vsel %vm899_vm8, %v898_v50, %v897_v37 }
 0x15c   :  { %v5318_v51 = vpop.eup %5317  ;;  %v902_v12 = vsub.f32 %v6108_v38, %v900_v59 }
 0x15d   :  { %v5320_v41 = vpop.eup %5319 }
 0x15e   :  { %v5322_v52 = vpop.eup %5321  ;;  %v904_v16 = vrot.slane %v902_v12, 1  ;;  %v905_v17 = vrot.slane %v902_v12, 2  ;;  %v906_v18 = vrot.slane %v902_v12, 3  ;;  %v907_v21 = vrot.slane %v902_v12, 4 }
 0x15f   :  { %v5324_v60 = vpop.eup %5323  ;;  %v908_v24 = vrot.slane %v902_v12, 5  ;;  %v909_v10 = vrot.slane %v902_v12, 6  ;;  %v910_v25 = vrot.slane %v902_v12, 7  ;;  %v919_v27 = vmul.f32 %v5312_v36, %v902_v12 }
 0x160   :  { %v5326_v32 = vpop.eup %5325  ;;  %v920_v23 = vmul.f32 %v5314_v44, %v904_v16  ;;  %v921_v35 = vmul.f32 %v5316_v54, %v905_v17  ;;  %v922_v40 = vmul.f32 %v5318_v51, %v906_v18  ;;  %v923_v0 = vmul.f32 %v5320_v41, %v907_v21 }
 0x161   :  { %v924_v50 = vmul.f32 %v5322_v52, %v908_v24  ;;  %v925_v37 = vmul.f32 %v5324_v60, %v909_v10  ;;  %v926_v33 = vmul.f32 %v5326_v32, %v910_v25  ;;  %v6330_v38 = vadd.f32 %v6312_v49, %v919_v27 }
 0x162   :  { %v6333_v59 = vadd.f32 %v6314_v14, %v920_v23  ;;  %v6336_v19 = vadd.f32 %v6316_v11, %v921_v35  ;;  %v6338_v28 = vadd.f32 %v5302_v13, %v922_v40  ;;  %v6340_v36 = vadd.f32 %v5304_v15, %v923_v0 }
 0x163   :  { %v6342_v44 = vadd.f32 %v5306_v53, %v924_v50  ;;  %v6344_v54 = vadd.f32 %v5308_v31, %v925_v37  ;;  %v6346_v51 = vadd.f32 %v5310_v34, %v926_v33  ;;  %v7043_v16 = vmov 0.0  }
 0x164   :  { %v943_v12 = vrot.slane %v6333_v59, 7  ;;  %v945_v49 = vrot.slane %v6336_v19, 6  ;;  %v947_v14 = vrot.slane %v6338_v28, 5  ;;  %v949_v0 = vrot.slane %v6340_v36, 4 }
 0x165   :  { %v951_v15 = vrot.slane %v6342_v44, 3  ;;  %v953_v53 = vrot.slane %v6344_v54, 2  ;;  %v955_v34 = vrot.slane %v6346_v51, 1  ;;  %v7044_v17 = vmov 0.0|0.0  }
 0x166   :  { %v944_v23 = vsel %vm881_vm2, %v943_v12, %v6330_v38 }
 0x167   :  { %v946_v11 = vsel %vm884_vm3, %v945_v49, %v944_v23 }
 0x168   :  { %v948_v13 = vsel %vm887_vm4, %v947_v14, %v946_v11 }
 0x169   :  { %v950_v33 = vsel %vm890_vm5, %v949_v0, %v948_v13 }
 0x16a   :  { %v952_v31 = vsel %vm893_vm6, %v951_v15, %v950_v33 }
 0x16b   :  { %v954_v41 = vsel %vm896_vm7, %v953_v53, %v952_v31 }
 0x16c   :  { %v956_v52 = vsel %vm899_vm8, %v955_v34, %v954_v41 }
 0x16d   :  { %4848 = vmatmul.mubr.msk.f32.vlgmr.msra.gmra.mrb[12].mxu1 %vm66_vm0, %v956_v52  ;;  %4859 = vmatmul.mubr.msk.f32.vlgmr.msra.gmra.mrb[18].mxu0 %vm66_vm0, %v956_v52 }
 0x16e   :  { %5126 = vmatpush3.bf16.msra.mxu1 %v6114_v42  ;;  %4869 = vmatprep.mubr.msk.f32.mxu1 %vm5990_vm1, %v7043_v16 }
 0x16f   :  { %5127 = vmatprep.subr.bf16.mxu1 %v7044_v17  ;;  %5132 = vmatpush3.bf16.msra.mxu0 %v6082_v20 }
 0x170   :  { %5133 = vmatprep.subr.bf16.mxu0 %v7044_v17  ;;  %4880 = vmatprep.mubr.msk.f32.mxu0 %vm5990_vm1, %v7043_v16 }
 0x172   :  { %5129 = vmatpush3.bf16.msra.mxu1 %v6127_v46 }
 0x173   :  { %5136 = vmatprep.subr.bf16.mxu1 %v7044_v17  ;;  %5135 = vmatpush3.bf16.msra.mxu0 %v6090_v30 }
 0x174   :  { %5142 = vmatprep.subr.bf16.mxu0 %v7044_v17 }
 0x175   :  { %4870 = vmatmul.mubr.msk.f32.vlgmr.msra.gmra.mrb[14].mxu1 %vm66_vm0, %v956_v52 }
 0x176   :  { %5138 = vmatpush3.bf16.msra.mxu1 %v6110_v39  ;;  %4891 = vmatprep.mubr.msk.f32.mxu1 %vm5990_vm1, %v7043_v16 }
 0x177   :  { %5139 = vmatprep.subr.bf16.mxu1 %v7044_v17 }
 0x17a   :  { %5141 = vmatpush3.bf16.msra.mxu1 %v6119_v45 }
 0x17b   :  { %5148 = vmatprep.subr.bf16.mxu1 %v7044_v17 }
 0x240   :  { %v1025_v18 = vpop.f32.mrb[12].mxu1  ;;  %v6384_v21 = vpop.f32.mrb[18].mxu0 }
 0x241   :  { %v1170_v60 = vrot.slane %v1025_v18, 7  ;;  %v1171_v24 = vrot.slane %v1025_v18, 1  ;;  %v1172_v10 = vrot.slane %v1025_v18, 2  ;;  %v1173_v25 = vrot.slane %v1025_v18, 3  ;;  %v4849_v27 = vpop.f32.mrb[13].mxu1  ;;  %v4860_v32 = vpop.f32.mrb[19].mxu0 }
 0x242   :  { %v1174_v35 = vrot.slane %v1025_v18, 4  ;;  %v1175_v40 = vrot.slane %v1025_v18, 5  ;;  %v1176_v50 = vrot.slane %v1025_v18, 6  ;;  %v1186_v37 = vadd.f32 %v1025_v18, %v6176_v1 }
 0x243   :  { %v1185_v12 = vadd.f32 %v1170_v60, %v6178_v2  ;;  %v1187_v49 = vadd.f32 %v1171_v24, %v6184_v5  ;;  %v1188_v23 = vadd.f32 %v1172_v10, %v6180_v3  ;;  %v1189_v14 = vadd.f32 %v1173_v25, %v6182_v4 }
 0x244   :  { %v1190_v11 = vadd.f32 %v1174_v35, %v6186_v6  ;;  %v1191_v0 = vadd.f32 %v1175_v40, %v6190_v8  ;;  %v4461_v13 = vmul.f32 -1.442695, %v1186_v37  ;;  %v1192_v15 = vadd.f32 %v1176_v50, %v6188_v7 }
 0x245   :  { %v4460_v33 = vmul.f32 -1.442695, %v1185_v12  ;;  %v4462_v53 = vmul.f32 -1.442695, %v1187_v49  ;;  %v4463_v31 = vmul.f32 -1.442695, %v1188_v23  ;;  %v1258_v41 = vadd.f32 %v6384_v21, %v6218_v57 }
 0x246   :  { %5327 = vpow2.f32 %v4461_v13  ;;  %v4464_v34 = vmul.f32 -1.442695, %v1189_v14  ;;  %v4465_v52 = vmul.f32 -1.442695, %v1190_v11  ;;  %v1242_v18 = vrot.slane %v6384_v21, 7 }
 0x247   :  { %5329 = vpow2.f32 %v4460_v33  ;;  %v1243_v60 = vrot.slane %v6384_v21, 1  ;;  %v4466_v24 = vmul.f32 -1.442695, %v1191_v0  ;;  %v1244_v10 = vrot.slane %v6384_v21, 2 }
 0x248   :  { %5331 = vpow2.f32 %v4462_v53  ;;  %v1245_v25 = vrot.slane %v6384_v21, 3  ;;  %v1165_v27 = vpop.f32.mrb[14].mxu1  ;;  %v4467_v32 = vmul.f32 -1.442695, %v1192_v15  ;;  %v1257_v35 = vadd.f32 %v1242_v18, %v6221_v58 }
 0x249   :  { %5333 = vpow2.f32 %v4463_v31  ;;  %v4871_v40 = vpop.f32.mrb[15].mxu1  ;;  %v1259_v50 = vadd.f32 %v1243_v60, %v6227_v63  ;;  %v1260_v37 = vadd.f32 %v1244_v10, %v6224_v62  ;;  %v4469_v23 = vmul.f32 -1.442695, %v1258_v41 }
 0x24a   :  { %5335 = vpow2.f32 %v4464_v34  ;;  %v1261_v12 = vadd.f32 %v1245_v25, %v6236_v47  ;;  %v4468_v49 = vmul.f32 -1.442695, %v1257_v35  ;;  %v1246_v34 = vrot.slane %v6384_v21, 4 }
 0x24b   :  { %5337 = vpow2.f32 %v4465_v52  ;;  %v4470_v14 = vmul.f32 -1.442695, %v1259_v50  ;;  %v4471_v11 = vmul.f32 -1.442695, %v1260_v37  ;;  %v1247_v41 = vrot.slane %v6384_v21, 5 }
 0x24c   :  { %5339 = vpow2.f32 %v4466_v24  ;;  %v4472_v0 = vmul.f32 -1.442695, %v1261_v12  ;;  %v1248_v10 = vrot.slane %v6384_v21, 6  ;;  %v1262_v50 = vadd.f32 %v1246_v34, %v6230_v9 }
 0x24d   :  { %5341 = vpow2.f32 %v4467_v32  ;;  %v1166_v21 = vadd.f32 %v6257_v29, %v1165_v27 }
 0x24e   :  { %5343 = vpow2.f32 %v4468_v49  ;;  %v1263_v49 = vadd.f32 %v1247_v41, %v6245_v55 }
 0x24f   :  { %5345 = vpow2.f32 %v4469_v23  ;;  %v1317_v27 = vrot.slane %v1166_v21, 3 }
 0x250   :  { %v5328_v13 = vpop.eup %5327  ;;  %5347 = vpow2.f32 %v4470_v14 }
 0x251   :  { %v5330_v15 = vpop.eup %5329  ;;  %v1218_v33 = vadd.f32 1.0, %v5328_v13  ;;  %5349 = vpow2.f32 %v4471_v11  ;;  %v1264_v11 = vadd.f32 %v1248_v10, %v6239_v48 }
 0x252   :  { %v5332_v53 = vpop.eup %5331  ;;  %v1217_v31 = vadd.f32 1.0, %v5330_v15  ;;  %5351 = vpow2.f32 %v4472_v0  ;;  %v4473_v15 = vmul.f32 -1.442695, %v1262_v50 }
 0x253   :  { %v5334_v52 = vpop.eup %5333  ;;  %v1219_v18 = vadd.f32 1.0, %v5332_v53  ;;  %5353 = vrcp.f32 %v1218_v33  ;;  %v4474_v53 = vmul.f32 -1.442695, %v1263_v49  ;;  %v4475_v34 = vmul.f32 -1.442695, %v1264_v11 }
 0x254   :  { %v5336_v60 = vpop.eup %5335  ;;  %v1220_v24 = vadd.f32 1.0, %v5334_v52  ;;  %5355 = vrcp.f32 %v1217_v31 }
 0x255   :  { %v5338_v25 = vpop.eup %5337  ;;  %v1221_v32 = vadd.f32 1.0, %v5336_v60  ;;  %5357 = vrcp.f32 %v1219_v18  ;;  %v1314_v60 = vrot.slane %v1166_v21, 7 }
 0x256   :  { %v5340_v35 = vpop.eup %5339  ;;  %v1222_v40 = vadd.f32 1.0, %v5338_v25  ;;  %5359 = vrcp.f32 %v1220_v24  ;;  %v1315_v25 = vrot.slane %v1166_v21, 1 }
 0x257   :  { %v5342_v37 = vpop.eup %5341  ;;  %v1223_v12 = vadd.f32 1.0, %v5340_v35  ;;  %5361 = vrcp.f32 %v1221_v32  ;;  %v1316_v35 = vrot.slane %v1166_v21, 2 }
 0x258   :  { %v5344_v23 = vpop.eup %5343  ;;  %v1224_v14 = vadd.f32 1.0, %v5342_v37  ;;  %5363 = vrcp.f32 %v1222_v40 }
 0x259   :  { %v5346_v0 = vpop.eup %5345  ;;  %5365 = vrcp.f32 %v1223_v12  ;;  %v1289_v18 = vadd.f32 1.0, %v5344_v23 }
 0x25a   :  { %v5348_v13 = vpop.eup %5347  ;;  %5367 = vrcp.f32 %v1224_v14  ;;  %v1290_v24 = vadd.f32 1.0, %v5346_v0  ;;  %v1318_v14 = vrot.slane %v1166_v21, 4  ;;  %v1319_v0 = vrot.slane %v1166_v21, 5 }
 0x25b   :  { %v5350_v33 = vpop.eup %5349  ;;  %5369 = vpow2.f32 %v4473_v15 }
 0x25c   :  { %v5352_v31 = vpop.eup %5351  ;;  %5371 = vpow2.f32 %v4474_v53 }
 0x25d   :  { %v5354_v52 = vpop.eup %5353  ;;  %5373 = vpow2.f32 %v4475_v34 }
 0x25e   :  { %v5356_v41 = vpop.eup %5355  ;;  %v1330_v32 = vmul.f32 %v5354_v52, %v1166_v21  ;;  %5375 = vrcp.f32 %v1289_v18 }
 0x25f   :  { %v5358_v10 = vpop.eup %5357  ;;  %v1329_v40 = vmul.f32 %v5356_v41, %v1314_v60  ;;  %5377 = vrcp.f32 %v1290_v24  ;;  %v1320_v60 = vrot.slane %v1166_v21, 6  ;;  %v1293_v24 = vadd.f32 1.0, %v5352_v31  ;;  %v7046_v21 = vld [vmem:[#allocation17_spill] sm:$0xff] }
 0x260   :  { %v5360_v29 = vpop.eup %5359  ;;  %v1331_v50 = vmul.f32 %v5358_v10, %v1315_v25  ;;  %v1338_v37 = vadd.f32 %v1330_v32, %v6274_v56  ;;  %v1291_v32 = vadd.f32 1.0, %v5348_v13 }
 0x261   :  { %v5362_v12 = vpop.eup %5361  ;;  %v1332_v49 = vmul.f32 %v5360_v29, %v1316_v35  ;;  %v1337_v23 = vadd.f32 %v1329_v40, %v6278_v22  ;;  %v1292_v35 = vadd.f32 1.0, %v5350_v33  ;;  %v7045_v29 = vld [vmem:[#allocation16_spill] sm:$0xff] }
 0x262   :  { %v5364_v11 = vpop.eup %5363  ;;  %v1333_v15 = vmul.f32 %v5362_v12, %v1317_v27  ;;  %v1339_v53 = vadd.f32 %v1331_v50, %v6286_v26 }
 0x263   :  { %v5366_v52 = vpop.eup %5365  ;;  %v1334_v41 = vmul.f32 %v5364_v11, %v1318_v14  ;;  %v1340_v34 = vadd.f32 %v1332_v49, %v6282_v61  ;;  %5379 = vtanh.f32 %v1337_v23  ;;  %v7047_v23 = vld [vmem:[#allocation18_spill] sm:$0xff] }
 0x264   :  { %v5368_v25 = vpop.eup %5367  ;;  %v1335_v10 = vmul.f32 %v5366_v52, %v1319_v0  ;;  %v1341_v18 = vadd.f32 %v1333_v15, %v6292_v43  ;;  %5381 = vtanh.f32 %v1338_v37 }
 0x265   :  { %v1336_v40 = vmul.f32 %v5368_v25, %v1320_v60  ;;  %5383 = vtanh.f32 %v1339_v53  ;;  %v1342_v27 = vadd.f32 %v1334_v41, %v7045_v29  ;;  %v5370_v50 = vpop.eup %5369 }
 0x266   :  { %5385 = vtanh.f32 %v1340_v34  ;;  %v1343_v12 = vadd.f32 %v1335_v10, %v7046_v21  ;;  %v5372_v49 = vpop.eup %5371  ;;  %v1294_v31 = vadd.f32 1.0, %v5370_v50 }
 0x267   :  { %5387 = vtanh.f32 %v1341_v18  ;;  %v1344_v13 = vadd.f32 %v1336_v40, %v7047_v23  ;;  %v5374_v14 = vpop.eup %5373  ;;  %v1295_v15 = vadd.f32 1.0, %v5372_v49 }
 0x268   :  { %5389 = vrcp.f32 %v1291_v32  ;;  %v5376_v11 = vpop.eup %5375  ;;  %v1296_v60 = vadd.f32 1.0, %v5374_v14 }
 0x269   :  { %5391 = vrcp.f32 %v1292_v35  ;;  %v5378_v33 = vpop.eup %5377 }
 0x26a   :  { %5393 = vrcp.f32 %v1293_v24 }
 0x26b   :  { %5395 = vtanh.f32 %v1342_v27 }
 0x26c   :  { %5397 = vtanh.f32 %v1343_v12 }
 0x26d   :  { %v5380_v37 = vpop.eup %5379  ;;  %5399 = vtanh.f32 %v1344_v13 }
 0x26e   :  { %v5382_v0 = vpop.eup %5381  ;;  %v1361_v53 = vrot.slane %v5380_v37, 1  ;;  %5401 = vrcp.f32 %v1294_v31 }
 0x26f   :  { %v5384_v52 = vpop.eup %5383  ;;  %v1362_v41 = vrot.slane %v5382_v0, 1  ;;  %5403 = vrcp.f32 %v1295_v15 }
 0x270   :  { %v5386_v34 = vpop.eup %5385  ;;  %v1363_v25 = vrot.slane %v5384_v52, 1  ;;  %v1377_v32 = vsub.f32 %v6330_v38, %v1361_v53  ;;  %5405 = vrcp.f32 %v1296_v60 }
 0x271   :  { %v5388_v10 = vpop.eup %5387  ;;  %v1364_v18 = vrot.slane %v5386_v34, 1  ;;  %v1378_v35 = vsub.f32 %v6333_v59, %v1362_v41 }
 0x272   :  { %v5390_v40 = vpop.eup %5389  ;;  %v1365_v24 = vrot.slane %v5388_v10, 1  ;;  %v1379_v27 = vsub.f32 %v6336_v19, %v1363_v25  ;;  %v1393_v50 = vrot.slane %v1377_v32, 7 }
 0x273   :  { %v5392_v12 = vpop.eup %5391  ;;  %v1380_v49 = vsub.f32 %v6338_v28, %v1364_v18  ;;  %v1394_v13 = vrot.slane %v1378_v35, 7 }
 0x274   :  { %v5394_v14 = vpop.eup %5393  ;;  %v1381_v23 = vsub.f32 %v6340_v36, %v1365_v24  ;;  %v1395_v38 = vrot.slane %v1379_v27, 7  ;;  %v1409_v53 = vmul.f32 %v5376_v11, %v1393_v50 }
 0x275   :  { %v5396_v31 = vpop.eup %5395  ;;  %v1396_v21 = vrot.slane %v1380_v49, 7  ;;  %v1410_v29 = vmul.f32 %v5378_v33, %v1394_v13 }
 0x276   :  { %v5398_v59 = vpop.eup %5397  ;;  %v1366_v41 = vrot.slane %v5396_v31, 1  ;;  %v1397_v15 = vrot.slane %v1381_v23, 7  ;;  %v1411_v43 = vmul.f32 %v5390_v40, %v1395_v38  ;;  %v6424_v61 = vadd.f32 %v5380_v37, %v1409_v53 }
 0x277   :  { %v5400_v19 = vpop.eup %5399  ;;  %v1367_v25 = vrot.slane %v5398_v59, 1  ;;  %v1412_v60 = vmul.f32 %v5392_v12, %v1396_v21  ;;  %v6426_v32 = vadd.f32 %v5382_v0, %v1410_v29 }
 0x278   :  { %v1368_v28 = vrot.slane %v5400_v19, 1  ;;  %v1382_v18 = vsub.f32 %v6342_v44, %v1366_v41  ;;  %v1413_v36 = vmul.f32 %v5394_v14, %v1397_v15  ;;  %v6429_v35 = vadd.f32 %v5384_v52, %v1411_v43  ;;  %v5402_v21 = vpop.eup %5401 }
 0x279   :  { %v1383_v11 = vsub.f32 %v6344_v54, %v1367_v25  ;;  %v6432_v33 = vadd.f32 %v5386_v34, %v1412_v60  ;;  %v1433_v23 = vrot.slane %v6424_v61, 1  ;;  %v5404_v52 = vpop.eup %5403 }
 0x27a   :  { %v1384_v37 = vsub.f32 %v6346_v51, %v1368_v28  ;;  %v1398_v40 = vrot.slane %v1382_v18, 7  ;;  %v6436_v24 = vadd.f32 %v5388_v10, %v1413_v36  ;;  %v1435_v29 = vrot.slane %v6429_v35, 7  ;;  %v5406_v50 = vpop.eup %5405 }
 0x27b   :  { %v1399_v0 = vrot.slane %v1383_v11, 7  ;;  %v1434_v44 = vsel %vm881_vm2, %v6426_v32, %v1433_v23  ;;  %v1437_v43 = vrot.slane %v6432_v33, 6 }
 0x27c   :  { %v1400_v54 = vrot.slane %v1384_v37, 7  ;;  %v1414_v34 = vmul.f32 %v5402_v21, %v1398_v40  ;;  %v1436_v27 = vsel %vm884_vm3, %v1435_v29, %v1434_v44  ;;  %v1439_v10 = vrot.slane %v6436_v24, 5 }
 0x27d   :  { %v1415_v12 = vmul.f32 %v5404_v52, %v1399_v0  ;;  %v1438_v51 = vsel %vm887_vm4, %v1437_v43, %v1436_v27 }
 0x27e   :  { %v1416_v49 = vmul.f32 %v5406_v50, %v1400_v54  ;;  %v6445_v13 = vadd.f32 %v5396_v31, %v1414_v34  ;;  %v1440_v38 = vsel %vm890_vm5, %v1439_v10, %v1438_v51 }
 0x27f   :  { %v6447_v14 = vadd.f32 %v5398_v59, %v1415_v12 }
 0x280   :  { %v6450_v53 = vadd.f32 %v5400_v19, %v1416_v49  ;;  %v1441_v41 = vrot.slane %v6445_v13, 4 }
 0x281   :  { %v1443_v15 = vrot.slane %v6447_v14, 3 }
 0x282   :  { %v1442_v25 = vsel %vm893_vm6, %v1441_v41, %v1440_v38  ;;  %v1445_v60 = vrot.slane %v6450_v53, 2 }
 0x283   :  { %v1444_v28 = vsel %vm896_vm7, %v1443_v15, %v1442_v25 }
 0x284   :  { %v1446_v18 = vsel %vm899_vm8, %v1445_v60, %v1444_v28 }
 0x285   :  { %4881 = vmatmul.mubr.msk.f32.vlgmr.msra.gmra.mrb[20].mxu0 %vm66_vm0, %v1446_v18  ;;  %4892 = vmatmul.mubr.msk.f32.vlgmr.msra.gmra.mrb[16].mxu1 %vm66_vm0, %v1446_v18 }
 0x286   :  { %5144 = vmatpush3.bf16.msra.mxu0 %v6114_v42  ;;  %4902 = vmatprep.mubr.msk.f32.mxu0 %vm5990_vm1, %v7043_v16 }
 0x287   :  { %5145 = vmatprep.subr.bf16.mxu0 %v7044_v17  ;;  %5150 = vmatpush3.bf16.msra.mxu1 %v6082_v20 }
 0x288   :  { %5151 = vmatprep.subr.bf16.mxu1 %v7044_v17  ;;  %4913 = vmatprep.mubr.msk.f32.mxu1 %vm5990_vm1, %v7043_v16 }
 0x28a   :  { %5147 = vmatpush3.bf16.msra.mxu0 %v6127_v46 }
 0x28b   :  { %5154 = vmatprep.subr.bf16.mxu0 %v7044_v17  ;;  %5153 = vmatpush3.bf16.msra.mxu1 %v6090_v30 }
 0x28c   :  { %5160 = vmatprep.subr.bf16.mxu1 %v7044_v17 }
 0x28d   :  { %4903 = vmatmul.mubr.msk.f32.vlgmr.msra.gmra.mrb[22].mxu0 %vm66_vm0, %v1446_v18 }
 0x28e   :  { %5156 = vmatpush3.bf16.msra.mxu0 %v6110_v39  ;;  %4924 = vmatprep.mubr.msk.f32.mxu0 %vm5990_vm1, %v7043_v16 }
 0x28f   :  { %5157 = vmatprep.subr.bf16.mxu0 %v7044_v17 }
 0x292   :  { %5159 = vmatpush3.bf16.msra.mxu0 %v6119_v45 }
 0x293   :  { %5166 = vmatprep.subr.bf16.mxu0 %v7044_v17 }
 0x358   :  { %v1515_v31 = vpop.f32.mrb[20].mxu0  ;;  %v6479_v59 = vpop.f32.mrb[16].mxu1 }
 0x359   :  { %v1660_v19 = vrot.slane %v1515_v31, 6  ;;  %v1661_v36 = vrot.slane %v1515_v31, 7  ;;  %v1662_v11 = vrot.slane %v1515_v31, 1  ;;  %v1663_v23 = vrot.slane %v1515_v31, 2  ;;  %v4882_v37 = vpop.f32.mrb[21].mxu0  ;;  %v4893_v40 = vpop.f32.mrb[17].mxu1 }
 0x35a   :  { %v1664_v29 = vrot.slane %v1515_v31, 3  ;;  %v1665_v21 = vrot.slane %v1515_v31, 4  ;;  %v1666_v0 = vrot.slane %v1515_v31, 5  ;;  %v1677_v44 = vadd.f32 %v1515_v31, %v6184_v5 }
 0x35b   :  { %v1675_v43 = vadd.f32 %v1660_v19, %v6178_v2  ;;  %v1676_v52 = vadd.f32 %v1661_v36, %v6176_v1  ;;  %v1678_v54 = vadd.f32 %v1662_v11, %v6180_v3  ;;  %v1679_v34 = vadd.f32 %v1663_v23, %v6182_v4 }
 0x35c   :  { %v1680_v27 = vadd.f32 %v1664_v29, %v6186_v6  ;;  %v1681_v50 = vadd.f32 %v1665_v21, %v6190_v8  ;;  %v4481_v12 = vmul.f32 -1.442695, %v1677_v44  ;;  %v1682_v51 = vadd.f32 %v1666_v0, %v6188_v7 }
 0x35d   :  { %v4479_v10 = vmul.f32 -1.442695, %v1675_v43  ;;  %v4480_v49 = vmul.f32 -1.442695, %v1676_v52  ;;  %v4482_v38 = vmul.f32 -1.442695, %v1678_v54  ;;  %v1749_v15 = vadd.f32 %v6479_v59, %v6227_v63 }
 0x35e   :  { %5407 = vpow2.f32 %v4481_v12  ;;  %v4483_v41 = vmul.f32 -1.442695, %v1679_v34  ;;  %v4484_v25 = vmul.f32 -1.442695, %v1680_v27  ;;  %v1732_v60 = vrot.slane %v6479_v59, 6 }
 0x35f   :  { %5409 = vpow2.f32 %v4479_v10  ;;  %v1733_v28 = vrot.slane %v6479_v59, 7  ;;  %v4485_v18 = vmul.f32 -1.442695, %v1681_v50  ;;  %v1734_v31 = vrot.slane %v6479_v59, 1 }
 0x360   :  { %5411 = vpow2.f32 %v4480_v49  ;;  %v1735_v19 = vrot.slane %v6479_v59, 2  ;;  %v1655_v36 = vpop.f32.mrb[22].mxu0  ;;  %v4486_v11 = vmul.f32 -1.442695, %v1682_v51  ;;  %v1747_v23 = vadd.f32 %v1732_v60, %v6221_v58 }
 0x361   :  { %5413 = vpow2.f32 %v4482_v38  ;;  %v4904_v37 = vpop.f32.mrb[23].mxu0  ;;  %v1748_v40 = vadd.f32 %v1733_v28, %v6218_v57  ;;  %v1750_v29 = vadd.f32 %v1734_v31, %v6224_v62  ;;  %v4489_v43 = vmul.f32 -1.442695, %v1749_v15 }
 0x362   :  { %5415 = vpow2.f32 %v4483_v41  ;;  %v1751_v21 = vadd.f32 %v1735_v19, %v6236_v47  ;;  %v4487_v0 = vmul.f32 -1.442695, %v1747_v23  ;;  %v1736_v10 = vrot.slane %v6479_v59, 3 }
 0x363   :  { %5417 = vpow2.f32 %v4484_v25  ;;  %v4488_v44 = vmul.f32 -1.442695, %v1748_v40  ;;  %v4490_v52 = vmul.f32 -1.442695, %v1750_v29  ;;  %v1737_v41 = vrot.slane %v6479_v59, 4 }
 0x364   :  { %5419 = vpow2.f32 %v4485_v18  ;;  %v4491_v54 = vmul.f32 -1.442695, %v1751_v21  ;;  %v1738_v60 = vrot.slane %v6479_v59, 5  ;;  %v6508_v59 = vld [vmem:[%s7015_s4] ss:$0 sm:$0xff] }
 0x365   :  { %5421 = vpow2.f32 %v4486_v11  ;;  %v1752_v11 = vadd.f32 %v1736_v10, %v6230_v9  ;;  %v1753_v40 = vadd.f32 %v1737_v41, %v6245_v55 }
 0x366   :  { %5423 = vpow2.f32 %v4487_v0  ;;  %v1754_v0 = vadd.f32 %v1738_v60, %v6239_v48 }
 0x367   :  { %5425 = vpow2.f32 %v4488_v44 }
 0x368   :  { %v5408_v34 = vpop.eup %5407  ;;  %5427 = vpow2.f32 %v4489_v43  ;;  %v1656_v43 = vadd.f32 %v6508_v59, %v1655_v36 }
 0x369   :  { %v5410_v27 = vpop.eup %5409  ;;  %v1709_v50 = vadd.f32 1.0, %v5408_v34  ;;  %5429 = vpow2.f32 %v4490_v52 }
 0x36a   :  { %v5412_v12 = vpop.eup %5411  ;;  %v1707_v51 = vadd.f32 1.0, %v5410_v27  ;;  %5431 = vpow2.f32 %v4491_v54  ;;  %v4492_v54 = vmul.f32 -1.442695, %v1752_v11  ;;  %v4493_v27 = vmul.f32 -1.442695, %v1753_v40 }
 0x36b   :  { %v5414_v49 = vpop.eup %5413  ;;  %v1708_v38 = vadd.f32 1.0, %v5412_v12  ;;  %5433 = vrcp.f32 %v1709_v50  ;;  %v4494_v12 = vmul.f32 -1.442695, %v1754_v0  ;;  %v1808_v11 = vrot.slane %v1656_v43, 3 }
 0x36c   :  { %v5416_v15 = vpop.eup %5415  ;;  %v1710_v25 = vadd.f32 1.0, %v5414_v49  ;;  %5435 = vrcp.f32 %v1707_v51  ;;  %v1804_v49 = vrot.slane %v1656_v43, 6 }
 0x36d   :  { %v5418_v28 = vpop.eup %5417  ;;  %v1711_v18 = vadd.f32 1.0, %v5416_v15  ;;  %5437 = vrcp.f32 %v1708_v38  ;;  %v1805_v15 = vrot.slane %v1656_v43, 7 }
 0x36e   :  { %v5420_v31 = vpop.eup %5419  ;;  %v1712_v19 = vadd.f32 1.0, %v5418_v28  ;;  %5439 = vrcp.f32 %v1710_v25  ;;  %v1806_v28 = vrot.slane %v1656_v43, 1 }
 0x36f   :  { %v5422_v23 = vpop.eup %5421  ;;  %v1713_v37 = vadd.f32 1.0, %v5420_v31  ;;  %5441 = vrcp.f32 %v1711_v18  ;;  %v1807_v31 = vrot.slane %v1656_v43, 2 }
 0x370   :  { %v5424_v29 = vpop.eup %5423  ;;  %v1714_v21 = vadd.f32 1.0, %v5422_v23  ;;  %5443 = vrcp.f32 %v1712_v19 }
 0x371   :  { %v5426_v44 = vpop.eup %5425  ;;  %5445 = vrcp.f32 %v1713_v37  ;;  %v1779_v10 = vadd.f32 1.0, %v5424_v29 }
 0x372   :  { %v5428_v52 = vpop.eup %5427  ;;  %5447 = vrcp.f32 %v1714_v21  ;;  %v1780_v41 = vadd.f32 1.0, %v5426_v44  ;;  %v1809_v44 = vrot.slane %v1656_v43, 4 }
 0x373   :  { %v5430_v34 = vpop.eup %5429  ;;  %5449 = vpow2.f32 %v4492_v54 }
 0x374   :  { %v5432_v50 = vpop.eup %5431  ;;  %5451 = vpow2.f32 %v4493_v27 }
 0x375   :  { %v5434_v51 = vpop.eup %5433  ;;  %5453 = vpow2.f32 %v4494_v12  ;;  %v7048_v12 = vld [vmem:[#allocation13_spill] sm:$0xff] }
 0x376   :  { %v5436_v38 = vpop.eup %5435  ;;  %v1821_v25 = vmul.f32 %v5434_v51, %v1656_v43  ;;  %5455 = vrcp.f32 %v1779_v10  ;;  %v1810_v51 = vrot.slane %v1656_v43, 5  ;;  %v7051_v43 = vld [vmem:[#allocation17_spill] sm:$0xff] }
 0x377   :  { %v5438_v60 = vpop.eup %5437  ;;  %v1819_v18 = vmul.f32 %v5436_v38, %v1804_v49  ;;  %5457 = vrcp.f32 %v1780_v41  ;;  %v1783_v41 = vadd.f32 1.0, %v5432_v50 }
 0x378   :  { %v5440_v36 = vpop.eup %5439  ;;  %v1820_v19 = vmul.f32 %v5438_v60, %v1805_v15  ;;  %v1829_v29 = vadd.f32 %v1821_v25, %v6286_v26  ;;  %v1781_v60 = vadd.f32 1.0, %v5428_v52 }
 0x379   :  { %v5442_v23 = vpop.eup %5441  ;;  %v1822_v37 = vmul.f32 %v5440_v36, %v1806_v28  ;;  %v1827_v40 = vadd.f32 %v1819_v18, %v6278_v22  ;;  %v7049_v28 = vld [vmem:[#allocation15_spill] sm:$0xff]  ;;  %v1782_v18 = vadd.f32 1.0, %v5430_v34 }
 0x37a   :  { %v5444_v21 = vpop.eup %5443  ;;  %v1828_v0 = vadd.f32 %v1820_v19, %v6274_v56  ;;  %v1823_v54 = vmul.f32 %v5442_v23, %v1807_v31  ;;  %v7050_v19 = vld [vmem:[#allocation16_spill] sm:$0xff] }
 0x37b   :  { %v5446_v27 = vpop.eup %5445  ;;  %v1824_v49 = vmul.f32 %v5444_v21, %v1808_v11  ;;  %v1830_v38 = vadd.f32 %v1822_v37, %v7048_v12  ;;  %5459 = vtanh.f32 %v1827_v40  ;;  %v7052_v37 = vld [vmem:[#allocation18_spill] sm:$0xff] }
 0x37c   :  { %v5448_v15 = vpop.eup %5447  ;;  %v1825_v10 = vmul.f32 %v5446_v27, %v1809_v44  ;;  %v1831_v36 = vadd.f32 %v1823_v54, %v7049_v28  ;;  %5461 = vtanh.f32 %v1828_v0 }
 0x37d   :  { %v1826_v25 = vmul.f32 %v5448_v15, %v1810_v51  ;;  %5463 = vtanh.f32 %v1829_v29  ;;  %v1832_v26 = vadd.f32 %v1824_v49, %v7050_v19  ;;  %v5450_v31 = vpop.eup %5449 }
 0x37e   :  { %5465 = vtanh.f32 %v1830_v38  ;;  %v1833_v11 = vadd.f32 %v1825_v10, %v7051_v43  ;;  %v5452_v23 = vpop.eup %5451  ;;  %v1784_v50 = vadd.f32 1.0, %v5450_v31 }
 0x37f   :  { %5467 = vtanh.f32 %v1831_v36  ;;  %v1834_v52 = vadd.f32 %v1826_v25, %v7052_v37  ;;  %v5454_v40 = vpop.eup %5453  ;;  %v1785_v44 = vadd.f32 1.0, %v5452_v23 }
 0x380   :  { %5469 = vrcp.f32 %v1781_v60  ;;  %v5456_v21 = vpop.eup %5455  ;;  %v1786_v51 = vadd.f32 1.0, %v5454_v40 }
 0x381   :  { %5471 = vrcp.f32 %v1782_v18  ;;  %v5458_v34 = vpop.eup %5457 }
 0x382   :  { %5473 = vrcp.f32 %v1783_v41 }
 0x383   :  { %5475 = vtanh.f32 %v1832_v26 }
 0x384   :  { %5477 = vtanh.f32 %v1833_v11 }
 0x385   :  { %v5460_v29 = vpop.eup %5459  ;;  %5479 = vtanh.f32 %v1834_v52 }
 0x386   :  { %v5462_v0 = vpop.eup %5461  ;;  %v1851_v54 = vrot.slane %v5460_v29, 1  ;;  %5481 = vrcp.f32 %v1784_v50 }
 0x387   :  { %v5464_v27 = vpop.eup %5463  ;;  %v1852_v49 = vrot.slane %v5462_v0, 1  ;;  %5483 = vrcp.f32 %v1785_v44 }
 0x388   :  { %v5466_v38 = vpop.eup %5465  ;;  %v1853_v15 = vrot.slane %v5464_v27, 1  ;;  %v1867_v60 = vsub.f32 %v6424_v61, %v1851_v54  ;;  %5485 = vrcp.f32 %v1786_v51 }
 0x389   :  { %v5468_v10 = vpop.eup %5467  ;;  %v1854_v36 = vrot.slane %v5466_v38, 1  ;;  %v1868_v26 = vsub.f32 %v6426_v32, %v1852_v49 }
 0x38a   :  { %v5470_v18 = vpop.eup %5469  ;;  %v1855_v25 = vrot.slane %v5468_v10, 1  ;;  %v1869_v41 = vsub.f32 %v6429_v35, %v1853_v15  ;;  %v1883_v31 = vrot.slane %v1867_v60, 7 }
 0x38b   :  { %v5472_v11 = vpop.eup %5471  ;;  %v1870_v23 = vsub.f32 %v6432_v33, %v1854_v36  ;;  %v1884_v52 = vrot.slane %v1868_v26, 7 }
 0x38c   :  { %v5474_v40 = vpop.eup %5473  ;;  %v1871_v37 = vsub.f32 %v6436_v24, %v1855_v25  ;;  %v1885_v61 = vrot.slane %v1869_v41, 7  ;;  %v1899_v54 = vmul.f32 %v5456_v21, %v1883_v31 }
 0x38d   :  { %v5476_v50 = vpop.eup %5475  ;;  %v1886_v43 = vrot.slane %v1870_v23, 7  ;;  %v1900_v19 = vmul.f32 %v5458_v34, %v1884_v52 }
 0x38e   :  { %v5478_v32 = vpop.eup %5477  ;;  %v1856_v49 = vrot.slane %v5476_v50, 1  ;;  %v1887_v44 = vrot.slane %v1871_v37, 7  ;;  %v1901_v28 = vmul.f32 %v5470_v18, %v1885_v61  ;;  %v6524_v12 = vadd.f32 %v5460_v29, %v1899_v54 }
 0x38f   :  { %v5480_v35 = vpop.eup %5479  ;;  %v1857_v15 = vrot.slane %v5478_v32, 1  ;;  %v1902_v51 = vmul.f32 %v5472_v11, %v1886_v43  ;;  %v6526_v60 = vadd.f32 %v5462_v0, %v1900_v19 }
 0x390   :  { %v1858_v33 = vrot.slane %v5480_v35, 1  ;;  %v1872_v36 = vsub.f32 %v6445_v13, %v1856_v49  ;;  %v1903_v24 = vmul.f32 %v5474_v40, %v1887_v44  ;;  %v6529_v26 = vadd.f32 %v5464_v27, %v1901_v28  ;;  %v5482_v19 = vpop.eup %5481 }
 0x391   :  { %v1873_v21 = vsub.f32 %v6447_v14, %v1857_v15  ;;  %v6532_v34 = vadd.f32 %v5466_v38, %v1902_v51  ;;  %v1923_v37 = vrot.slane %v6524_v12, 2  ;;  %v1924_v29 = vrot.slane %v6526_v60, 1  ;;  %v5484_v27 = vpop.eup %5483 }
 0x392   :  { %v1874_v18 = vsub.f32 %v6450_v53, %v1858_v33  ;;  %v1888_v25 = vrot.slane %v1872_v36, 7  ;;  %v6537_v43 = vadd.f32 %v5468_v10, %v1903_v24  ;;  %v5486_v31 = vpop.eup %5485 }
 0x393   :  { %v1889_v0 = vrot.slane %v1873_v21, 7  ;;  %v1925_v13 = vsel %vm881_vm2, %v1924_v29, %v1923_v37  ;;  %v1927_v28 = vrot.slane %v6532_v34, 7 }
 0x394   :  { %v1890_v41 = vrot.slane %v1874_v18, 7  ;;  %v1904_v14 = vmul.f32 %v5482_v19, %v1888_v25  ;;  %v1926_v38 = vsel %vm884_vm3, %v6529_v26, %v1925_v13  ;;  %v1929_v53 = vrot.slane %v6537_v43, 6 }
 0x395   :  { %v1905_v11 = vmul.f32 %v5484_v27, %v1889_v0  ;;  %v1928_v23 = vsel %vm887_vm4, %v1927_v28, %v1926_v38 }
 0x396   :  { %v1906_v10 = vmul.f32 %v5486_v31, %v1890_v41  ;;  %v6545_v52 = vadd.f32 %v5476_v50, %v1904_v14  ;;  %v1930_v61 = vsel %vm890_vm5, %v1929_v53, %v1928_v23 }
 0x397   :  { %v6547_v40 = vadd.f32 %v5478_v32, %v1905_v11 }
 0x398   :  { %v6550_v54 = vadd.f32 %v5480_v35, %v1906_v10  ;;  %v1931_v49 = vrot.slane %v6545_v52, 5 }
 0x399   :  { %v1933_v44 = vrot.slane %v6547_v40, 4 }
 0x39a   :  { %v1932_v15 = vsel %vm893_vm6, %v1931_v49, %v1930_v61  ;;  %v1935_v51 = vrot.slane %v6550_v54, 3 }
 0x39b   :  { %v1934_v33 = vsel %vm896_vm7, %v1933_v44, %v1932_v15 }
 0x39c   :  { %v1936_v36 = vsel %vm899_vm8, %v1935_v51, %v1934_v33 }
 0x39d   :  { %4914 = vmatmul.mubr.msk.f32.vlgmr.msra.gmra.mrb[18].mxu1 %vm66_vm0, %v1936_v36  ;;  %4925 = vmatmul.mubr.msk.f32.vlgmr.msra.gmra.mrb[24].mxu0 %vm66_vm0, %v1936_v36 }
 0x39e   :  { %5162 = vmatpush3.bf16.msra.mxu1 %v6114_v42  ;;  %4935 = vmatprep.mubr.msk.f32.mxu1 %vm5990_vm1, %v7043_v16 }
 0x39f   :  { %5163 = vmatprep.subr.bf16.mxu1 %v7044_v17  ;;  %5168 = vmatpush3.bf16.msra.mxu0 %v6082_v20 }
 0x3a0   :  { %5169 = vmatprep.subr.bf16.mxu0 %v7044_v17  ;;  %4946 = vmatprep.mubr.msk.f32.mxu0 %vm5990_vm1, %v7043_v16 }
 0x3a2   :  { %5165 = vmatpush3.bf16.msra.mxu1 %v6127_v46 }
 0x3a3   :  { %5172 = vmatprep.subr.bf16.mxu1 %v7044_v17  ;;  %5171 = vmatpush3.bf16.msra.mxu0 %v6090_v30 }
 0x3a4   :  { %5178 = vmatprep.subr.bf16.mxu0 %v7044_v17 }
 0x3a5   :  { %4936 = vmatmul.mubr.msk.f32.vlgmr.msra.gmra.mrb[20].mxu1 %vm66_vm0, %v1936_v36 }
 0x3a6   :  { %5174 = vmatpush3.bf16.msra.mxu1 %v6110_v39  ;;  %4957 = vmatprep.mubr.msk.f32.mxu1 %vm5990_vm1, %v7043_v16 }
 0x3a7   :  { %5175 = vmatprep.subr.bf16.mxu1 %v7044_v17 }
 0x3aa   :  { %5177 = vmatpush3.bf16.msra.mxu1 %v6119_v45 }
 0x3ab   :  { %5184 = vmatprep.subr.bf16.mxu1 %v7044_v17 }
 0x470   :  { %v2005_v50 = vpop.f32.mrb[18].mxu1  ;;  %v6579_v32 = vpop.f32.mrb[24].mxu0 }
 0x471   :  { %v2150_v35 = vrot.slane %v2005_v50, 5  ;;  %v2151_v24 = vrot.slane %v2005_v50, 6  ;;  %v2152_v21 = vrot.slane %v2005_v50, 7  ;;  %v2153_v37 = vrot.slane %v2005_v50, 1  ;;  %v4915_v29 = vpop.f32.mrb[19].mxu1  ;;  %v4926_v18 = vpop.f32.mrb[25].mxu0 }
 0x472   :  { %v2154_v25 = vrot.slane %v2005_v50, 2  ;;  %v2155_v19 = vrot.slane %v2005_v50, 3  ;;  %v2156_v0 = vrot.slane %v2005_v50, 4  ;;  %v2168_v13 = vadd.f32 %v2005_v50, %v6180_v3 }
 0x473   :  { %v2165_v28 = vadd.f32 %v2150_v35, %v6178_v2  ;;  %v2166_v27 = vadd.f32 %v2151_v24, %v6176_v1  ;;  %v2167_v41 = vadd.f32 %v2152_v21, %v6184_v5  ;;  %v2169_v14 = vadd.f32 %v2153_v37, %v6182_v4 }
 0x474   :  { %v2170_v38 = vadd.f32 %v2154_v25, %v6186_v6  ;;  %v2171_v31 = vadd.f32 %v2155_v19, %v6190_v8  ;;  %v4501_v11 = vmul.f32 -1.442695, %v2168_v13  ;;  %v2172_v23 = vadd.f32 %v2156_v0, %v6188_v7 }
 0x475   :  { %v4498_v53 = vmul.f32 -1.442695, %v2165_v28  ;;  %v4499_v10 = vmul.f32 -1.442695, %v2166_v27  ;;  %v4500_v61 = vmul.f32 -1.442695, %v2167_v41  ;;  %v2240_v37 = vadd.f32 %v6579_v32, %v6224_v62 }
 0x476   :  { %5487 = vpow2.f32 %v4501_v11  ;;  %v4502_v49 = vmul.f32 -1.442695, %v2169_v14  ;;  %v4503_v44 = vmul.f32 -1.442695, %v2170_v38  ;;  %v2222_v15 = vrot.slane %v6579_v32, 5 }
 0x477   :  { %5489 = vpow2.f32 %v4498_v53  ;;  %v2223_v51 = vrot.slane %v6579_v32, 6  ;;  %v4504_v33 = vmul.f32 -1.442695, %v2171_v31  ;;  %v2224_v36 = vrot.slane %v6579_v32, 7 }
 0x478   :  { %5491 = vpow2.f32 %v4499_v10  ;;  %v2225_v50 = vrot.slane %v6579_v32, 1  ;;  %v2145_v35 = vpop.f32.mrb[20].mxu1  ;;  %v4505_v24 = vmul.f32 -1.442695, %v2172_v23  ;;  %v2237_v21 = vadd.f32 %v2222_v15, %v6221_v58 }
 0x479   :  { %5493 = vpow2.f32 %v4500_v61  ;;  %v4937_v29 = vpop.f32.mrb[21].mxu1  ;;  %v2238_v18 = vadd.f32 %v2223_v51, %v6218_v57  ;;  %v2239_v25 = vadd.f32 %v2224_v36, %v6227_v63  ;;  %v4509_v27 = vmul.f32 -1.442695, %v2240_v37 }
 0x47a   :  { %5495 = vpow2.f32 %v4502_v49  ;;  %v2241_v19 = vadd.f32 %v2225_v50, %v6236_v47  ;;  %v4506_v0 = vmul.f32 -1.442695, %v2237_v21  ;;  %v2226_v53 = vrot.slane %v6579_v32, 2 }
 0x47b   :  { %5497 = vpow2.f32 %v4503_v44  ;;  %v4507_v13 = vmul.f32 -1.442695, %v2238_v18  ;;  %v4508_v28 = vmul.f32 -1.442695, %v2239_v25  ;;  %v2227_v49 = vrot.slane %v6579_v32, 3 }
 0x47c   :  { %5499 = vpow2.f32 %v4504_v33  ;;  %v4510_v41 = vmul.f32 -1.442695, %v2241_v19  ;;  %v2228_v51 = vrot.slane %v6579_v32, 4  ;;  %v2242_v21 = vadd.f32 %v2226_v53, %v6230_v9 }
 0x47d   :  { %5501 = vpow2.f32 %v4505_v24  ;;  %v2243_v18 = vadd.f32 %v2227_v49, %v6245_v55  ;;  %v2146_v32 = vadd.f32 %v6508_v59, %v2145_v35 }
 0x47e   :  { %5503 = vpow2.f32 %v4506_v0  ;;  %v2244_v0 = vadd.f32 %v2228_v51, %v6239_v48 }
 0x47f   :  { %5505 = vpow2.f32 %v4507_v13  ;;  %v2294_v53 = vrot.slane %v2146_v32, 5  ;;  %v2295_v49 = vrot.slane %v2146_v32, 6  ;;  %v2296_v51 = vrot.slane %v2146_v32, 7 }
 0x480   :  { %v5488_v14 = vpop.eup %5487  ;;  %5507 = vpow2.f32 %v4508_v28 }
 0x481   :  { %v5490_v38 = vpop.eup %5489  ;;  %v2200_v31 = vadd.f32 1.0, %v5488_v14  ;;  %5509 = vpow2.f32 %v4509_v27  ;;  %v4511_v27 = vmul.f32 -1.442695, %v2242_v21  ;;  %v4512_v14 = vmul.f32 -1.442695, %v2243_v18 }
 0x482   :  { %v5492_v11 = vpop.eup %5491  ;;  %v2197_v23 = vadd.f32 1.0, %v5490_v38  ;;  %5511 = vpow2.f32 %v4510_v41  ;;  %v2299_v18 = vrot.slane %v2146_v32, 3 }
 0x483   :  { %v5494_v10 = vpop.eup %5493  ;;  %v2198_v61 = vadd.f32 1.0, %v5492_v11  ;;  %5513 = vrcp.f32 %v2200_v31  ;;  %v4513_v31 = vmul.f32 -1.442695, %v2244_v0 }
 0x484   :  { %v5496_v44 = vpop.eup %5495  ;;  %v2199_v15 = vadd.f32 1.0, %v5494_v10  ;;  %5515 = vrcp.f32 %v2197_v23 }
 0x485   :  { %v5498_v33 = vpop.eup %5497  ;;  %v2201_v36 = vadd.f32 1.0, %v5496_v44  ;;  %5517 = vrcp.f32 %v2198_v61 }
 0x486   :  { %v5500_v50 = vpop.eup %5499  ;;  %v2202_v24 = vadd.f32 1.0, %v5498_v33  ;;  %5519 = vrcp.f32 %v2199_v15 }
 0x487   :  { %v5502_v37 = vpop.eup %5501  ;;  %v2203_v29 = vadd.f32 1.0, %v5500_v50  ;;  %5521 = vrcp.f32 %v2201_v36  ;;  %v2297_v36 = vrot.slane %v2146_v32, 1 }
 0x488   :  { %v5504_v25 = vpop.eup %5503  ;;  %v2204_v19 = vadd.f32 1.0, %v5502_v37  ;;  %5523 = vrcp.f32 %v2202_v24  ;;  %v2298_v24 = vrot.slane %v2146_v32, 2 }
 0x489   :  { %v5506_v13 = vpop.eup %5505  ;;  %5525 = vrcp.f32 %v2203_v29  ;;  %v2269_v23 = vadd.f32 1.0, %v5504_v25 }
 0x48a   :  { %v5508_v28 = vpop.eup %5507  ;;  %5527 = vrcp.f32 %v2204_v19  ;;  %v2270_v61 = vadd.f32 1.0, %v5506_v13  ;;  %v7053_v13 = vld [vmem:[#allocation13_spill] sm:$0xff] }
 0x48b   :  { %v5510_v41 = vpop.eup %5509  ;;  %5529 = vpow2.f32 %v4511_v27 }
 0x48c   :  { %v5512_v38 = vpop.eup %5511  ;;  %5531 = vpow2.f32 %v4512_v14 }
 0x48d   :  { %v5514_v11 = vpop.eup %5513  ;;  %5533 = vpow2.f32 %v4513_v31  ;;  %v7054_v31 = vld [vmem:[#allocation14_spill] sm:$0xff] }
 0x48e   :  { %v5516_v10 = vpop.eup %5515  ;;  %v2312_v44 = vmul.f32 %v5514_v11, %v2146_v32  ;;  %5535 = vrcp.f32 %v2269_v23  ;;  %v2300_v11 = vrot.slane %v2146_v32, 4  ;;  %v7057_v32 = vld [vmem:[#allocation17_spill] sm:$0xff] }
 0x48f   :  { %v5518_v15 = vpop.eup %5517  ;;  %v2309_v33 = vmul.f32 %v5516_v10, %v2294_v53  ;;  %5537 = vrcp.f32 %v2270_v61  ;;  %v2273_v61 = vadd.f32 1.0, %v5512_v38 }
 0x490   :  { %v5520_v35 = vpop.eup %5519  ;;  %v2310_v50 = vmul.f32 %v5518_v15, %v2295_v49  ;;  %v2320_v27 = vadd.f32 %v2312_v44, %v7053_v13  ;;  %v2271_v15 = vadd.f32 1.0, %v5508_v28 }
 0x491   :  { %v5522_v21 = vpop.eup %5521  ;;  %v2311_v37 = vmul.f32 %v5520_v35, %v2296_v51  ;;  %v2317_v29 = vadd.f32 %v2309_v33, %v6278_v22  ;;  %v7055_v51 = vld [vmem:[#allocation15_spill] sm:$0xff]  ;;  %v2272_v33 = vadd.f32 1.0, %v5510_v41 }
 0x492   :  { %v5524_v25 = vpop.eup %5523  ;;  %v2318_v19 = vadd.f32 %v2310_v50, %v6274_v56  ;;  %v2313_v0 = vmul.f32 %v5522_v21, %v2297_v36  ;;  %v7056_v36 = vld [vmem:[#allocation16_spill] sm:$0xff] }
 0x493   :  { %v5526_v14 = vpop.eup %5525  ;;  %v2314_v53 = vmul.f32 %v5524_v25, %v2298_v24  ;;  %v2319_v10 = vadd.f32 %v2311_v37, %v7054_v31  ;;  %5539 = vtanh.f32 %v2317_v29  ;;  %v7058_v37 = vld [vmem:[#allocation18_spill] sm:$0xff] }
 0x494   :  { %v5528_v49 = vpop.eup %5527  ;;  %v2315_v23 = vmul.f32 %v5526_v14, %v2299_v18  ;;  %v2321_v35 = vadd.f32 %v2313_v0, %v7055_v51  ;;  %5541 = vtanh.f32 %v2318_v19 }
 0x495   :  { %v2316_v22 = vmul.f32 %v5528_v49, %v2300_v11  ;;  %5543 = vtanh.f32 %v2319_v10  ;;  %v2322_v50 = vadd.f32 %v2314_v53, %v7056_v36  ;;  %v5530_v44 = vpop.eup %5529 }
 0x496   :  { %5545 = vtanh.f32 %v2320_v27  ;;  %v2323_v24 = vadd.f32 %v2315_v23, %v7057_v32  ;;  %v5532_v21 = vpop.eup %5531  ;;  %v2274_v38 = vadd.f32 1.0, %v5530_v44 }
 0x497   :  { %5547 = vtanh.f32 %v2321_v35  ;;  %v2324_v28 = vadd.f32 %v2316_v22, %v7058_v37  ;;  %v5534_v29 = vpop.eup %5533  ;;  %v2275_v0 = vadd.f32 1.0, %v5532_v21 }
 0x498   :  { %5549 = vrcp.f32 %v2271_v15  ;;  %v5536_v18 = vpop.eup %5535  ;;  %v2276_v11 = vadd.f32 1.0, %v5534_v29 }
 0x499   :  { %5551 = vrcp.f32 %v2272_v33  ;;  %v5538_v41 = vpop.eup %5537 }
 0x49a   :  { %5553 = vrcp.f32 %v2273_v61 }
 0x49b   :  { %5555 = vtanh.f32 %v2322_v50 }
 0x49c   :  { %5557 = vtanh.f32 %v2323_v24 }
 0x49d   :  { %v5540_v25 = vpop.eup %5539  ;;  %5559 = vtanh.f32 %v2324_v28 }
 0x49e   :  { %v5542_v19 = vpop.eup %5541  ;;  %v2341_v27 = vrot.slane %v5540_v25, 1  ;;  %5561 = vrcp.f32 %v2274_v38 }
 0x49f   :  { %v5544_v14 = vpop.eup %5543  ;;  %v2342_v53 = vrot.slane %v5542_v19, 1  ;;  %5563 = vrcp.f32 %v2275_v0 }
 0x4a0   :  { %v5546_v10 = vpop.eup %5545  ;;  %v2343_v49 = vrot.slane %v5544_v14, 1  ;;  %v2357_v15 = vsub.f32 %v6524_v12, %v2341_v27  ;;  %5565 = vrcp.f32 %v2276_v11 }
 0x4a1   :  { %v5548_v22 = vpop.eup %5547  ;;  %v2344_v23 = vrot.slane %v5546_v10, 1  ;;  %v2358_v35 = vsub.f32 %v6526_v60, %v2342_v53 }
 0x4a2   :  { %v5550_v33 = vpop.eup %5549  ;;  %v2345_v61 = vrot.slane %v5548_v22, 1  ;;  %v2359_v50 = vsub.f32 %v6529_v26, %v2343_v49  ;;  %v2373_v44 = vrot.slane %v2357_v15, 7 }
 0x4a3   :  { %v5552_v24 = vpop.eup %5551  ;;  %v2360_v21 = vsub.f32 %v6532_v34, %v2344_v23  ;;  %v2374_v28 = vrot.slane %v2358_v35, 7 }
 0x4a4   :  { %v5554_v29 = vpop.eup %5553  ;;  %v2361_v37 = vsub.f32 %v6537_v43, %v2345_v61  ;;  %v2375_v12 = vrot.slane %v2359_v50, 7  ;;  %v2389_v27 = vmul.f32 %v5536_v18, %v2373_v44 }
 0x4a5   :  { %v5556_v38 = vpop.eup %5555  ;;  %v2376_v32 = vrot.slane %v2360_v21, 7  ;;  %v2390_v36 = vmul.f32 %v5538_v41, %v2374_v28 }
 0x4a6   :  { %v5558_v60 = vpop.eup %5557  ;;  %v2346_v53 = vrot.slane %v5556_v38, 1  ;;  %v2377_v0 = vrot.slane %v2361_v37, 7  ;;  %v2391_v13 = vmul.f32 %v5550_v33, %v2375_v12  ;;  %v6619_v51 = vadd.f32 %v5540_v25, %v2389_v27 }
 0x4a7   :  { %v5560_v26 = vpop.eup %5559  ;;  %v2347_v49 = vrot.slane %v5558_v60, 1  ;;  %v2392_v11 = vmul.f32 %v5552_v24, %v2376_v32  ;;  %v6621_v15 = vadd.f32 %v5542_v19, %v2390_v36 }
 0x4a8   :  { %v2348_v34 = vrot.slane %v5560_v26, 1  ;;  %v2362_v23 = vsub.f32 %v6545_v52, %v2346_v53  ;;  %v2393_v43 = vmul.f32 %v5554_v29, %v2377_v0  ;;  %v6624_v35 = vadd.f32 %v5544_v14, %v2391_v13  ;;  %v5562_v19 = vpop.eup %5561 }
 0x4a9   :  { %v2363_v18 = vsub.f32 %v6547_v40, %v2347_v49  ;;  %v6627_v41 = vadd.f32 %v5546_v10, %v2392_v11  ;;  %v2413_v37 = vrot.slane %v6619_v51, 3  ;;  %v2414_v25 = vrot.slane %v6621_v15, 2  ;;  %v5564_v14 = vpop.eup %5563 }
 0x4aa   :  { %v2364_v33 = vsub.f32 %v6550_v54, %v2348_v34  ;;  %v2378_v61 = vrot.slane %v2362_v23, 7  ;;  %v6632_v32 = vadd.f32 %v5548_v22, %v2393_v43  ;;  %v2416_v36 = vrot.slane %v6624_v35, 1  ;;  %v5566_v44 = vpop.eup %5565 }
 0x4ab   :  { %v2379_v52 = vrot.slane %v2363_v18, 7  ;;  %v2415_v13 = vsel %vm881_vm2, %v2414_v25, %v2413_v37 }
 0x4ac   :  { %v2380_v50 = vrot.slane %v2364_v33, 7  ;;  %v2394_v40 = vmul.f32 %v5562_v19, %v2378_v61  ;;  %v2417_v10 = vsel %vm884_vm3, %v2416_v36, %v2415_v13  ;;  %v2419_v54 = vrot.slane %v6632_v32, 7 }
 0x4ad   :  { %v2395_v24 = vmul.f32 %v5564_v14, %v2379_v52  ;;  %v2418_v21 = vsel %vm887_vm4, %v6627_v41, %v2417_v10 }
 0x4ae   :  { %v2396_v22 = vmul.f32 %v5566_v44, %v2380_v50  ;;  %v6640_v28 = vadd.f32 %v5556_v38, %v2394_v40  ;;  %v2420_v12 = vsel %vm890_vm5, %v2419_v54, %v2418_v21 }
 0x4af   :  { %v6642_v29 = vadd.f32 %v5558_v60, %v2395_v24 }
 0x4b0   :  { %v6645_v27 = vadd.f32 %v5560_v26, %v2396_v22  ;;  %v2421_v53 = vrot.slane %v6640_v28, 6 }
 0x4b1   :  { %v2423_v0 = vrot.slane %v6642_v29, 5 }
 0x4b2   :  { %v2422_v49 = vsel %vm893_vm6, %v2421_v53, %v2420_v12  ;;  %v2425_v11 = vrot.slane %v6645_v27, 4 }
 0x4b3   :  { %v2424_v34 = vsel %vm896_vm7, %v2423_v0, %v2422_v49 }
 0x4b4   :  { %v2426_v23 = vsel %vm899_vm8, %v2425_v11, %v2424_v34 }
 0x4b5   :  { %4947 = vmatmul.mubr.msk.f32.vlgmr.msra.gmra.mrb[26].mxu0 %vm66_vm0, %v2426_v23  ;;  %4958 = vmatmul.mubr.msk.f32.vlgmr.msra.gmra.mrb[22].mxu1 %vm66_vm0, %v2426_v23 }
 0x4b6   :  { %5180 = vmatpush3.bf16.msra.mxu0 %v6114_v42  ;;  %4968 = vmatprep.mubr.msk.f32.mxu0 %vm5990_vm1, %v7043_v16 }
 0x4b7   :  { %5181 = vmatprep.subr.bf16.mxu0 %v7044_v17  ;;  %5186 = vmatpush3.bf16.msra.mxu1 %v6082_v20 }
 0x4b8   :  { %5187 = vmatprep.subr.bf16.mxu1 %v7044_v17  ;;  %4979 = vmatprep.mubr.msk.f32.mxu1 %vm5990_vm1, %v7043_v16 }
 0x4ba   :  { %5183 = vmatpush3.bf16.msra.mxu0 %v6127_v46 }
 0x4bb   :  { %5190 = vmatprep.subr.bf16.mxu0 %v7044_v17  ;;  %5189 = vmatpush3.bf16.msra.mxu1 %v6090_v30 }
 0x4bc   :  { %5196 = vmatprep.subr.bf16.mxu1 %v7044_v17 }
 0x4bd   :  { %4969 = vmatmul.mubr.msk.f32.vlgmr.msra.gmra.mrb[28].mxu0 %vm66_vm0, %v2426_v23 }
 0x4be   :  { %5192 = vmatpush3.bf16.msra.mxu0 %v6110_v39  ;;  %4990 = vmatprep.mubr.msk.f32.mxu0 %vm5990_vm1, %v7043_v16 }
 0x4bf   :  { %5193 = vmatprep.subr.bf16.mxu0 %v7044_v17 }
 0x4c2   :  { %5195 = vmatpush3.bf16.msra.mxu0 %v6119_v45 }
 0x4c3   :  { %5202 = vmatprep.subr.bf16.mxu0 %v7044_v17 }
 0x588   :  { %v2495_v38 = vpop.f32.mrb[26].mxu0  ;;  %v6674_v60 = vpop.f32.mrb[22].mxu1 }
 0x589   :  { %v2640_v26 = vrot.slane %v2495_v38, 4  ;;  %v2641_v43 = vrot.slane %v2495_v38, 5  ;;  %v2642_v18 = vrot.slane %v2495_v38, 6  ;;  %v2643_v37 = vrot.slane %v2495_v38, 7  ;;  %v4948_v25 = vpop.f32.mrb[27].mxu0  ;;  %v4959_v33 = vpop.f32.mrb[23].mxu1 }
 0x58a   :  { %v2644_v61 = vrot.slane %v2495_v38, 1  ;;  %v2645_v36 = vrot.slane %v2495_v38, 2  ;;  %v2646_v19 = vrot.slane %v2495_v38, 3  ;;  %v2659_v52 = vadd.f32 %v2495_v38, %v6182_v4 }
 0x58b   :  { %v2655_v13 = vadd.f32 %v2640_v26, %v6178_v2  ;;  %v2656_v14 = vadd.f32 %v2641_v43, %v6176_v1  ;;  %v2657_v50 = vadd.f32 %v2642_v18, %v6184_v5  ;;  %v2658_v40 = vadd.f32 %v2643_v37, %v6180_v3 }
 0x58c   :  { %v2660_v10 = vadd.f32 %v2644_v61, %v6186_v6  ;;  %v2661_v44 = vadd.f32 %v2645_v36, %v6190_v8  ;;  %v4521_v24 = vmul.f32 -1.442695, %v2659_v52  ;;  %v2662_v21 = vadd.f32 %v2646_v19, %v6188_v7 }
 0x58d   :  { %v4517_v54 = vmul.f32 -1.442695, %v2655_v13  ;;  %v4518_v22 = vmul.f32 -1.442695, %v2656_v14  ;;  %v4519_v12 = vmul.f32 -1.442695, %v2657_v50  ;;  %v2731_v37 = vadd.f32 %v6674_v60, %v6236_v47 }
 0x58e   :  { %v4520_v53 = vmul.f32 -1.442695, %v2658_v40  ;;  %5567 = vpow2.f32 %v4521_v24  ;;  %v4522_v0 = vmul.f32 -1.442695, %v2660_v10  ;;  %v2712_v49 = vrot.slane %v6674_v60, 4 }
 0x58f   :  { %5569 = vpow2.f32 %v4517_v54  ;;  %v2713_v11 = vrot.slane %v6674_v60, 5  ;;  %v4523_v34 = vmul.f32 -1.442695, %v2661_v44  ;;  %v2714_v23 = vrot.slane %v6674_v60, 6 }
 0x590   :  { %5571 = vpow2.f32 %v4518_v22  ;;  %v2715_v38 = vrot.slane %v6674_v60, 7  ;;  %v2635_v26 = vpop.f32.mrb[28].mxu0  ;;  %v4524_v43 = vmul.f32 -1.442695, %v2662_v21  ;;  %v2727_v18 = vadd.f32 %v2712_v49, %v6221_v58 }
 0x591   :  { %5573 = vpow2.f32 %v4519_v12  ;;  %v4970_v25 = vpop.f32.mrb[29].mxu0  ;;  %v2728_v33 = vadd.f32 %v2713_v11, %v6218_v57  ;;  %v2729_v61 = vadd.f32 %v2714_v23, %v6227_v63  ;;  %v4529_v50 = vmul.f32 -1.442695, %v2731_v37 }
 0x592   :  { %5575 = vpow2.f32 %v4520_v53  ;;  %v2730_v36 = vadd.f32 %v2715_v38, %v6224_v62  ;;  %v4525_v19 = vmul.f32 -1.442695, %v2727_v18  ;;  %v2716_v54 = vrot.slane %v6674_v60, 1 }
 0x593   :  { %5577 = vpow2.f32 %v4522_v0  ;;  %v4526_v52 = vmul.f32 -1.442695, %v2728_v33  ;;  %v4527_v13 = vmul.f32 -1.442695, %v2729_v61  ;;  %v2717_v53 = vrot.slane %v6674_v60, 2 }
 0x594   :  { %5579 = vpow2.f32 %v4523_v34  ;;  %v4528_v14 = vmul.f32 -1.442695, %v2730_v36  ;;  %v2718_v11 = vrot.slane %v6674_v60, 3  ;;  %v2732_v18 = vadd.f32 %v2716_v54, %v6230_v9 }
 0x595   :  { %5581 = vpow2.f32 %v4524_v43  ;;  %v2733_v33 = vadd.f32 %v2717_v53, %v6245_v55  ;;  %v2636_v60 = vadd.f32 %v6508_v59, %v2635_v26 }
 0x596   :  { %5583 = vpow2.f32 %v4525_v19  ;;  %v2734_v19 = vadd.f32 %v2718_v11, %v6239_v48 }
 0x597   :  { %5585 = vpow2.f32 %v4526_v52  ;;  %v2784_v54 = vrot.slane %v2636_v60, 4  ;;  %v2785_v53 = vrot.slane %v2636_v60, 5  ;;  %v2786_v11 = vrot.slane %v2636_v60, 6 }
 0x598   :  { %v5568_v40 = vpop.eup %5567  ;;  %5587 = vpow2.f32 %v4527_v13  ;;  %v2787_v26 = vrot.slane %v2636_v60, 7 }
 0x599   :  { %v5570_v10 = vpop.eup %5569  ;;  %v2691_v44 = vadd.f32 1.0, %v5568_v40  ;;  %5589 = vpow2.f32 %v4528_v14  ;;  %v4530_v14 = vmul.f32 -1.442695, %v2732_v18  ;;  %v4531_v40 = vmul.f32 -1.442695, %v2733_v33 }
 0x59a   :  { %v5572_v24 = vpop.eup %5571  ;;  %v2687_v21 = vadd.f32 1.0, %v5570_v10  ;;  %5591 = vpow2.f32 %v4529_v50  ;;  %v2789_v33 = vrot.slane %v2636_v60, 2 }
 0x59b   :  { %v5574_v22 = vpop.eup %5573  ;;  %v2688_v12 = vadd.f32 1.0, %v5572_v24  ;;  %5593 = vrcp.f32 %v2691_v44  ;;  %v4532_v44 = vmul.f32 -1.442695, %v2734_v19 }
 0x59c   :  { %v5576_v0 = vpop.eup %5575  ;;  %v2689_v49 = vadd.f32 1.0, %v5574_v22  ;;  %5595 = vrcp.f32 %v2687_v21 }
 0x59d   :  { %v5578_v34 = vpop.eup %5577  ;;  %v2690_v23 = vadd.f32 1.0, %v5576_v0  ;;  %5597 = vrcp.f32 %v2688_v12 }
 0x59e   :  { %v5580_v38 = vpop.eup %5579  ;;  %v2692_v43 = vadd.f32 1.0, %v5578_v34  ;;  %5599 = vrcp.f32 %v2689_v49 }
 0x59f   :  { %v5582_v37 = vpop.eup %5581  ;;  %v2693_v25 = vadd.f32 1.0, %v5580_v38  ;;  %5601 = vrcp.f32 %v2690_v23  ;;  %v2788_v38 = vrot.slane %v2636_v60, 1 }
 0x5a0   :  { %v5584_v61 = vpop.eup %5583  ;;  %v2694_v36 = vadd.f32 1.0, %v5582_v37  ;;  %5603 = vrcp.f32 %v2692_v43  ;;  %v7059_v37 = vld [vmem:[#allocation12_spill] sm:$0xff] }
 0x5a1   :  { %v5586_v52 = vpop.eup %5585  ;;  %5605 = vrcp.f32 %v2693_v25  ;;  %v2759_v21 = vadd.f32 1.0, %v5584_v61 }
 0x5a2   :  { %v5588_v13 = vpop.eup %5587  ;;  %5607 = vrcp.f32 %v2694_v36  ;;  %v2760_v12 = vadd.f32 1.0, %v5586_v52  ;;  %v2790_v52 = vrot.slane %v2636_v60, 3 }
 0x5a3   :  { %v5590_v50 = vpop.eup %5589  ;;  %5609 = vpow2.f32 %v4530_v14 }
 0x5a4   :  { %v5592_v10 = vpop.eup %5591  ;;  %5611 = vpow2.f32 %v4531_v40 }
 0x5a5   :  { %v5594_v24 = vpop.eup %5593  ;;  %5613 = vpow2.f32 %v4532_v44  ;;  %v7060_v44 = vld [vmem:[#allocation15_spill] sm:$0xff] }
 0x5a6   :  { %v5596_v22 = vpop.eup %5595  ;;  %v2803_v0 = vmul.f32 %v5594_v24, %v2636_v60  ;;  %5615 = vrcp.f32 %v2759_v21 }
 0x5a7   :  { %v5598_v49 = vpop.eup %5597  ;;  %v2799_v34 = vmul.f32 %v5596_v22, %v2784_v54  ;;  %5617 = vrcp.f32 %v2760_v12  ;;  %v2763_v12 = vadd.f32 1.0, %v5592_v10 }
 0x5a8   :  { %v5600_v59 = vpop.eup %5599  ;;  %v2800_v23 = vmul.f32 %v5598_v49, %v2785_v53  ;;  %v2811_v54 = vadd.f32 %v2803_v0, %v7060_v44  ;;  %v2761_v53 = vadd.f32 1.0, %v5588_v13  ;;  %v7061_v49 = vld [vmem:[#allocation13_spill] sm:$0xff] }
 0x5a9   :  { %v5602_v43 = vpop.eup %5601  ;;  %v2801_v18 = vmul.f32 %v5600_v59, %v2786_v11  ;;  %v2807_v25 = vadd.f32 %v2799_v34, %v7059_v37  ;;  %v2762_v34 = vadd.f32 1.0, %v5590_v50 }
 0x5aa   :  { %v5604_v61 = vpop.eup %5603  ;;  %v2802_v36 = vmul.f32 %v5602_v43, %v2787_v26  ;;  %v2808_v19 = vadd.f32 %v2800_v23, %v6274_v56  ;;  %v7062_v26 = vld [vmem:[#allocation16_spill] sm:$0xff] }
 0x5ab   :  { %v5606_v14 = vpop.eup %5605  ;;  %v2804_v40 = vmul.f32 %v5604_v61, %v2788_v38  ;;  %v2809_v24 = vadd.f32 %v2801_v18, %v7054_v31  ;;  %5619 = vtanh.f32 %v2807_v25  ;;  %v7063_v38 = vld [vmem:[#allocation17_spill] sm:$0xff]  ;;  %v7064_v18 = vld [vmem:[#allocation18_spill] sm:$0xff] }
 0x5ac   :  { %v5608_v22 = vpop.eup %5607  ;;  %v2805_v21 = vmul.f32 %v5606_v14, %v2789_v33  ;;  %v2810_v11 = vadd.f32 %v2802_v36, %v7061_v49  ;;  %5621 = vtanh.f32 %v2808_v19 }
 0x5ad   :  { %v2806_v59 = vmul.f32 %v5608_v22, %v2790_v52  ;;  %5623 = vtanh.f32 %v2809_v24  ;;  %v2812_v60 = vadd.f32 %v2804_v40, %v7062_v26  ;;  %v5610_v23 = vpop.eup %5609 }
 0x5ae   :  { %5625 = vtanh.f32 %v2810_v11  ;;  %v2813_v43 = vadd.f32 %v2805_v21, %v7063_v38  ;;  %v5612_v0 = vpop.eup %5611  ;;  %v2764_v10 = vadd.f32 1.0, %v5610_v23 }
 0x5af   :  { %5627 = vtanh.f32 %v2811_v54  ;;  %v2814_v13 = vadd.f32 %v2806_v59, %v7064_v18  ;;  %v5614_v25 = vpop.eup %5613  ;;  %v2765_v19 = vadd.f32 1.0, %v5612_v0 }
 0x5b0   :  { %5629 = vrcp.f32 %v2761_v53  ;;  %v5616_v33 = vpop.eup %5615  ;;  %v2766_v40 = vadd.f32 1.0, %v5614_v25 }
 0x5b1   :  { %5631 = vrcp.f32 %v2762_v34  ;;  %v5618_v50 = vpop.eup %5617 }
 0x5b2   :  { %5633 = vrcp.f32 %v2763_v12 }
 0x5b3   :  { %5635 = vtanh.f32 %v2812_v60 }
 0x5b4   :  { %5637 = vtanh.f32 %v2813_v43 }
 0x5b5   :  { %v5620_v61 = vpop.eup %5619  ;;  %5639 = vtanh.f32 %v2814_v13 }
 0x5b6   :  { %v5622_v36 = vpop.eup %5621  ;;  %v2831_v52 = vrot.slane %v5620_v61, 1  ;;  %5641 = vrcp.f32 %v2764_v10 }
 0x5b7   :  { %v5624_v14 = vpop.eup %5623  ;;  %v2832_v24 = vrot.slane %v5622_v36, 1  ;;  %5643 = vrcp.f32 %v2765_v19 }
 0x5b8   :  { %v5626_v54 = vpop.eup %5625  ;;  %v2833_v22 = vrot.slane %v5624_v14, 1  ;;  %v2847_v53 = vsub.f32 %v6619_v51, %v2831_v52  ;;  %5645 = vrcp.f32 %v2766_v40 }
 0x5b9   :  { %v5628_v21 = vpop.eup %5627  ;;  %v2834_v11 = vrot.slane %v5626_v54, 1  ;;  %v2848_v34 = vsub.f32 %v6621_v15, %v2832_v24 }
 0x5ba   :  { %v5630_v59 = vpop.eup %5629  ;;  %v2835_v12 = vrot.slane %v5628_v21, 1  ;;  %v2849_v60 = vsub.f32 %v6624_v35, %v2833_v22  ;;  %v2863_v23 = vrot.slane %v2847_v53, 7 }
 0x5bb   :  { %v5632_v43 = vpop.eup %5631  ;;  %v2850_v0 = vsub.f32 %v6627_v41, %v2834_v11  ;;  %v2864_v13 = vrot.slane %v2848_v34, 7 }
 0x5bc   :  { %v5634_v25 = vpop.eup %5633  ;;  %v2851_v18 = vsub.f32 %v6632_v32, %v2835_v12  ;;  %v2865_v51 = vrot.slane %v2849_v60, 7  ;;  %v2879_v52 = vmul.f32 %v5616_v33, %v2863_v23 }
 0x5bd   :  { %v5636_v10 = vpop.eup %5635  ;;  %v2866_v38 = vrot.slane %v2850_v0, 7  ;;  %v2880_v26 = vmul.f32 %v5618_v50, %v2864_v13 }
 0x5be   :  { %v5638_v15 = vpop.eup %5637  ;;  %v2836_v24 = vrot.slane %v5636_v10, 1  ;;  %v2867_v19 = vrot.slane %v2851_v18, 7  ;;  %v2881_v44 = vmul.f32 %v5630_v59, %v2865_v51  ;;  %v6714_v49 = vadd.f32 %v5620_v61, %v2879_v52 }
 0x5bf   :  { %v5640_v35 = vpop.eup %5639  ;;  %v2837_v22 = vrot.slane %v5638_v15, 1  ;;  %v2882_v40 = vmul.f32 %v5632_v43, %v2866_v38  ;;  %v6716_v53 = vadd.f32 %v5622_v36, %v2880_v26 }
 0x5c0   :  { %v2838_v41 = vrot.slane %v5640_v35, 1  ;;  %v2852_v11 = vsub.f32 %v6640_v28, %v2836_v24  ;;  %v2883_v32 = vmul.f32 %v5634_v25, %v2867_v19  ;;  %v6719_v34 = vadd.f32 %v5624_v14, %v2881_v44  ;;  %v5642_v36 = vpop.eup %5641 }
 0x5c1   :  { %v2853_v33 = vsub.f32 %v6642_v29, %v2837_v22  ;;  %v6722_v50 = vadd.f32 %v5626_v54, %v2882_v40  ;;  %v2903_v18 = vrot.slane %v6714_v49, 4  ;;  %v2904_v61 = vrot.slane %v6716_v53, 3  ;;  %v5644_v29 = vpop.eup %5643 }
 0x5c2   :  { %v2854_v59 = vsub.f32 %v6645_v27, %v2838_v41  ;;  %v2868_v12 = vrot.slane %v2852_v11, 7  ;;  %v6727_v38 = vadd.f32 %v5628_v21, %v2883_v32  ;;  %v2906_v26 = vrot.slane %v6719_v34, 2  ;;  %v5646_v43 = vpop.eup %5645 }
 0x5c3   :  { %v2869_v28 = vrot.slane %v2853_v33, 7  ;;  %v2905_v44 = vsel %vm881_vm2, %v2904_v61, %v2903_v18  ;;  %v2908_v14 = vrot.slane %v6722_v50, 1 }
 0x5c4   :  { %v2870_v54 = vrot.slane %v2854_v59, 7  ;;  %v2884_v60 = vmul.f32 %v5642_v36, %v2868_v12  ;;  %v2907_v23 = vsel %vm884_vm3, %v2906_v26, %v2905_v44 }
 0x5c5   :  { %v2885_v0 = vmul.f32 %v5644_v29, %v2869_v28  ;;  %v2909_v27 = vsel %vm887_vm4, %v2908_v14, %v2907_v23 }
 0x5c6   :  { %v2886_v13 = vmul.f32 %v5646_v43, %v2870_v54  ;;  %v6734_v21 = vadd.f32 %v5636_v10, %v2884_v60  ;;  %v2910_v51 = vsel %vm890_vm5, %v6727_v38, %v2909_v27 }
 0x5c7   :  { %v6736_v25 = vadd.f32 %v5638_v15, %v2885_v0 }
 0x5c8   :  { %v6740_v52 = vadd.f32 %v5640_v35, %v2886_v13  ;;  %v2911_v24 = vrot.slane %v6734_v21, 7 }
 0x5c9   :  { %v2913_v19 = vrot.slane %v6736_v25, 6 }
 0x5ca   :  { %v2912_v22 = vsel %vm893_vm6, %v2911_v24, %v2910_v51  ;;  %v2915_v40 = vrot.slane %v6740_v52, 5 }
 0x5cb   :  { %v2914_v41 = vsel %vm896_vm7, %v2913_v19, %v2912_v22 }
 0x5cc   :  { %v2916_v10 = vsel %vm899_vm8, %v2915_v40, %v2914_v41 }
 0x5cd   :  { %4980 = vmatmul.mubr.msk.f32.vlgmr.msra.gmra.mrb[24].mxu1 %vm66_vm0, %v2916_v10  ;;  %4991 = vmatmul.mubr.msk.f32.vlgmr.msra.gmra.mrb[30].mxu0 %vm66_vm0, %v2916_v10 }
 0x5ce   :  { %5198 = vmatpush3.bf16.msra.mxu1 %v6114_v42  ;;  %5001 = vmatprep.mubr.msk.f32.mxu1 %vm5990_vm1, %v7043_v16 }
 0x5cf   :  { %5199 = vmatprep.subr.bf16.mxu1 %v7044_v17  ;;  %5204 = vmatpush3.bf16.msra.mxu0 %v6082_v20 }
 0x5d0   :  { %5205 = vmatprep.subr.bf16.mxu0 %v7044_v17  ;;  %5012 = vmatprep.mubr.msk.f32.mxu0 %vm5990_vm1, %v7043_v16 }
 0x5d2   :  { %5201 = vmatpush3.bf16.msra.mxu1 %v6127_v46 }
 0x5d3   :  { %5208 = vmatprep.subr.bf16.mxu1 %v7044_v17  ;;  %5207 = vmatpush3.bf16.msra.mxu0 %v6090_v30 }
 0x5d4   :  { %5214 = vmatprep.subr.bf16.mxu0 %v7044_v17 }
 0x5d5   :  { %5002 = vmatmul.mubr.msk.f32.vlgmr.msra.gmra.mrb[26].mxu1 %vm66_vm0, %v2916_v10 }
 0x5d6   :  { %5210 = vmatpush3.bf16.msra.mxu1 %v6110_v39  ;;  %5023 = vmatprep.mubr.msk.f32.mxu1 %vm5990_vm1, %v7043_v16 }
 0x5d7   :  { %5211 = vmatprep.subr.bf16.mxu1 %v7044_v17 }
 0x5da   :  { %5213 = vmatpush3.bf16.msra.mxu1 %v6119_v45 }
 0x5db   :  { %5220 = vmatprep.subr.bf16.mxu1 %v7044_v17 }
 0x6a0   :  { %v2985_v15 = vpop.f32.mrb[24].mxu1  ;;  %v6769_v35 = vpop.f32.mrb[30].mxu0 }
 0x6a1   :  { %v3130_v11 = vrot.slane %v2985_v15, 3  ;;  %v3131_v32 = vrot.slane %v2985_v15, 4  ;;  %v3132_v33 = vrot.slane %v2985_v15, 5  ;;  %v3133_v18 = vrot.slane %v2985_v15, 6  ;;  %v4981_v61 = vpop.f32.mrb[25].mxu1  ;;  %v4992_v59 = vpop.f32.mrb[31].mxu0 }
 0x6a2   :  { %v3134_v12 = vrot.slane %v2985_v15, 7  ;;  %v3135_v26 = vrot.slane %v2985_v15, 1  ;;  %v3136_v36 = vrot.slane %v2985_v15, 2  ;;  %v3150_v28 = vadd.f32 %v2985_v15, %v6186_v6 }
 0x6a3   :  { %v3145_v44 = vadd.f32 %v3130_v11, %v6178_v2  ;;  %v3146_v14 = vadd.f32 %v3131_v32, %v6176_v1  ;;  %v3147_v29 = vadd.f32 %v3132_v33, %v6184_v5  ;;  %v3148_v54 = vadd.f32 %v3133_v18, %v6180_v3 }
 0x6a4   :  { %v3149_v60 = vadd.f32 %v3134_v12, %v6182_v4  ;;  %v3151_v23 = vadd.f32 %v3135_v26, %v6190_v8  ;;  %v4541_v43 = vmul.f32 -1.442695, %v3150_v28  ;;  %v3152_v0 = vadd.f32 %v3136_v36, %v6188_v7 }
 0x6a5   :  { %v4536_v27 = vmul.f32 -1.442695, %v3145_v44  ;;  %v4537_v13 = vmul.f32 -1.442695, %v3146_v14  ;;  %v4538_v51 = vmul.f32 -1.442695, %v3147_v29 }
 0x6a6   :  { %v4539_v24 = vmul.f32 -1.442695, %v3148_v54  ;;  %v4540_v19 = vmul.f32 -1.442695, %v3149_v60  ;;  %5647 = vpow2.f32 %v4541_v43  ;;  %v4542_v22 = vmul.f32 -1.442695, %v3151_v23 }
 0x6a7   :  { %5649 = vpow2.f32 %v4536_v27  ;;  %v3202_v40 = vrot.slane %v6769_v35, 3  ;;  %v3203_v41 = vrot.slane %v6769_v35, 4  ;;  %v3204_v10 = vrot.slane %v6769_v35, 5 }
 0x6a8   :  { %5651 = vpow2.f32 %v4537_v13  ;;  %v3205_v15 = vrot.slane %v6769_v35, 6  ;;  %v3206_v11 = vrot.slane %v6769_v35, 7  ;;  %v3125_v32 = vpop.f32.mrb[26].mxu1  ;;  %v4543_v33 = vmul.f32 -1.442695, %v3152_v0 }
 0x6a9   :  { %5653 = vpow2.f32 %v4538_v51  ;;  %v3217_v18 = vadd.f32 %v3202_v40, %v6221_v58  ;;  %v5003_v61 = vpop.f32.mrb[27].mxu1  ;;  %v3218_v59 = vadd.f32 %v3203_v41, %v6218_v57  ;;  %v3219_v12 = vadd.f32 %v3204_v10, %v6227_v63 }
 0x6aa   :  { %5655 = vpow2.f32 %v4539_v24  ;;  %v3220_v26 = vadd.f32 %v3205_v15, %v6224_v62  ;;  %v3221_v36 = vadd.f32 %v3206_v11, %v6236_v47  ;;  %v3207_v24 = vrot.slane %v6769_v35, 1 }
 0x6ab   :  { %5657 = vpow2.f32 %v4540_v19  ;;  %v4544_v28 = vmul.f32 -1.442695, %v3217_v18  ;;  %v4545_v44 = vmul.f32 -1.442695, %v3218_v59  ;;  %v4546_v14 = vmul.f32 -1.442695, %v3219_v12 }
 0x6ac   :  { %5659 = vpow2.f32 %v4542_v22  ;;  %v4547_v29 = vmul.f32 -1.442695, %v3220_v26  ;;  %v4548_v54 = vmul.f32 -1.442695, %v3221_v36  ;;  %v3208_v40 = vrot.slane %v6769_v35, 2 }
 0x6ad   :  { %5661 = vpow2.f32 %v4543_v33  ;;  %v3222_v33 = vadd.f32 %v6769_v35, %v6230_v9  ;;  %v3223_v59 = vadd.f32 %v3207_v24, %v6245_v55 }
 0x6ae   :  { %5663 = vpow2.f32 %v4544_v28  ;;  %v3224_v36 = vadd.f32 %v3208_v40, %v6239_v48 }
 0x6af   :  { %5665 = vpow2.f32 %v4545_v44  ;;  %v6798_v44 = vld [vmem:[%s7015_s4] ss:$0 sm:$0xff]  ;;  %s5991_s4 = smov [#allocation8]  }
 0x6b0   :  { %v5648_v60 = vpop.eup %5647  ;;  %5667 = vpow2.f32 %v4546_v14  ;;  %v3126_v14 = vadd.f32 %v6798_v44, %v3125_v32  ;;  %s4398_s14 = sshll.u32 %s5991_s4, 4  ;;  %s4399_s14 = int_to_ptr.vmem [resolvable:$true] %s4398_s14 }
 0x6b1   :  { %v5650_v23 = vpop.eup %5649  ;;  %v3182_v43 = vadd.f32 1.0, %v5648_v60  ;;  %5669 = vpow2.f32 %v4547_v29  ;;  %v4549_v29 = vmul.f32 -1.442695, %v3222_v33  ;;  %v4550_v60 = vmul.f32 -1.442695, %v3223_v59  ;;  %s5955_s15 = scalar_lea.vmem %s4399_s14, 128  ;;  %p5960_p11 = scmp.lt.s32.totalorder %s4399_s14, %s4399_s14 }
 0x6b2   :  { %v5652_v0 = vpop.eup %5651  ;;  %v3177_v27 = vadd.f32 1.0, %v5650_v23  ;;  %5671 = vpow2.f32 %v4548_v54  ;;  %p5956_p10 = scmp.ne.s32.totalorder %s4399_s14, %s5955_s15  ;;  %p5961_p12 = scmp.lt.s32.totalorder %s5955_s15, %s5955_s15 }
 0x6b3   :  { %v5654_v13 = vpop.eup %5653  ;;  %v3178_v51 = vadd.f32 1.0, %v5652_v0  ;;  %5673 = vrcp.f32 %v3182_v43  ;;  %v4551_v43 = vmul.f32 -1.442695, %v3224_v36 }
 0x6b4   :  { %v5656_v19 = vpop.eup %5655  ;;  %v3179_v22 = vadd.f32 1.0, %v5654_v13  ;;  %5675 = vrcp.f32 %v3177_v27  ;;  %v3274_v13 = vrot.slane %v3126_v14, 3  ;;  %p5962_p13 = por %p5961_p12, %p5960_p11 }
 0x6b5   :  { %v5658_v41 = vpop.eup %5657  ;;  %v3180_v10 = vadd.f32 1.0, %v5656_v19  ;;  %5677 = vrcp.f32 %v3178_v51  ;;  %v3275_v19 = vrot.slane %v3126_v14, 4 }
 0x6b6   :  { %v5660_v15 = vpop.eup %5659  ;;  %v3181_v11 = vadd.f32 1.0, %v5658_v41  ;;  %5679 = vrcp.f32 %v3179_v22  ;;  %v3276_v41 = vrot.slane %v3126_v14, 5  ;;  %p5963_p0 = pnand %p5962_p13, %p5956_p10 }
 0x6b7   :  { %v5662_v18 = vpop.eup %5661  ;;  %v3183_v61 = vadd.f32 1.0, %v5660_v15  ;;  %5681 = vrcp.f32 %v3180_v10  ;;  %v3277_v15 = vrot.slane %v3126_v14, 6 }
 0x6b8   :  { %v5664_v12 = vpop.eup %5663  ;;  %v3184_v26 = vadd.f32 1.0, %v5662_v18  ;;  %5683 = vrcp.f32 %v3181_v11  ;;  %v3278_v18 = vrot.slane %v3126_v14, 7 }
 0x6b9   :  { %v5666_v28 = vpop.eup %5665  ;;  %5685 = vrcp.f32 %v3183_v61  ;;  %v3249_v27 = vadd.f32 1.0, %v5664_v12 }
 0x6ba   :  { %v5668_v35 = vpop.eup %5667  ;;  %5687 = vrcp.f32 %v3184_v26  ;;  %v3250_v24 = vadd.f32 1.0, %v5666_v28  ;;  %v3279_v28 = vrot.slane %v3126_v14, 1 }
 0x6bb   :  { %v5670_v54 = vpop.eup %5669  ;;  %5689 = vpow2.f32 %v4549_v29 }
 0x6bc   :  { %v5672_v23 = vpop.eup %5671  ;;  %5691 = vpow2.f32 %v4550_v60  ;;  %v3280_v60 = vrot.slane %v3126_v14, 2 }
 0x6bd   :  { %v5674_v0 = vpop.eup %5673  ;;  %5693 = vpow2.f32 %v4551_v43 }
 0x6be   :  { %v5676_v51 = vpop.eup %5675  ;;  %v3294_v22 = vmul.f32 %v5674_v0, %v3126_v14  ;;  %5695 = vrcp.f32 %v3249_v27  ;;  %v7065_v27 = vld [vmem:[#allocation13_spill] sm:$0xff] }
 0x6bf   :  { %v5678_v40 = vpop.eup %5677  ;;  %v3289_v10 = vmul.f32 %v5676_v51, %v3274_v13  ;;  %5697 = vrcp.f32 %v3250_v24  ;;  %v3251_v51 = vadd.f32 1.0, %v5668_v35  ;;  %v7069_v35 = vld [vmem:[#allocation18_spill] sm:$0xff] }
 0x6c0   :  { %v5680_v32 = vpop.eup %5679  ;;  %v3290_v11 = vmul.f32 %v5678_v40, %v3275_v19 }
 0x6c1   :  { %v5682_v33 = vpop.eup %5681  ;;  %v3291_v61 = vmul.f32 %v5680_v32, %v3276_v41  ;;  %v3297_v59 = vadd.f32 %v3289_v10, %v7059_v37  ;;  %v3252_v41 = vadd.f32 1.0, %v5670_v54  ;;  %v7066_v32 = vld [vmem:[#allocation15_spill] sm:$0xff] }
 0x6c2   :  { %v5684_v12 = vpop.eup %5683  ;;  %v3292_v26 = vmul.f32 %v5682_v33, %v3277_v15  ;;  %v3298_v36 = vadd.f32 %v3290_v11, %v6274_v56  ;;  %v3253_v15 = vadd.f32 1.0, %v5672_v23  ;;  %v7067_v11 = vld [vmem:[#allocation16_spill] sm:$0xff] }
 0x6c3   :  { %v5686_v29 = vpop.eup %5685  ;;  %v3293_v0 = vmul.f32 %v5684_v12, %v3278_v18  ;;  %v3299_v13 = vadd.f32 %v3291_v61, %v7054_v31  ;;  %5699 = vtanh.f32 %v3297_v59  ;;  %v3302_v33 = vadd.f32 %v3294_v22, %v7067_v11  ;;  %v7068_v18 = vld [vmem:[#allocation17_spill] sm:$0xff] }
 0x6c4   :  { %v5688_v43 = vpop.eup %5687  ;;  %v3295_v19 = vmul.f32 %v5686_v29, %v3279_v28  ;;  %v3300_v40 = vadd.f32 %v3292_v26, %v7065_v27  ;;  %5701 = vtanh.f32 %v3298_v36 }
 0x6c5   :  { %v3296_v10 = vmul.f32 %v5688_v43, %v3280_v60  ;;  %v3301_v24 = vadd.f32 %v3293_v0, %v7066_v32  ;;  %5703 = vtanh.f32 %v3299_v13  ;;  %v5690_v14 = vpop.eup %5689 }
 0x6c6   :  { %5705 = vtanh.f32 %v3300_v40  ;;  %v3303_v61 = vadd.f32 %v3295_v19, %v7068_v18  ;;  %v5692_v59 = vpop.eup %5691  ;;  %v3254_v23 = vadd.f32 1.0, %v5690_v14 }
 0x6c7   :  { %5707 = vtanh.f32 %v3301_v24  ;;  %v3304_v12 = vadd.f32 %v3296_v10, %v7069_v35  ;;  %v5694_v26 = vpop.eup %5693  ;;  %v3255_v22 = vadd.f32 1.0, %v5692_v59 }
 0x6c8   :  { %5709 = vrcp.f32 %v3251_v51  ;;  %v5696_v54 = vpop.eup %5695  ;;  %v3256_v13 = vadd.f32 1.0, %v5694_v26 }
 0x6c9   :  { %5711 = vrcp.f32 %v3252_v41  ;;  %v5698_v36 = vpop.eup %5697 }
 0x6ca   :  { %5713 = vrcp.f32 %v3253_v15 }
 0x6cb   :  { %5715 = vtanh.f32 %v3302_v33 }
 0x6cc   :  { %5717 = vtanh.f32 %v3303_v61 }
 0x6cd   :  { %v5700_v28 = vpop.eup %5699  ;;  %5719 = vtanh.f32 %v3304_v12 }
 0x6ce   :  { %v5702_v29 = vpop.eup %5701  ;;  %v3321_v60 = vrot.slane %v5700_v28, 1  ;;  %5721 = vrcp.f32 %v3254_v23 }
 0x6cf   :  { %v5704_v0 = vpop.eup %5703  ;;  %v3322_v43 = vrot.slane %v5702_v29, 1  ;;  %5723 = vrcp.f32 %v3255_v22 }
 0x6d0   :  { %v5706_v51 = vpop.eup %5705  ;;  %v3323_v19 = vrot.slane %v5704_v0, 1  ;;  %v3337_v40 = vsub.f32 %v6714_v49, %v3321_v60  ;;  %5725 = vrcp.f32 %v3256_v13 }
 0x6d1   :  { %v5708_v41 = vpop.eup %5707  ;;  %v3324_v10 = vrot.slane %v5706_v51, 1  ;;  %v3338_v24 = vsub.f32 %v6716_v53, %v3322_v43 }
 0x6d2   :  { %v5710_v15 = vpop.eup %5709  ;;  %v3325_v33 = vrot.slane %v5708_v41, 1  ;;  %v3339_v14 = vsub.f32 %v6719_v34, %v3323_v19  ;;  %v3353_v61 = vrot.slane %v3337_v40, 7 }
 0x6d3   :  { %v5712_v59 = vpop.eup %5711  ;;  %v3340_v12 = vsub.f32 %v6722_v50, %v3324_v10  ;;  %v3354_v26 = vrot.slane %v3338_v24, 7 }
 0x6d4   :  { %v5714_v35 = vpop.eup %5713  ;;  %v3341_v18 = vsub.f32 %v6727_v38, %v3325_v33  ;;  %v3355_v49 = vrot.slane %v3339_v14, 7  ;;  %v3369_v60 = vmul.f32 %v5696_v54, %v3353_v61 }
 0x6d5   :  { %v5716_v23 = vpop.eup %5715  ;;  %v3356_v11 = vrot.slane %v3340_v12, 7  ;;  %v3370_v32 = vmul.f32 %v5698_v36, %v3354_v26 }
 0x6d6   :  { %v5718_v53 = vpop.eup %5717  ;;  %v3326_v43 = vrot.slane %v5716_v23, 1  ;;  %v3357_v22 = vrot.slane %v3341_v18, 7  ;;  %v3371_v27 = vmul.f32 %v5710_v15, %v3355_v49  ;;  %v6814_v31 = vadd.f32 %v5700_v28, %v3369_v60 }
 0x6d7   :  { %v5720_v34 = vpop.eup %5719  ;;  %v3327_v19 = vrot.slane %v5718_v53, 1  ;;  %v3372_v13 = vmul.f32 %v5712_v59, %v3356_v11  ;;  %v6816_v40 = vadd.f32 %v5702_v29, %v3370_v32 }
 0x6d8   :  { %v3328_v50 = vrot.slane %v5720_v34, 1  ;;  %v3342_v10 = vsub.f32 %v6734_v21, %v3326_v43  ;;  %v3373_v38 = vmul.f32 %v5714_v35, %v3357_v22  ;;  %v6819_v24 = vadd.f32 %v5704_v0, %v3371_v27  ;;  %v5722_v29 = vpop.eup %5721 }
 0x6d9   :  { %v3343_v54 = vsub.f32 %v6736_v25, %v3327_v19  ;;  %v6822_v36 = vadd.f32 %v5706_v51, %v3372_v13  ;;  %v3393_v18 = vrot.slane %v6814_v31, 5  ;;  %v3394_v28 = vrot.slane %v6816_v40, 4  ;;  %v5724_v25 = vpop.eup %5723 }
 0x6da   :  { %v3344_v15 = vsub.f32 %v6740_v52, %v3328_v50  ;;  %v3358_v33 = vrot.slane %v3342_v10, 7  ;;  %v6827_v11 = vadd.f32 %v5708_v41, %v3373_v38  ;;  %v3396_v32 = vrot.slane %v6819_v24, 3  ;;  %v5726_v59 = vpop.eup %5725 }
 0x6db   :  { %v3359_v21 = vrot.slane %v3343_v54, 7  ;;  %v3395_v27 = vsel %vm881_vm2, %v3394_v28, %v3393_v18  ;;  %v3398_v35 = vrot.slane %v6822_v36, 2 }
 0x6dc   :  { %v3360_v0 = vrot.slane %v3344_v15, 7  ;;  %v3374_v51 = vmul.f32 %v5722_v29, %v3358_v33  ;;  %v3397_v14 = vsel %vm884_vm3, %v3396_v32, %v3395_v27  ;;  %v3400_v61 = vrot.slane %v6827_v11, 1 }
 0x6dd   :  { %v3375_v52 = vmul.f32 %v5724_v25, %v3359_v21  ;;  %v3399_v41 = vsel %vm887_vm4, %v3398_v35, %v3397_v14 }
 0x6de   :  { %v3376_v12 = vmul.f32 %v5726_v59, %v3360_v0  ;;  %v6835_v26 = vadd.f32 %v5716_v23, %v3374_v51  ;;  %v3401_v49 = vsel %vm890_vm5, %v3400_v61, %v3399_v41 }
 0x6df   :  { %v6838_v60 = vadd.f32 %v5718_v53, %v3375_v52 }
 0x6e0   :  { %v6840_v43 = vadd.f32 %v5720_v34, %v3376_v12  ;;  %v3402_v22 = vsel %vm893_vm6, %v6835_v26, %v3401_v49 }
 0x6e1   :  { %v3403_v19 = vrot.slane %v6838_v60, 7 }
 0x6e2   :  { %v3405_v13 = vrot.slane %v6840_v43, 6 }
 0x6e3   :  { %v3404_v50 = vsel %vm896_vm7, %v3403_v19, %v3402_v22 }
 0x6e4   :  { %v3406_v10 = vsel %vm899_vm8, %v3405_v13, %v3404_v50 }
 0x6e5   :  { %5013 = vmatmul.mubr.msk.f32.vlgmr.msra.gmra.mrb[32].mxu0 %vm66_vm0, %v3406_v10  ;;  %5024 = vmatmul.mubr.msk.f32.vlgmr.msra.gmra.mrb[28].mxu1 %vm66_vm0, %v3406_v10 }
 0x6e6   :  { %5216 = vmatpush3.bf16.msra.mxu0 %v6114_v42  ;;  %5034 = vmatprep.mubr.msk.f32.mxu0 %vm5990_vm1, %v7043_v16 }
 0x6e7   :  { %5217 = vmatprep.subr.bf16.mxu0 %v7044_v17  ;;  %5222 = vmatpush3.bf16.msra.mxu1 %v6082_v20 }
 0x6e8   :  { %5223 = vmatprep.subr.bf16.mxu1 %v7044_v17  ;;  %5045 = vmatprep.mubr.msk.f32.mxu1 %vm5990_vm1, %v7043_v16 }
 0x6ea   :  { %5219 = vmatpush3.bf16.msra.mxu0 %v6127_v46 }
 0x6eb   :  { %5226 = vmatprep.subr.bf16.mxu0 %v7044_v17  ;;  %5225 = vmatpush3.bf16.msra.mxu1 %v6090_v30 }
 0x6ec   :  { %5232 = vmatprep.subr.bf16.mxu1 %v7044_v17 }
 0x6ed   :  { %5035 = vmatmul.mubr.msk.f32.vlgmr.msra.gmra.mrb[34].mxu0 %vm66_vm0, %v3406_v10 }
 0x6ee   :  { %5228 = vmatpush3.bf16.msra.mxu0 %v6110_v39  ;;  %5056 = vmatprep.mubr.msk.f32.mxu0 %vm5990_vm1, %v7043_v16 }
 0x6ef   :  { %5229 = vmatprep.subr.bf16.mxu0 %v7044_v17 }
 0x6f2   :  { %5231 = vmatpush3.bf16.msra.mxu0 %v6119_v45 }
 0x7b8   :  { %v3475_v20 = vpop.f32.mrb[32].mxu0  ;;  %v6868_v23 = vpop.f32.mrb[28].mxu1 }
 0x7b9   :  { %v3620_v53 = vrot.slane %v3475_v20, 2  ;;  %v3621_v34 = vrot.slane %v3475_v20, 3  ;;  %v3622_v38 = vrot.slane %v3475_v20, 4  ;;  %v3623_v30 = vrot.slane %v3475_v20, 5  ;;  %v5014_v54 = vpop.f32.mrb[33].mxu0  ;;  %v5025_v18 = vpop.f32.mrb[29].mxu1 }
 0x7ba   :  { %v3624_v28 = vrot.slane %v3475_v20, 6  ;;  %v3625_v15 = vrot.slane %v3475_v20, 7  ;;  %v3626_v33 = vrot.slane %v3475_v20, 1  ;;  %v3641_v39 = vadd.f32 %v3475_v20, %v6190_v8 }
 0x7bb   :  { %v3635_v32 = vadd.f32 %v3620_v53, %v6178_v2  ;;  %v3636_v29 = vadd.f32 %v3621_v34, %v6176_v1  ;;  %v3637_v45 = vadd.f32 %v3622_v38, %v6184_v5  ;;  %v3638_v21 = vadd.f32 %v3623_v30, %v6180_v3 }
 0x7bc   :  { %v3639_v27 = vadd.f32 %v3624_v28, %v6182_v4  ;;  %v3640_v35 = vadd.f32 %v3625_v15, %v6186_v6  ;;  %v4561_v25 = vmul.f32 -1.442695, %v3641_v39  ;;  %v3642_v0 = vadd.f32 %v3626_v33, %v6188_v7 }
 0x7bd   :  { %v4555_v51 = vmul.f32 -1.442695, %v3635_v32  ;;  %v4556_v14 = vmul.f32 -1.442695, %v3636_v29  ;;  %v4557_v61 = vmul.f32 -1.442695, %v3637_v45 }
 0x7be   :  { %v4558_v59 = vmul.f32 -1.442695, %v3638_v21  ;;  %v4559_v52 = vmul.f32 -1.442695, %v3639_v27  ;;  %5727 = vpow2.f32 %v4561_v25  ;;  %v4560_v41 = vmul.f32 -1.442695, %v3640_v35 }
 0x7bf   :  { %5729 = vpow2.f32 %v4555_v51  ;;  %v3692_v12 = vrot.slane %v6868_v23, 2  ;;  %v3693_v49 = vrot.slane %v6868_v23, 3  ;;  %v3694_v22 = vrot.slane %v6868_v23, 4 }
 0x7c0   :  { %5731 = vpow2.f32 %v4556_v14  ;;  %v3695_v19 = vrot.slane %v6868_v23, 5  ;;  %v3696_v13 = vrot.slane %v6868_v23, 6  ;;  %v3615_v50 = vpop.f32.mrb[34].mxu0  ;;  %v4562_v10 = vmul.f32 -1.442695, %v3642_v0 }
 0x7c1   :  { %5733 = vpow2.f32 %v4557_v61  ;;  %v3707_v20 = vadd.f32 %v3692_v12, %v6221_v58  ;;  %v5036_v53 = vpop.f32.mrb[35].mxu0  ;;  %v3708_v34 = vadd.f32 %v3693_v49, %v6218_v57  ;;  %v3709_v38 = vadd.f32 %v3694_v22, %v6227_v63 }
 0x7c2   :  { %5735 = vpow2.f32 %v4558_v59  ;;  %v3710_v30 = vadd.f32 %v3695_v19, %v6224_v62  ;;  %v3711_v54 = vadd.f32 %v3696_v13, %v6236_v47  ;;  %v3697_v35 = vrot.slane %v6868_v23, 7 }
 0x7c3   :  { %5737 = vpow2.f32 %v4559_v52  ;;  %v4563_v18 = vmul.f32 -1.442695, %v3707_v20  ;;  %v4564_v28 = vmul.f32 -1.442695, %v3708_v34  ;;  %v4565_v15 = vmul.f32 -1.442695, %v3709_v38 }
 0x7c4   :  { %5739 = vpow2.f32 %v4560_v41  ;;  %v4566_v33 = vmul.f32 -1.442695, %v3710_v30  ;;  %v4567_v39 = vmul.f32 -1.442695, %v3711_v54  ;;  %v3698_v61 = vrot.slane %v6868_v23, 1 }
 0x7c5   :  { %5741 = vpow2.f32 %v4562_v10  ;;  %v3712_v49 = vadd.f32 %v3697_v35, %v6230_v9  ;;  %v3713_v13 = vadd.f32 %v6868_v23, %v6245_v55  ;;  %v3616_v38 = vadd.f32 %v6798_v44, %v3615_v50 }
 0x7c6   :  { %5743 = vpow2.f32 %v4563_v18  ;;  %v3714_v53 = vadd.f32 %v3698_v61, %v6239_v48 }
 0x7c7   :  { %5745 = vpow2.f32 %v4564_v28  ;;  %v4568_v54 = vmul.f32 -1.442695, %v3712_v49  ;;  %v4569_v28 = vmul.f32 -1.442695, %v3713_v13 }
 0x7c8   :  { %v5728_v32 = vpop.eup %5727  ;;  %5747 = vpow2.f32 %v4565_v15 }
 0x7c9   :  { %v5730_v29 = vpop.eup %5729  ;;  %v3673_v45 = vadd.f32 1.0, %v5728_v32  ;;  %5749 = vpow2.f32 %v4566_v33  ;;  %v4570_v33 = vmul.f32 -1.442695, %v3714_v53  ;;  %v7070_v53 = vld [vmem:[#allocation14_spill] sm:$0xff] }
 0x7ca   :  { %v5732_v21 = vpop.eup %5731  ;;  %v3667_v27 = vadd.f32 1.0, %v5730_v29  ;;  %5751 = vpow2.f32 %v4567_v39  ;;  %v3764_v29 = vrot.slane %v3616_v38, 2 }
 0x7cb   :  { %v5734_v25 = vpop.eup %5733  ;;  %v3668_v0 = vadd.f32 1.0, %v5732_v21  ;;  %5753 = vrcp.f32 %v3673_v45  ;;  %v3765_v21 = vrot.slane %v3616_v38, 3 }
 0x7cc   :  { %v5736_v51 = vpop.eup %5735  ;;  %v3669_v14 = vadd.f32 1.0, %v5734_v25  ;;  %5755 = vrcp.f32 %v3667_v27  ;;  %v3766_v25 = vrot.slane %v3616_v38, 4 }
 0x7cd   :  { %v5738_v59 = vpop.eup %5737  ;;  %v3670_v52 = vadd.f32 1.0, %v5736_v51  ;;  %5757 = vrcp.f32 %v3668_v0  ;;  %v3767_v51 = vrot.slane %v3616_v38, 5 }
 0x7ce   :  { %v5740_v41 = vpop.eup %5739  ;;  %v3671_v12 = vadd.f32 1.0, %v5738_v59  ;;  %5759 = vrcp.f32 %v3669_v14  ;;  %v3768_v59 = vrot.slane %v3616_v38, 6 }
 0x7cf   :  { %v5742_v22 = vpop.eup %5741  ;;  %v3672_v19 = vadd.f32 1.0, %v5740_v41  ;;  %5761 = vrcp.f32 %v3670_v52 }
 0x7d0   :  { %v5744_v10 = vpop.eup %5743  ;;  %v3674_v20 = vadd.f32 1.0, %v5742_v22  ;;  %5763 = vrcp.f32 %v3671_v12 }
 0x7d1   :  { %v5746_v34 = vpop.eup %5745  ;;  %5765 = vrcp.f32 %v3672_v19  ;;  %v3739_v32 = vadd.f32 1.0, %v5744_v10  ;;  %v3769_v19 = vrot.slane %v3616_v38, 7  ;;  %v3770_v10 = vrot.slane %v3616_v38, 1 }
 0x7d2   :  { %v5748_v30 = vpop.eup %5747  ;;  %5767 = vrcp.f32 %v3674_v20  ;;  %v3740_v45 = vadd.f32 1.0, %v5746_v34 }
 0x7d3   :  { %v5750_v18 = vpop.eup %5749  ;;  %5769 = vpow2.f32 %v4568_v54 }
 0x7d4   :  { %v5752_v15 = vpop.eup %5751  ;;  %5771 = vpow2.f32 %v4569_v28  ;;  %v3741_v28 = vadd.f32 1.0, %v5748_v30  ;;  %v7075_v30 = vld [vmem:[#allocation18_spill] sm:$0xff] }
 0x7d5   :  { %v5754_v39 = vpop.eup %5753  ;;  %5773 = vpow2.f32 %v4570_v33 }
 0x7d6   :  { %v5756_v23 = vpop.eup %5755  ;;  %v3785_v27 = vmul.f32 %v5754_v39, %v3616_v38  ;;  %5775 = vrcp.f32 %v3739_v32  ;;  %v7071_v39 = vld [vmem:[#allocation13_spill] sm:$0xff] }
 0x7d7   :  { %v5758_v35 = vpop.eup %5757  ;;  %v3779_v0 = vmul.f32 %v5756_v23, %v3764_v29  ;;  %5777 = vrcp.f32 %v3740_v45  ;;  %v3742_v29 = vadd.f32 1.0, %v5750_v18 }
 0x7d8   :  { %v5760_v50 = vpop.eup %5759  ;;  %v3780_v14 = vmul.f32 %v5758_v35, %v3765_v21  ;;  %v7072_v21 = vld [vmem:[#allocation15_spill] sm:$0xff]  ;;  %v3743_v35 = vadd.f32 1.0, %v5752_v15 }
 0x7d9   :  { %v5762_v61 = vpop.eup %5761  ;;  %v3781_v52 = vmul.f32 %v5760_v50, %v3766_v25  ;;  %v3787_v41 = vadd.f32 %v3779_v0, %v7059_v37  ;;  %v7073_v25 = vld [vmem:[#allocation16_spill] sm:$0xff]  ;;  %v7074_v50 = vld [vmem:[#allocation17_spill] sm:$0xff] }
 0x7da   :  { %v5764_v12 = vpop.eup %5763  ;;  %v3782_v49 = vmul.f32 %v5762_v61, %v3767_v51  ;;  %v3788_v22 = vadd.f32 %v3780_v14, %v6274_v56  ;;  %v3793_v51 = vadd.f32 %v3785_v27, %v7074_v50 }
 0x7db   :  { %v5766_v13 = vpop.eup %5765  ;;  %v3783_v20 = vmul.f32 %v5764_v12, %v3768_v59  ;;  %v3789_v34 = vadd.f32 %v3781_v52, %v7070_v53  ;;  %5779 = vtanh.f32 %v3787_v41 }
 0x7dc   :  { %v5768_v54 = vpop.eup %5767  ;;  %v3784_v33 = vmul.f32 %v5766_v13, %v3769_v19  ;;  %v3790_v32 = vadd.f32 %v3782_v49, %v7071_v39  ;;  %5781 = vtanh.f32 %v3788_v22 }
 0x7dd   :  { %v3786_v23 = vmul.f32 %v5768_v54, %v3770_v10  ;;  %v3791_v45 = vadd.f32 %v3783_v20, %v7072_v21  ;;  %5783 = vtanh.f32 %v3789_v34  ;;  %v5770_v38 = vpop.eup %5769 }
 0x7de   :  { %5785 = vtanh.f32 %v3790_v32  ;;  %v3792_v0 = vadd.f32 %v3784_v33, %v7073_v25  ;;  %v5772_v14 = vpop.eup %5771  ;;  %v3744_v15 = vadd.f32 1.0, %v5770_v38 }
 0x7df   :  { %5787 = vtanh.f32 %v3791_v45  ;;  %v3794_v61 = vadd.f32 %v3786_v23, %v7075_v30  ;;  %v5774_v59 = vpop.eup %5773  ;;  %v3745_v49 = vadd.f32 1.0, %v5772_v14 }
 0x7e0   :  { %5789 = vrcp.f32 %v3741_v28  ;;  %v5776_v18 = vpop.eup %5775  ;;  %v3746_v13 = vadd.f32 1.0, %v5774_v59 }
 0x7e1   :  { %5791 = vrcp.f32 %v3742_v29  ;;  %v5778_v52 = vpop.eup %5777 }
 0x7e2   :  { %5793 = vrcp.f32 %v3743_v35 }
 0x7e3   :  { %5795 = vtanh.f32 %v3792_v0 }
 0x7e4   :  { %5797 = vtanh.f32 %v3793_v51 }
 0x7e5   :  { %v5780_v41 = vpop.eup %5779  ;;  %5799 = vtanh.f32 %v3794_v61 }
 0x7e6   :  { %v5782_v12 = vpop.eup %5781  ;;  %v3811_v22 = vrot.slane %v5780_v41, 1  ;;  %5801 = vrcp.f32 %v3744_v15 }
 0x7e7   :  { %v5784_v19 = vpop.eup %5783  ;;  %v3812_v10 = vrot.slane %v5782_v12, 1  ;;  %5803 = vrcp.f32 %v3745_v49 }
 0x7e8   :  { %v5786_v27 = vpop.eup %5785  ;;  %v3813_v20 = vrot.slane %v5784_v19, 1  ;;  %v3827_v34 = vsub.f32 %v6814_v31, %v3811_v22  ;;  %5805 = vrcp.f32 %v3746_v13 }
 0x7e9   :  { %v5788_v54 = vpop.eup %5787  ;;  %v3814_v28 = vrot.slane %v5786_v27, 1  ;;  %v3828_v33 = vsub.f32 %v6816_v40, %v3812_v10 }
 0x7ea   :  { %v5790_v32 = vpop.eup %5789  ;;  %v3815_v29 = vrot.slane %v5788_v54, 1  ;;  %v3829_v23 = vsub.f32 %v6819_v24, %v3813_v20  ;;  %v3843_v45 = vrot.slane %v3827_v34, 7 }
 0x7eb   :  { %v5792_v35 = vpop.eup %5791  ;;  %v3830_v0 = vsub.f32 %v6822_v36, %v3814_v28  ;;  %v3844_v38 = vrot.slane %v3828_v33, 7 }
 0x7ec   :  { %v5794_v51 = vpop.eup %5793  ;;  %v3831_v14 = vsub.f32 %v6827_v11, %v3815_v29  ;;  %v3845_v31 = vrot.slane %v3829_v23, 7  ;;  %v3859_v61 = vmul.f32 %v5776_v18, %v3843_v45 }
 0x7ed   :  { %v5796_v59 = vpop.eup %5795  ;;  %v3846_v15 = vrot.slane %v3830_v0, 7  ;;  %v3860_v22 = vmul.f32 %v5778_v52, %v3844_v38 }
 0x7ee   :  { %v5798_v40 = vpop.eup %5797  ;;  %v3816_v10 = vrot.slane %v5796_v59, 1  ;;  %v3847_v49 = vrot.slane %v3831_v14, 7  ;;  %v3861_v30 = vmul.f32 %v5790_v32, %v3845_v31  ;;  %v6908_v50 = vadd.f32 %v5780_v41, %v3859_v61 }
 0x7ef   :  { %v5800_v24 = vpop.eup %5799  ;;  %v3817_v20 = vrot.slane %v5798_v40, 1  ;;  %v3862_v13 = vmul.f32 %v5792_v35, %v3846_v15  ;;  %v6910_v34 = vadd.f32 %v5782_v12, %v3860_v22 }
 0x7f0   :  { %v3818_v36 = vrot.slane %v5800_v24, 1  ;;  %v3832_v28 = vsub.f32 %v6835_v26, %v3816_v10  ;;  %v3863_v11 = vmul.f32 %v5794_v51, %v3847_v49  ;;  %v6913_v33 = vadd.f32 %v5784_v19, %v3861_v30  ;;  %v5802_v35 = vpop.eup %5801 }
 0x7f1   :  { %v3833_v18 = vsub.f32 %v6838_v60, %v3817_v20  ;;  %v6916_v52 = vadd.f32 %v5786_v27, %v3862_v13  ;;  %v3883_v29 = vrot.slane %v6908_v50, 6  ;;  %v3884_v41 = vrot.slane %v6910_v34, 5  ;;  %v5804_v60 = vpop.eup %5803 }
 0x7f2   :  { %v3834_v32 = vsub.f32 %v6840_v43, %v3818_v36  ;;  %v3848_v23 = vrot.slane %v3832_v28, 7  ;;  %v6921_v45 = vadd.f32 %v5788_v54, %v3863_v11  ;;  %v3886_v12 = vrot.slane %v6913_v33, 4  ;;  %v5806_v51 = vpop.eup %5805 }
 0x7f3   :  { %v3849_v26 = vrot.slane %v3833_v18, 7  ;;  %v3885_v30 = vsel %vm881_vm2, %v3884_v41, %v3883_v29  ;;  %v3888_v19 = vrot.slane %v6916_v52, 3 }
 0x7f4   :  { %v3850_v27 = vrot.slane %v3834_v32, 7  ;;  %v3864_v0 = vmul.f32 %v5802_v35, %v3848_v23  ;;  %v3887_v38 = vsel %vm884_vm3, %v3886_v12, %v3885_v30  ;;  %v3890_v54 = vrot.slane %v6921_v45, 2 }
 0x7f5   :  { %v3865_v14 = vmul.f32 %v5804_v60, %v3849_v26  ;;  %v3889_v43 = vsel %vm887_vm4, %v3888_v19, %v3887_v38 }
 0x7f6   :  { %v3866_v31 = vmul.f32 %v5806_v51, %v3850_v27  ;;  %v6929_v61 = vadd.f32 %v5796_v59, %v3864_v0  ;;  %v3891_v22 = vsel %vm890_vm5, %v3890_v54, %v3889_v43 }
 0x7f7   :  { %v6931_v15 = vadd.f32 %v5798_v40, %v3865_v14 }
 0x7f8   :  { %v6934_v10 = vadd.f32 %v5800_v24, %v3866_v31  ;;  %v3892_v49 = vrot.slane %v6929_v61, 1 }
 0x7fa   :  { %v3893_v20 = vsel %vm893_vm6, %v3892_v49, %v3891_v22  ;;  %v3895_v13 = vrot.slane %v6934_v10, 7 }
 0x7fb   :  { %v3894_v36 = vsel %vm896_vm7, %v6931_v15, %v3893_v20 }
 0x7fc   :  { %v3896_v28 = vsel %vm899_vm8, %v3895_v13, %v3894_v36 }
 0x7fd   :  { %5046 = vmatmul.mubr.msk.f32.vlgmr.msra.gmra.mrb[30].mxu1 %vm66_vm0, %v3896_v28  ;;  %5057 = vmatmul.mubr.msk.f32.vlgmr.msra.gmra.mrb[36].mxu0 %vm66_vm0, %v3896_v28 }
 0x7fe   :  { %5234 = vmatpush3.bf16.msra.mxu1 %v6114_v42  ;;  %5067 = vmatprep.mubr.msk.f32.mxu1 %vm5990_vm1, %v7043_v16 }
 0x7ff   :  { %5235 = vmatprep.subr.bf16.mxu1 %v7044_v17 }
 0x802   :  { %5237 = vmatpush3.bf16.msra.mxu1 %v6127_v46 }
 0x805   :  { %5068 = vmatmul.mubr.msk.f32.vlgmr.msra.gmra.mrb[32].mxu1 %vm66_vm0, %v3896_v28 }
 0x8d0   :  { %v3965_v59 = vpop.f32.mrb[30].mxu1  ;;  %v6950_v40 = vpop.f32.mrb[36].mxu0 }
 0x8d1   :  { %v4110_v24 = vrot.slane %v3965_v59, 1  ;;  %v4111_v11 = vrot.slane %v3965_v59, 2  ;;  %v4112_v18 = vrot.slane %v3965_v59, 3  ;;  %v4113_v29 = vrot.slane %v3965_v59, 4  ;;  %v5047_v41 = vpop.f32.mrb[31].mxu1  ;;  %v5058_v32 = vpop.f32.mrb[37].mxu0 }
 0x8d2   :  { %v4114_v23 = vrot.slane %v3965_v59, 5  ;;  %v4115_v42 = vrot.slane %v3965_v59, 6  ;;  %v4116_v12 = vrot.slane %v3965_v59, 7  ;;  %v4132_v16 = vadd.f32 %v3965_v59, %v6188_v7 }
 0x8d3   :  { %v4125_v17 = vadd.f32 %v4110_v24, %v6178_v2  ;;  %v4126_v46 = vadd.f32 %v4111_v11, %v6176_v1  ;;  %v4127_v35 = vadd.f32 %v4112_v18, %v6184_v5  ;;  %v4128_v26 = vadd.f32 %v4113_v29, %v6180_v3 }
 0x8d4   :  { %v4129_v30 = vadd.f32 %v4114_v23, %v6182_v4  ;;  %v4130_v19 = vadd.f32 %v4115_v42, %v6186_v6  ;;  %v4581_v60 = vmul.f32 -1.442695, %v4132_v16  ;;  %v4131_v27 = vadd.f32 %v4116_v12, %v6190_v8 }
 0x8d5   :  { %v4574_v0 = vmul.f32 -1.442695, %v4125_v17  ;;  %v4575_v38 = vmul.f32 -1.442695, %v4126_v46  ;;  %v4576_v51 = vmul.f32 -1.442695, %v4127_v35 }
 0x8d6   :  { %v4577_v14 = vmul.f32 -1.442695, %v4128_v26  ;;  %v4578_v7 = vmul.f32 -1.442695, %v4129_v30  ;;  %5807 = vpow2.f32 %v4581_v60  ;;  %v4579_v2 = vmul.f32 -1.442695, %v4130_v19 }
 0x8d7   :  { %5809 = vpow2.f32 %v4574_v0  ;;  %v4182_v1 = vrot.slane %v6950_v40, 1  ;;  %v4183_v5 = vrot.slane %v6950_v40, 2  ;;  %v4184_v3 = vrot.slane %v6950_v40, 3 }
 0x8d8   :  { %5811 = vpow2.f32 %v4575_v38  ;;  %v4185_v4 = vrot.slane %v6950_v40, 4  ;;  %v4186_v6 = vrot.slane %v6950_v40, 5  ;;  %v4105_v8 = vpop.f32.mrb[32].mxu1  ;;  %v4580_v43 = vmul.f32 -1.442695, %v4131_v27 }
 0x8d9   :  { %5813 = vpow2.f32 %v4576_v51  ;;  %v4197_v54 = vadd.f32 %v4182_v1, %v6221_v58  ;;  %v5069_v31 = vpop.f32.mrb[33].mxu1  ;;  %v4198_v22 = vadd.f32 %v4183_v5, %v6218_v57  ;;  %v4199_v49 = vadd.f32 %v4184_v3, %v6227_v63 }
 0x8da   :  { %5815 = vpow2.f32 %v4577_v14  ;;  %v4200_v20 = vadd.f32 %v4185_v4, %v6224_v62  ;;  %v4201_v13 = vadd.f32 %v4186_v6, %v6236_v47  ;;  %v4187_v62 = vrot.slane %v6950_v40, 6 }
 0x8db   :  { %5817 = vpow2.f32 %v4578_v7  ;;  %v4582_v36 = vmul.f32 -1.442695, %v4197_v54  ;;  %v4583_v28 = vmul.f32 -1.442695, %v4198_v22  ;;  %v4584_v59 = vmul.f32 -1.442695, %v4199_v49 }
 0x8dc   :  { %5819 = vpow2.f32 %v4579_v2  ;;  %v4585_v24 = vmul.f32 -1.442695, %v4200_v20  ;;  %v4586_v11 = vmul.f32 -1.442695, %v4201_v13  ;;  %v4188_v32 = vrot.slane %v6950_v40, 7 }
 0x8dd   :  { %5821 = vpow2.f32 %v4580_v43  ;;  %v4202_v35 = vadd.f32 %v4187_v62, %v6230_v9  ;;  %v4204_v0 = vadd.f32 %v6950_v40, %v6239_v48  ;;  %v4106_v51 = vadd.f32 %v6798_v44, %v4105_v8 }
 0x8de   :  { %5823 = vpow2.f32 %v4582_v36  ;;  %v4203_v19 = vadd.f32 %v4188_v32, %v6245_v55 }
 0x8df   :  { %5825 = vpow2.f32 %v4583_v28  ;;  %v4587_v7 = vmul.f32 -1.442695, %v4202_v35  ;;  %v4589_v5 = vmul.f32 -1.442695, %v4204_v0  ;;  %v4254_v55 = vrot.slane %v4106_v51, 1  ;;  %v7077_v35 = vld [vmem:[#allocation18_spill] sm:$0xff] }
 0x8e0   :  { %v5808_v58 = vpop.eup %5807  ;;  %5827 = vpow2.f32 %v4584_v59  ;;  %v4588_v9 = vmul.f32 -1.442695, %v4203_v19  ;;  %v4255_v54 = vrot.slane %v4106_v51, 2  ;;  %v4256_v40 = vrot.slane %v4106_v51, 3 }
 0x8e1   :  { %v5810_v18 = vpop.eup %5809  ;;  %v4164_v57 = vadd.f32 1.0, %v5808_v58  ;;  %5829 = vpow2.f32 %v4585_v24  ;;  %v4257_v8 = vrot.slane %v4106_v51, 4  ;;  %v4258_v13 = vrot.slane %v4106_v51, 5 }
 0x8e2   :  { %v5812_v63 = vpop.eup %5811  ;;  %v4157_v29 = vadd.f32 1.0, %v5810_v18  ;;  %5831 = vpow2.f32 %v4586_v11  ;;  %v4259_v24 = vrot.slane %v4106_v51, 6 }
 0x8e3   :  { %v5814_v47 = vpop.eup %5813  ;;  %v4158_v41 = vadd.f32 1.0, %v5812_v63  ;;  %5833 = vrcp.f32 %v4164_v57 }
 0x8e4   :  { %v5816_v23 = vpop.eup %5815  ;;  %v4159_v42 = vadd.f32 1.0, %v5814_v47  ;;  %5835 = vrcp.f32 %v4157_v29  ;;  %v4260_v29 = vrot.slane %v4106_v51, 7 }
 0x8e5   :  { %v5818_v12 = vpop.eup %5817  ;;  %v4160_v16 = vadd.f32 1.0, %v5816_v23  ;;  %5837 = vrcp.f32 %v4158_v41 }
 0x8e6   :  { %v5820_v17 = vpop.eup %5819  ;;  %v4161_v46 = vadd.f32 1.0, %v5818_v12  ;;  %5839 = vrcp.f32 %v4159_v42 }
 0x8e7   :  { %v5822_v26 = vpop.eup %5821  ;;  %v4162_v30 = vadd.f32 1.0, %v5820_v17  ;;  %5841 = vrcp.f32 %v4160_v16 }
 0x8e8   :  { %v5824_v60 = vpop.eup %5823  ;;  %v4163_v27 = vadd.f32 1.0, %v5822_v26  ;;  %5843 = vrcp.f32 %v4161_v46 }
 0x8e9   :  { %v5826_v38 = vpop.eup %5825  ;;  %5845 = vrcp.f32 %v4162_v30  ;;  %v4229_v4 = vadd.f32 1.0, %v5824_v60 }
 0x8ea   :  { %v5828_v14 = vpop.eup %5827  ;;  %5847 = vrcp.f32 %v4163_v27  ;;  %v4230_v43 = vadd.f32 1.0, %v5826_v38 }
 0x8eb   :  { %v5830_v2 = vpop.eup %5829  ;;  %5849 = vpow2.f32 %v4587_v7  ;;  %v4231_v47 = vadd.f32 1.0, %v5828_v14 }
 0x8ec   :  { %v5832_v1 = vpop.eup %5831  ;;  %5851 = vpow2.f32 %v4588_v9  ;;  %v4232_v23 = vadd.f32 1.0, %v5830_v2 }
 0x8ed   :  { %v5834_v3 = vpop.eup %5833  ;;  %5853 = vpow2.f32 %v4589_v5  ;;  %v4233_v12 = vadd.f32 1.0, %v5832_v1 }
 0x8ee   :  { %v5836_v6 = vpop.eup %5835  ;;  %v4276_v31 = vmul.f32 %v5834_v3, %v4106_v51  ;;  %5855 = vrcp.f32 %v4229_v4 }
 0x8ef   :  { %v5838_v48 = vpop.eup %5837  ;;  %v4269_v22 = vmul.f32 %v5836_v6, %v4254_v55  ;;  %5857 = vrcp.f32 %v4230_v43 }
 0x8f0   :  { %v5840_v44 = vpop.eup %5839  ;;  %v4270_v49 = vmul.f32 %v5838_v48, %v4255_v54  ;;  %v4284_v26 = vadd.f32 %v4276_v31, %v7077_v35 }
 0x8f1   :  { %v5842_v20 = vpop.eup %5841  ;;  %v4271_v36 = vmul.f32 %v5840_v44, %v4256_v40  ;;  %v4277_v28 = vadd.f32 %v4269_v22, %v7059_v37 }
 0x8f2   :  { %v5844_v59 = vpop.eup %5843  ;;  %v4272_v11 = vmul.f32 %v5842_v20, %v4257_v8  ;;  %v4278_v58 = vadd.f32 %v4270_v49, %v6274_v56 }
 0x8f3   :  { %v5846_v18 = vpop.eup %5845  ;;  %v4273_v57 = vmul.f32 %v5844_v59, %v4258_v13  ;;  %v4279_v63 = vadd.f32 %v4271_v36, %v7070_v53  ;;  %5859 = vtanh.f32 %v4277_v28  ;;  %v7076_v53 = vld [vmem:[#allocation17_spill] sm:$0xff] }
 0x8f4   :  { %v5848_v62 = vpop.eup %5847  ;;  %v4274_v41 = vmul.f32 %v5846_v18, %v4259_v24  ;;  %v4280_v32 = vadd.f32 %v4272_v11, %v7071_v39  ;;  %5861 = vtanh.f32 %v4278_v58 }
 0x8f5   :  { %v4275_v37 = vmul.f32 %v5848_v62, %v4260_v29  ;;  %v4281_v42 = vadd.f32 %v4273_v57, %v7072_v21  ;;  %5863 = vtanh.f32 %v4279_v63  ;;  %v5850_v16 = vpop.eup %5849 }
 0x8f6   :  { %5865 = vtanh.f32 %v4280_v32  ;;  %v4282_v56 = vadd.f32 %v4274_v41, %v7073_v25  ;;  %v5852_v46 = vpop.eup %5851  ;;  %v4234_v60 = vadd.f32 1.0, %v5850_v16 }
 0x8f7   :  { %5867 = vtanh.f32 %v4281_v42  ;;  %v4283_v17 = vadd.f32 %v4275_v37, %v7076_v53  ;;  %v5854_v39 = vpop.eup %5853  ;;  %v4235_v25 = vadd.f32 1.0, %v5852_v46 }
 0x8f8   :  { %5869 = vrcp.f32 %v4231_v47  ;;  %v5856_v30 = vpop.eup %5855  ;;  %v4236_v51 = vadd.f32 1.0, %v5854_v39 }
 0x8f9   :  { %5871 = vrcp.f32 %v4232_v23  ;;  %v5858_v19 = vpop.eup %5857 }
 0x8fa   :  { %5873 = vrcp.f32 %v4233_v12 }
 0x8fb   :  { %5875 = vtanh.f32 %v4282_v56 }
 0x8fc   :  { %5877 = vtanh.f32 %v4283_v17 }
 0x8fd   :  { %v5860_v21 = vpop.eup %5859  ;;  %5879 = vtanh.f32 %v4284_v26 }
 0x8fe   :  { %v5862_v27 = vpop.eup %5861  ;;  %v4301_v0 = vrot.slane %v5860_v21, 1  ;;  %5881 = vrcp.f32 %v4234_v60 }
 0x8ff   :  { %v5864_v38 = vpop.eup %5863  ;;  %v4302_v14 = vrot.slane %v5862_v27, 1  ;;  %5883 = vrcp.f32 %v4235_v25 }
 0x900   :  { %v5866_v7 = vpop.eup %5865  ;;  %v4303_v2 = vrot.slane %v5864_v38, 1  ;;  %v4317_v9 = vsub.f32 %v6908_v50, %v4301_v0  ;;  %5885 = vrcp.f32 %v4236_v51 }
 0x901   :  { %v5868_v1 = vpop.eup %5867  ;;  %v4304_v5 = vrot.slane %v5866_v7, 1  ;;  %v4318_v3 = vsub.f32 %v6910_v34, %v4302_v14 }
 0x902   :  { %v5870_v4 = vpop.eup %5869  ;;  %v4305_v55 = vrot.slane %v5868_v1, 1  ;;  %v4319_v6 = vsub.f32 %v6913_v33, %v4303_v2  ;;  %v4333_v43 = vrot.slane %v4317_v9, 7 }
 0x903   :  { %v5872_v54 = vpop.eup %5871  ;;  %v4320_v31 = vsub.f32 %v6916_v52, %v4304_v5  ;;  %v4334_v48 = vrot.slane %v4318_v3, 7 }
 0x904   :  { %v5874_v40 = vpop.eup %5873  ;;  %v4321_v22 = vsub.f32 %v6921_v45, %v4305_v55  ;;  %v4335_v50 = vrot.slane %v4319_v6, 7  ;;  %v4349_v44 = vmul.f32 %v5856_v30, %v4333_v43 }
 0x905   :  { %v5876_v8 = vpop.eup %5875  ;;  %v4336_v49 = vrot.slane %v4320_v31, 7  ;;  %v4350_v20 = vmul.f32 %v5858_v19, %v4334_v48 }
 0x906   :  { %v5878_v34 = vpop.eup %5877  ;;  %v4306_v13 = vrot.slane %v5876_v8, 1  ;;  %v4337_v36 = vrot.slane %v4321_v22, 7  ;;  %v4351_v28 = vmul.f32 %v5870_v4, %v4335_v50  ;;  %v4357_v33 = vadd.f32 %v5860_v21, %v4349_v44 }
 0x907   :  { %v5880_v59 = vpop.eup %5879  ;;  %v4307_v24 = vrot.slane %v5878_v34, 1  ;;  %v4352_v11 = vmul.f32 %v5872_v54, %v4336_v49  ;;  %v4358_v58 = vadd.f32 %v5862_v27, %v4350_v20 }
 0x908   :  { %v4308_v52 = vrot.slane %v5880_v59, 1  ;;  %v4322_v18 = vsub.f32 %v6929_v61, %v4306_v13  ;;  %v4353_v57 = vmul.f32 %v5874_v40, %v4337_v36  ;;  %v4359_v45 = vadd.f32 %v5864_v38, %v4351_v28  ;;  %4389 = vst.msk [vmem:[#allocation8 - $0x7] sm:$0x80] %vm4388_vm9, %v4357_v33  ;;  %v5882_v37 = vpop.eup %5881 }
 0x909   :  { %v4323_v63 = vsub.f32 %v6931_v15, %v4307_v24  ;;  %v4360_v29 = vadd.f32 %v5866_v7, %v4352_v11  ;;  %v4373_v62 = vrot.slane %v4358_v58, 7  ;;  %v5884_v56 = vpop.eup %5883 }
 0x90a   :  { %v4324_v47 = vsub.f32 %v6934_v10, %v4308_v52  ;;  %v4338_v41 = vrot.slane %v4322_v18, 7  ;;  %v4361_v32 = vadd.f32 %v5868_v1, %v4353_v57  ;;  %v4374_v23 = vrot.slane %v4359_v45, 6  ;;  %v5886_v46 = vpop.eup %5885 }
 0x90b   :  { %v4339_v42 = vrot.slane %v4323_v63, 7  ;;  %v4376_v12 = vrot.slane %v4360_v29, 5 }
 0x90c   :  { %v4340_v16 = vrot.slane %v4324_v47, 7  ;;  %v4354_v53 = vmul.f32 %v5882_v37, %v4338_v41  ;;  %v4375_v61 = vsel %vm881_vm2, %v4374_v23, %v4373_v62  ;;  %v4378_v17 = vrot.slane %v4361_v32, 4 }
 0x90d   :  { %v4355_v35 = vmul.f32 %v5884_v56, %v4339_v42  ;;  %v4377_v15 = vsel %vm884_vm3, %v4376_v12, %v4375_v61 }
 0x90e   :  { %v4356_v26 = vmul.f32 %v5886_v46, %v4340_v16  ;;  %v4362_v39 = vadd.f32 %v5876_v8, %v4354_v53  ;;  %v4379_v10 = vsel %vm887_vm4, %v4378_v17, %v4377_v15 }
 0x90f   :  { %v4363_v30 = vadd.f32 %v5878_v34, %v4355_v35 }
 0x910   :  { %v4364_v19 = vadd.f32 %v5880_v59, %v4356_v26  ;;  %v4380_v21 = vrot.slane %v4362_v39, 3 }
 0x911   :  { %v4382_v60 = vrot.slane %v4363_v30, 2 }
 0x912   :  { %v4381_v27 = vsel %vm890_vm5, %v4380_v21, %v4379_v10  ;;  %v4384_v25 = vrot.slane %v4364_v19, 1 }
 0x913   :  { %v4383_v0 = vsel %vm893_vm6, %v4382_v60, %v4381_v27 }
 0x914   :  { %v4385_v38 = vsel %vm896_vm7, %v4384_v25, %v4383_v0 }
 0x915   :  { %4391 = vst.msk [vmem:[#allocation8 + $0x1] sm:$0x7f] %vm4390_vm10, %v4385_v38 }
 0x916   :  { %5966 = shalt.err (!%p5963_p0)
}
 0x917   :  { %s5967_s17 = scalar_lea.hbm %s7016_s5, 128 }
 0x918   :  { %p5968_p1 = scmp.ne.s32.totalorder %s7016_s5, %s5967_s17  ;;  %p5971_p2 = scmp.lt.u32.totalorder %s5967_s17, %s7016_s5 }
 0x91a   :  { %p5973_p3 = pnand %p5971_p2, %p5968_p1 }
 0x91c   :  { %5976 = shalt.err (!%p5973_p3)
}
 0x91d   :  { %4401 = dma.vmem_to_hbm [thread:$0]  %s4399_s14, 128, %s7016_s5, [#allocation4]  }
 0x91e   :  { %5981 = dma.done.wait [#allocation4], 128  }
 0x91f   :  { %5982 = vsyncadd [#allocation4], 4294967168 }
 0x920   :  { %4405 = vsyncpa [#allocation3], 1 }
 0x921   :  { %4406 = vsyncpa [#allocation6], 1 }
 0x922   :  { %4407 = vsyncpa [#allocation4], 1 }

</bundles_post_ra>
